<compile_context>
chip_gen: v7x
topology: tpu7x:2x2x1
jax: 0.10.0
libtpu: 0.0.40
codegen_flags: <defaults>
</compile_context>

<pallas_src>
import numpy as np

import jax
import jax.numpy as jnp
from jax.experimental import pallas as pl
from jax.experimental.pallas import tpu as pltpu

# ---------------------------------------------------------------------------
# Small-model configuration (consistent with the module's construction rules)
# ---------------------------------------------------------------------------
B = 2                 # batch
N = 32                # DCT size == win_size
WIN = 32
HOP = 8
SIG_LEN = 56          # -> T = (SIG_LEN + 2*(WIN//2) - WIN)//HOP + 1 = 8 frames
NFRAMES = (SIG_LEN + 2 * (WIN // 2) - WIN) // HOP + 1
CHANNELS = [4, 4, 8]  # encoder channels (module prepends 1)
KSIZE = (5, 2)
RNN_LAYERS = 2
RNN_CH = 16
EPS = 1e-5

CH = [1] + CHANNELS
NENC = len(CH) - 1
H2 = 2 * RNN_CH                         # far+mix hidden stacked on lanes (32)
G = 4 * H2                              # 128 gate lanes per layer
LSTM_IN = (N // 2 ** NENC) * CH[-1]     # 32 per branch
SLAB_W = 128                            # lane width of the packed weight slab
OUT_W = 3 * 128                         # [res (T*N=256) | wav (<=128)] lane-dense output


# ---------------------------------------------------------------------------
# Static slab layout (depends only on the architecture, not on weight values)
# ---------------------------------------------------------------------------
def _slab_layout():
    off = {}
    row = [0]

    def add(name, rows, cols):
        off[name] = (row[0], rows, cols)
        row[0] += rows

    for s in range(NENC):                              # encoder stages
        f_in = N >> s
        f_out = f_in >> 1
        din = 2 * f_in * CH[s]                         # both branches on lanes
        dout = 2 * f_out * CH[s + 1]
        add(f'e{s}w', 2 * din, dout)                   # stacked K: [current ; previous] frame
        add(f'e{s}ssa', 3, dout)                       # folded BN scale/shift + PReLU alpha
    add('wih1', 2 * LSTM_IN, G)                        # layer-1 input proj (gate-packed)
    add('b1', 1, G)
    add('wrecL', 2 * H2, G)                            # [whh1 ; 0]
    add('wrecR', 2 * H2, G)                            # [wih2 ; whh2]
    add('b2', 1, G)
    add('wlin', H2, 2 * LSTM_IN)
    add('blin', 1, 2 * LSTM_IN)
    for s in range(NENC):                              # decoder (ConvT) stages
        f_in = N >> (NENC - s)
        f_out = 2 * f_in
        c_state = CH[NENC - s]
        dout = 2 * f_out * CH[NENC - 1 - s]
        din = 2 * 2 * f_in * c_state                   # [state_f|state_m|skip_f|skip_m]
        add(f'd{s}w', 2 * din, dout)
        add(f'd{s}ssa', 3, dout)
    add('wistdct', NFRAMES * N, SLAB_W)                # iDCT+hann+OLA+1/sum(win^2)+trim folded
    return off, row[0]


SLAB_OFF, SLAB_ROWS = _slab_layout()


# ---------------------------------------------------------------------------
# The single fused Pallas kernel
# ---------------------------------------------------------------------------
def _dctcrn_kernel(w12_ref, far_ref, mix_ref, slab_ref, biga_ref, out_ref):
    f32 = jnp.float32
    T = NFRAMES
    TB = T * B

    def w(name):
        r0, nr, nc = SLAB_OFF[name]
        return slab_ref[r0:r0 + nr, 0:nc]              # static slices: zero-cost views

    # ---- STDCT: windowing + DCT-II + framing folded into one pack-time matrix ----
    sig = jnp.concatenate([far_ref[...], mix_ref[...]], axis=1)         # (B, 2*SIG_LEN)
    spec_b = jnp.dot(sig, biga_ref[...], preferred_element_type=f32)    # (B, T*2N) lane-dense
    # relayout rows (b) -> (t, b): 8 aligned 64-lane extracts + one sublane concat
    x0 = jnp.concatenate([spec_b[:, t * 2 * N:(t + 1) * 2 * N] for t in range(T)],
                         axis=0)                                        # (T*B, 2N)  [far | mix]

    # ---- fused CausalConv/ConvT + BN(eval) + PReLU: ONE stacked-K matmul per stage ----
    def conv_block(x, wname, ssaname):
        # rows are (t, b): "previous frame" = rows shifted down by B, zeros for t == 0
        xprev = jnp.concatenate(
            [jnp.zeros((B, x.shape[1]), f32), x[:TB - B, :]], axis=0)
        xx = jnp.concatenate([x, xprev], axis=1)        # stacked contraction axis
        y = jnp.dot(xx, w(wname), preferred_element_type=f32)
        ssa = w(ssaname)
        y = y * ssa[0:1, :] + ssa[1:2, :]               # folded BatchNorm (eval)
        return jnp.where(y >= 0.0, y, ssa[2:3, :] * y)  # PReLU (per-branch alpha)

    enc1 = conv_block(x0,   'e0w', 'e0ssa')             # (T*B, 128)  2 branches x (F=16, C=4)
    enc2 = conv_block(enc1, 'e1w', 'e1ssa')             # (T*B, 64)   F=8,  C=4
    enc3 = conv_block(enc2, 'e2w', 'e2ssa')             # (T*B, 64)   F=4,  C=8

    # ---- 2-layer LSTM, both branches via block weights; gates packed [i | f | o | g] ----
    def lstm_cell(g, c):
        sg = jax.nn.sigmoid(g[:, 0:3 * H2])              # one EUP push for i,f,o
        i_g = sg[:, 0:H2]
        f_g = sg[:, H2:2 * H2]
        o_g = sg[:, 2 * H2:3 * H2]
        c_g = jnp.tanh(g[:, 3 * H2:4 * H2])
        c = f_g * c + i_g * c_g
        return o_g * jnp.tanh(c), c

    # layer-1 input projection (and bias) hoisted out of the recurrence as one matmul
    xih1 = jnp.dot(enc3, w('wih1'), preferred_element_type=f32) + w('b1')
    # combined recurrence weights: [h1 | h2] @ [[whh1, wih2], [0, whh2]]  (one MXU push / step)
    wrec = jnp.concatenate([w('wrecL'), w('wrecR')], axis=1)            # (2*H2, 2*G)
    b2v = w('b2')

    h1 = jnp.zeros((B, H2), f32)
    c1 = jnp.zeros((B, H2), f32)
    h2 = jnp.zeros((B, H2), f32)
    c2 = jnp.zeros((B, H2), f32)
    hs2 = []
    # software-pipelined recurrences: step t runs layer-1 cell t and layer-2 cell t-1
    for t in range(T + 1):
        if t == 0:
            h1, c1 = lstm_cell(xih1[0:B, :], c1)
            continue
        gg = jnp.dot(jnp.concatenate([h1, h2], axis=1), wrec,
                     preferred_element_type=f32)                        # (B, 2*G)
        g2 = gg[:, G:2 * G] + b2v
        if t < T:
            h1n, c1 = lstm_cell(xih1[t * B:(t + 1) * B, :] + gg[:, 0:G], c1)
        h2, c2 = lstm_cell(g2, c2)                                      # layer-2 cell t-1
        hs2.append(h2)
        if t < T:
            h1 = h1n
    h2_all = jnp.concatenate(hs2, axis=0)                               # (T*B, H2), rows (t, b)

    # ---- per-branch linear transform back to C*F features ----
    state = jnp.dot(h2_all, w('wlin'), preferred_element_type=f32) + w('blin')

    # ---- decoders (transposed convs) with encoder skip connections ----
    d1 = conv_block(jnp.concatenate([state, enc3], axis=1), 'd0w', 'd0ssa')  # (T*B, 64)
    d2 = conv_block(jnp.concatenate([d1, enc2], axis=1),    'd1w', 'd1ssa')  # (T*B, 128)
    d3 = conv_block(jnp.concatenate([d2, enc1], axis=1),    'd2w', 'd2ssa')  # (T*B, 64)

    # ---- combine (masking_mode='N'): res = w1*(mix - x_f[echo dec]) + w2*x_m[speech dec] ----
    w1 = w12_ref[0]
    w2 = w12_ref[1]
    mix_spec = x0[:, N:2 * N]
    res = w1 * (mix_spec - d3[:, 0:N]) + w2 * d3[:, N:2 * N]            # (T*B, N)

    # ---- lane-dense epilogue: relayout to (B, T*N); iSTDCT + overlap-add as ONE matmul ----
    res_bt = jnp.concatenate([res[t * B:(t + 1) * B, :] for t in range(T)],
                             axis=1)                                    # (B, T*N) = (2, 256)
    wav = jnp.dot(res_bt, w('wistdct'), preferred_element_type=f32)     # (B, 128), wav in [0:56]
    out_ref[...] = jnp.concatenate([res_bt, wav], axis=1)               # (B, 384) unmasked store


# ---------------------------------------------------------------------------
# Weight packing: PyTorch-style parameters -> one lane-dense slab + STDCT matrix
# ---------------------------------------------------------------------------
def band_placement_conv(f_in, f_out, kh=5, pad=2, stride=2):
    """P[fi, fo, k] = 1 iff conv (freq pad=2, stride=2, kernel kh) couples fi -> fo via tap k."""
    p = np.zeros((f_in, f_out, kh), np.float32)
    for fo in range(f_out):
        for k in range(kh):
            fi = stride * fo + k - pad
            if 0 <= fi < f_in:
                p[fi, fo, k] = 1.0
    return p


def band_placement_convT(f_in, f_out, kh=4, pad=1, stride=2):
    """P[fi, go, k] = 1 iff ConvTranspose (stride=2, pad=1, kernel kh) couples fi -> go via tap k."""
    p = np.zeros((f_in, f_out, kh), np.float32)
    for fi in range(f_in):
        for k in range(kh):
            go = stride * fi + k - pad
            if 0 <= go < f_out:
                p[fi, go, k] = 1.0
    return p


def make_dct_and_window():
    n = np.arange(N)
    k = np.arange(N)
    d = np.sqrt(2.0 / N) * np.cos(np.pi * (n[None, :] + 0.5) * k[:, None] / N)
    d[0, :] *= 1.0 / np.sqrt(2.0)
    win = 0.5 - 0.5 * np.cos(2.0 * np.pi * np.arange(WIN) / WIN)   # periodic hann
    return d.astype(np.float32), win.astype(np.float32)


GATE_ORDER = (0, 1, 3, 2)   # torch gate layout [i, f, g, o] -> kernel layout [i, f, o, g]


def pack_params(params):
    p = jax.tree_util.tree_map(np.asarray, params)
    slab = np.zeros((SLAB_ROWS, SLAB_W), np.float32)

    def put(name, arr):
        r0, nr, nc = SLAB_OFF[name]
        arr = np.asarray(arr, np.float32)
        assert arr.shape == (nr, nc), (name, arr.shape, (nr, nc))
        slab[r0:r0 + nr, :nc] = arr

    def fold_bn(q):
        scale = q['gamma'] / np.sqrt(q['var'] + EPS)
        shift = q['beta'] + (q['b'] - q['mean']) * scale
        return scale, shift

    def blockdiag2(wf, wm):
        rf, cf = wf.shape
        rm, cm = wm.shape
        out = np.zeros((rf + rm, cf + cm), np.float32)
        out[:rf, :cf] = wf
        out[rf:, cf:] = wm
        return out

    def ssa_vec(pf, pm, f_out, c_out):
        sf, hf = fold_bn(pf)
        sm, hm = fold_bn(pm)
        scale = np.concatenate([np.tile(sf, f_out), np.tile(sm, f_out)])
        shift = np.concatenate([np.tile(hf, f_out), np.tile(hm, f_out)])
        alpha = np.concatenate([np.repeat(pf['alpha'], f_out * c_out),
                                np.repeat(pm['alpha'], f_out * c_out)])
        return np.stack([scale, shift, alpha], axis=0)

    def conv_band(place, wgt, j):
        # wgt: (Co, Ci, kh, 2) -> (Fi*Ci, Fo*Co); rows (fi, ci) f-major, cols (fo, co) f-major
        wb = np.einsum('fgk,ock->fcgo', place, wgt[:, :, :, j])
        fi, ci, fo, co = wb.shape
        return wb.reshape(fi * ci, fo * co)

    def convT_band(place, wgt, j):
        # wgt: (Ci, Co, kh, 2)  (PyTorch ConvTranspose2d layout)
        wb = np.einsum('fgk,cok->fcgo', place, wgt[:, :, :, j])
        fi, ci, fo, co = wb.shape
        return wb.reshape(fi * ci, fo * co)

    # ---- encoder: out[t] = w[...,1]*x[t] + w[...,0]*x[t-1]; K stacked [current ; previous] ----
    for s in range(NENC):
        f_in = N >> s
        f_out = f_in >> 1
        place = band_placement_conv(f_in, f_out)
        pf, pm = p['enc_far'][s], p['enc_mix'][s]
        wc = blockdiag2(conv_band(place, pf['w'], 1), conv_band(place, pm['w'], 1))
        wp = blockdiag2(conv_band(place, pf['w'], 0), conv_band(place, pm['w'], 0))
        put(f'e{s}w', np.concatenate([wc, wp], axis=0))
        put(f'e{s}ssa', ssa_vec(pf, pm, f_out, CH[s + 1]))

    # ---- decoder: out[t] = w[...,0]*x[t] + w[...,1]*x[t-1]; input [st_f|st_m|sk_f|sk_m] ----
    for s in range(NENC):
        f_in = N >> (NENC - s)
        f_out = 2 * f_in
        c_state = CH[NENC - s]
        c_out = CH[NENC - 1 - s]
        place = band_placement_convT(f_in, f_out)
        pf, pm = p['dec_echo'][s], p['dec_speech'][s]

        def assemble(j, pf=pf, pm=pm, place=place, c_state=c_state):
            st_f = convT_band(place, pf['w'][:c_state], j)
            sk_f = convT_band(place, pf['w'][c_state:], j)
            st_m = convT_band(place, pm['w'][:c_state], j)
            sk_m = convT_band(place, pm['w'][c_state:], j)
            z = np.zeros_like(st_f)
            return np.concatenate([
                np.concatenate([st_f, z], axis=1),
                np.concatenate([z, st_m], axis=1),
                np.concatenate([sk_f, z], axis=1),
                np.concatenate([z, sk_m], axis=1)], axis=0)

        put(f'd{s}w', np.concatenate([assemble(0), assemble(1)], axis=0))
        put(f'd{s}ssa', ssa_vec(pf, pm, f_out, c_out))

    # ---- LSTM: gate columns [i_f i_m | f_f f_m | o_f o_m | g_f g_m] (sigmoid block first) ----
    def pack_gates(wf, wm, hdim):
        din = wf.shape[0]
        out = np.zeros((2 * din, 8 * hdim), np.float32)
        for slot, k in enumerate(GATE_ORDER):
            out[:din, slot * 2 * hdim: slot * 2 * hdim + hdim] = wf[:, k * hdim:(k + 1) * hdim]
            out[din:, slot * 2 * hdim + hdim: (slot + 1) * 2 * hdim] = wm[:, k * hdim:(k + 1) * hdim]
        return out

    def pack_gate_bias(bf, bm, hdim):
        parts = []
        for k in GATE_ORDER:
            parts += [bf[k * hdim:(k + 1) * hdim], bm[k * hdim:(k + 1) * hdim]]
        return np.concatenate(parts)[None, :]

    lf, lm = p['lstm_far'], p['lstm_mix']
    whh1 = pack_gates(lf[0]['whh'], lm[0]['whh'], RNN_CH)
    wih2 = pack_gates(lf[1]['wih'], lm[1]['wih'], RNN_CH)
    whh2 = pack_gates(lf[1]['whh'], lm[1]['whh'], RNN_CH)
    put('wih1', pack_gates(lf[0]['wih'], lm[0]['wih'], RNN_CH))
    put('b1', pack_gate_bias(lf[0]['b'], lm[0]['b'], RNN_CH))
    put('wrecL', np.concatenate([whh1, np.zeros((H2, G), np.float32)], axis=0))
    put('wrecR', np.concatenate([wih2, whh2], axis=0))
    put('b2', pack_gate_bias(lf[1]['b'], lm[1]['b'], RNN_CH))

    put('wlin', blockdiag2(p['lin_far']['w'], p['lin_mix']['w']))
    put('blin', np.concatenate([p['lin_far']['b'], p['lin_mix']['b']])[None, :])

    # ---- STDCT constant: (zero center pad -> hann window -> DCT-II) for all frames ----
    dmat, win = make_dct_and_window()
    A = win[None, :] * dmat                                  # A[k, w] = win[w]*dct[k, w]
    biga = np.zeros((2 * SIG_LEN, NFRAMES * 2 * N), np.float32)
    for t in range(NFRAMES):
        for wp_ in range(WIN):
            j = t * HOP + wp_ - WIN // 2
            if 0 <= j < SIG_LEN:
                biga[j, t * 2 * N: t * 2 * N + N] += A[:, wp_]                 # far
                biga[SIG_LEN + j, t * 2 * N + N: t * 2 * N + 2 * N] += A[:, wp_]  # mix

    # ---- iSTDCT constant: windowed iDCT + overlap-add + 1/sum(win^2) + center trim ----
    lp = (NFRAMES - 1) * HOP + WIN
    wsq = np.zeros(lp, np.float32)
    for t in range(NFRAMES):
        wsq[t * HOP: t * HOP + WIN] += win ** 2
    inv_wsq = 1.0 / (wsq + 1e-8)
    wist = np.zeros((NFRAMES * N, SLAB_W), np.float32)
    for t in range(NFRAMES):
        for so in range(SIG_LEN):
            wp_ = so + WIN // 2 - t * HOP
            if 0 <= wp_ < WIN:
                wist[t * N:(t + 1) * N, so] = A[:, wp_] * inv_wsq[so + WIN // 2]
    put('wistdct', wist)

    return {'slab': jnp.asarray(slab),
            'bigA': jnp.asarray(biga),
            'w12': jnp.asarray(p['w12'], jnp.float32)}


# ---------------------------------------------------------------------------
# Parameter init (PyTorch-like structure, eval-mode BatchNorm stats)
# ---------------------------------------------------------------------------
def init_params(key):
    keys = iter(jax.random.split(key, 64))

    def norm_p(co):
        return {'gamma': jnp.ones((co,), jnp.float32),
                'beta': jnp.zeros((co,), jnp.float32),
                'mean': jnp.zeros((co,), jnp.float32),
                'var': jnp.ones((co,), jnp.float32),
                'alpha': jnp.full((1,), 0.25, jnp.float32)}

    def conv_p(ci, co):
        p = {'w': jax.random.normal(next(keys), (co, ci, KSIZE[0], KSIZE[1]), jnp.float32) * 0.1,
             'b': jax.random.normal(next(keys), (co,), jnp.float32) * 0.01}
        p.update(norm_p(co))
        return p

    def convT_p(ci, co):
        p = {'w': jax.random.normal(next(keys), (ci, co, 4, KSIZE[1]), jnp.float32) * 0.1,
             'b': jax.random.normal(next(keys), (co,), jnp.float32) * 0.01}
        p.update(norm_p(co))
        return p

    def lstm_p(din, h):
        s = 1.0 / np.sqrt(h)
        return {'wih': jax.random.normal(next(keys), (din, 4 * h), jnp.float32) * s,
                'whh': jax.random.normal(next(keys), (h, 4 * h), jnp.float32) * s,
                'b': jax.random.normal(next(keys), (4 * h,), jnp.float32) * 0.01}

    def lin_p(din, dout):
        return {'w': jax.random.normal(next(keys), (din, dout), jnp.float32) / np.sqrt(din),
                'b': jax.random.normal(next(keys), (dout,), jnp.float32) * 0.01}

    return {
        'enc_far': [conv_p(CH[i], CH[i + 1]) for i in range(NENC)],
        'enc_mix': [conv_p(CH[i], CH[i + 1]) for i in range(NENC)],
        'dec_echo': [convT_p(CH[i] * 2, CH[i - 1]) for i in range(NENC, 0, -1)],
        'dec_speech': [convT_p(CH[i] * 2, CH[i - 1]) for i in range(NENC, 0, -1)],
        'lstm_far': [lstm_p(LSTM_IN if l == 0 else RNN_CH, RNN_CH) for l in range(RNN_LAYERS)],
        'lstm_mix': [lstm_p(LSTM_IN if l == 0 else RNN_CH, RNN_CH) for l in range(RNN_LAYERS)],
        'lin_far': lin_p(RNN_CH, LSTM_IN),
        'lin_mix': lin_p(RNN_CH, LSTM_IN),
        'w12': jax.random.normal(next(keys), (2,), jnp.float32),
    }


# ---------------------------------------------------------------------------
# Forward pass = one pallas_call (4 VMEM DMAs + 1 SMEM scalar pair)
# ---------------------------------------------------------------------------
def dctcrn_forward(packed, far, mix):
    smem = pl.BlockSpec(memory_space=pltpu.MemorySpace.SMEM)
    vmem = pl.BlockSpec(memory_space=pltpu.MemorySpace.VMEM)

    out = pl.pallas_call(
        _dctcrn_kernel,
        out_shape=jax.ShapeDtypeStruct((B, OUT_W), jnp.float32),
        in_specs=[smem, vmem, vmem, vmem, vmem],
        out_specs=vmem,
    )(packed['w12'], far, mix, packed['slab'], packed['bigA'])

    res_bt = out[:, :NFRAMES * N]                              # (B, T*N), lane-dense
    wav = out[:, NFRAMES * N: NFRAMES * N + SIG_LEN]           # (B, SIG_LEN)
    res = jnp.transpose(res_bt.reshape(B, NFRAMES, N), (0, 2, 1))  # (B, N, T) module layout
    return wav, res


# ---------------------------------------------------------------------------
if __name__ == "__main__":
    key = jax.random.PRNGKey(0)
    kp, kf, km = jax.random.split(key, 3)
    params = init_params(kp)
    packed = pack_params(params)        # packed once, outside jit (constants hoisted)

    far = jax.random.normal(kf, (B, SIG_LEN), jnp.float32)
    mix = jax.random.normal(km, (B, SIG_LEN), jnp.float32)

    fwd = jax.jit(dctcrn_forward)
    wav, res = fwd(packed, far, mix)
    jax.block_until_ready((wav, res))

    assert wav.shape == (B, SIG_LEN), wav.shape
    assert res.shape == (B, N, SIG_LEN // HOP + 1), res.shape
    assert bool(jnp.all(jnp.isfinite(wav))) and bool(jnp.all(jnp.isfinite(res)))
    print("KERNEL_OK")
</pallas_src>

<mosaic_0001>
module attributes {stable_mosaic.version = 11 : i64} {
  func.func @_dctcrn_kernel(%arg0: memref<2xf32, #tpu.memory_space<smem>>, %arg1: memref<2x56xf32, #tpu.memory_space<vmem>>, %arg2: memref<2x56xf32, #tpu.memory_space<vmem>>, %arg3: memref<2037x128xf32, #tpu.memory_space<vmem>>, %arg4: memref<112x512xf32, #tpu.memory_space<vmem>>, %arg5: memref<2x384xf32, #tpu.memory_space<vmem>>) attributes {dimension_semantics = [], scalar_prefetch = 0 : i64, scratch_operands = 0 : i64, tpu.core_type = #tpu.core_type<tc>} {
    %c0 = arith.constant 0 : index
    %c0_0 = arith.constant 0 : index
    %0 = vector.load %arg1[%c0, %c0_0] : memref<2x56xf32, #tpu.memory_space<vmem>>, vector<2x56xf32>
    %c0_1 = arith.constant 0 : index
    %c0_2 = arith.constant 0 : index
    %1 = vector.load %arg2[%c0_1, %c0_2] : memref<2x56xf32, #tpu.memory_space<vmem>>, vector<2x56xf32>
    %2 = tpu.concatenate %0, %1 in 1 : vector<2x56xf32>, vector<2x56xf32> -> vector<2x112xf32>
    %c0_3 = arith.constant 0 : index
    %c0_4 = arith.constant 0 : index
    %3 = vector.load %arg4[%c0_3, %c0_4] : memref<112x512xf32, #tpu.memory_space<vmem>>, vector<112x512xf32>
    %cst = arith.constant dense<0.000000e+00> : vector<2x512xf32>
    %4 = tpu.matmul %2, %3, %cst {dimension_numbers = #tpu.dot_dimension_numbers<[1], [0], [0], [1], [0, 0, 1, 1], [], []>} : vector<2x112xf32>, vector<112x512xf32>, vector<2x512xf32> -> vector<2x512xf32>
    %5 = vector.extract_strided_slice %4 {offsets = [0, 0], sizes = [2, 64], strides = [1, 1]} : vector<2x512xf32> to vector<2x64xf32>
    %6 = vector.extract_strided_slice %4 {offsets = [0, 64], sizes = [2, 64], strides = [1, 1]} : vector<2x512xf32> to vector<2x64xf32>
    %7 = vector.extract_strided_slice %4 {offsets = [0, 128], sizes = [2, 64], strides = [1, 1]} : vector<2x512xf32> to vector<2x64xf32>
    %8 = vector.extract_strided_slice %4 {offsets = [0, 192], sizes = [2, 64], strides = [1, 1]} : vector<2x512xf32> to vector<2x64xf32>
    %9 = vector.extract_strided_slice %4 {offsets = [0, 256], sizes = [2, 64], strides = [1, 1]} : vector<2x512xf32> to vector<2x64xf32>
    %10 = vector.extract_strided_slice %4 {offsets = [0, 320], sizes = [2, 64], strides = [1, 1]} : vector<2x512xf32> to vector<2x64xf32>
    %11 = vector.extract_strided_slice %4 {offsets = [0, 384], sizes = [2, 64], strides = [1, 1]} : vector<2x512xf32> to vector<2x64xf32>
    %12 = vector.extract_strided_slice %4 {offsets = [0, 448], sizes = [2, 64], strides = [1, 1]} : vector<2x512xf32> to vector<2x64xf32>
    %13 = tpu.concatenate %5, %6, %7, %8, %9, %10, %11, %12 in 0 : vector<2x64xf32>, vector<2x64xf32>, vector<2x64xf32>, vector<2x64xf32>, vector<2x64xf32>, vector<2x64xf32>, vector<2x64xf32>, vector<2x64xf32> -> vector<16x64xf32>
    %cst_5 = arith.constant 0.000000e+00 : f32
    %14 = vector.broadcast %cst_5 : f32 to vector<2x64xf32>
    %15 = vector.extract_strided_slice %13 {offsets = [0, 0], sizes = [14, 64], strides = [1, 1]} : vector<16x64xf32> to vector<14x64xf32>
    %16 = tpu.concatenate %14, %15 in 0 : vector<2x64xf32>, vector<14x64xf32> -> vector<16x64xf32>
    %17 = tpu.concatenate %13, %16 in 1 : vector<16x64xf32>, vector<16x64xf32> -> vector<16x128xf32>
    %c0_6 = arith.constant 0 : index
    %c0_7 = arith.constant 0 : index
    %18 = vector.load %arg3[%c0_6, %c0_7] : memref<2037x128xf32, #tpu.memory_space<vmem>>, vector<128x128xf32>
    %cst_8 = arith.constant dense<0.000000e+00> : vector<16x128xf32>
    %19 = tpu.matmul %17, %18, %cst_8 {dimension_numbers = #tpu.dot_dimension_numbers<[1], [0], [0], [1], [0, 0, 1, 1], [], []>} : vector<16x128xf32>, vector<128x128xf32>, vector<16x128xf32> -> vector<16x128xf32>
    %c128 = arith.constant 128 : index
    %c0_9 = arith.constant 0 : index
    %20 = vector.load %arg3[%c128, %c0_9] : memref<2037x128xf32, #tpu.memory_space<vmem>>, vector<3x128xf32>
    %21 = vector.extract_strided_slice %20 {offsets = [0, 0], sizes = [1, 128], strides = [1, 1]} : vector<3x128xf32> to vector<1x128xf32>
    %22 = vector.broadcast %21 : vector<1x128xf32> to vector<16x128xf32>
    %23 = arith.mulf %19, %22 : vector<16x128xf32>
    %24 = vector.extract_strided_slice %20 {offsets = [1, 0], sizes = [1, 128], strides = [1, 1]} : vector<3x128xf32> to vector<1x128xf32>
    %25 = vector.broadcast %24 : vector<1x128xf32> to vector<16x128xf32>
    %26 = arith.addf %23, %25 : vector<16x128xf32>
    %cst_10 = arith.constant 0.000000e+00 : f32
    %27 = vector.broadcast %cst_10 : f32 to vector<16x128xf32>
    %28 = arith.cmpf oge, %26, %27 : vector<16x128xf32>
    %29 = vector.extract_strided_slice %20 {offsets = [2, 0], sizes = [1, 128], strides = [1, 1]} : vector<3x128xf32> to vector<1x128xf32>
    %30 = vector.broadcast %29 : vector<1x128xf32> to vector<16x128xf32>
    %31 = arith.mulf %30, %26 : vector<16x128xf32>
    %32 = arith.select %28, %26, %31 : vector<16x128xi1>, vector<16x128xf32>
    %cst_11 = arith.constant 0.000000e+00 : f32
    %33 = vector.broadcast %cst_11 : f32 to vector<2x128xf32>
    %34 = vector.extract_strided_slice %32 {offsets = [0, 0], sizes = [14, 128], strides = [1, 1]} : vector<16x128xf32> to vector<14x128xf32>
    %35 = tpu.concatenate %33, %34 in 0 : vector<2x128xf32>, vector<14x128xf32> -> vector<16x128xf32>
    %36 = tpu.concatenate %32, %35 in 1 : vector<16x128xf32>, vector<16x128xf32> -> vector<16x256xf32>
    %c131 = arith.constant 131 : index
    %c0_12 = arith.constant 0 : index
    %37 = vector.load %arg3[%c131, %c0_12] : memref<2037x128xf32, #tpu.memory_space<vmem>>, vector<256x64xf32>
    %cst_13 = arith.constant dense<0.000000e+00> : vector<16x64xf32>
    %38 = tpu.matmul %36, %37, %cst_13 {dimension_numbers = #tpu.dot_dimension_numbers<[1], [0], [0], [1], [0, 0, 1, 1], [], []>} : vector<16x256xf32>, vector<256x64xf32>, vector<16x64xf32> -> vector<16x64xf32>
    %c387 = arith.constant 387 : index
    %c0_14 = arith.constant 0 : index
    %39 = vector.load %arg3[%c387, %c0_14] : memref<2037x128xf32, #tpu.memory_space<vmem>>, vector<3x64xf32>
    %40 = vector.extract_strided_slice %39 {offsets = [0, 0], sizes = [1, 64], strides = [1, 1]} : vector<3x64xf32> to vector<1x64xf32>
    %41 = vector.broadcast %40 : vector<1x64xf32> to vector<16x64xf32>
    %42 = arith.mulf %38, %41 : vector<16x64xf32>
    %43 = vector.extract_strided_slice %39 {offsets = [1, 0], sizes = [1, 64], strides = [1, 1]} : vector<3x64xf32> to vector<1x64xf32>
    %44 = vector.broadcast %43 : vector<1x64xf32> to vector<16x64xf32>
    %45 = arith.addf %42, %44 : vector<16x64xf32>
    %cst_15 = arith.constant 0.000000e+00 : f32
    %46 = vector.broadcast %cst_15 : f32 to vector<16x64xf32>
    %47 = arith.cmpf oge, %45, %46 : vector<16x64xf32>
    %48 = vector.extract_strided_slice %39 {offsets = [2, 0], sizes = [1, 64], strides = [1, 1]} : vector<3x64xf32> to vector<1x64xf32>
    %49 = vector.broadcast %48 : vector<1x64xf32> to vector<16x64xf32>
    %50 = arith.mulf %49, %45 : vector<16x64xf32>
    %51 = arith.select %47, %45, %50 : vector<16x64xi1>, vector<16x64xf32>
    %cst_16 = arith.constant 0.000000e+00 : f32
    %52 = vector.broadcast %cst_16 : f32 to vector<2x64xf32>
    %53 = vector.extract_strided_slice %51 {offsets = [0, 0], sizes = [14, 64], strides = [1, 1]} : vector<16x64xf32> to vector<14x64xf32>
    %54 = tpu.concatenate %52, %53 in 0 : vector<2x64xf32>, vector<14x64xf32> -> vector<16x64xf32>
    %55 = tpu.concatenate %51, %54 in 1 : vector<16x64xf32>, vector<16x64xf32> -> vector<16x128xf32>
    %c390 = arith.constant 390 : index
    %c0_17 = arith.constant 0 : index
    %56 = vector.load %arg3[%c390, %c0_17] : memref<2037x128xf32, #tpu.memory_space<vmem>>, vector<128x64xf32>
    %cst_18 = arith.constant dense<0.000000e+00> : vector<16x64xf32>
    %57 = tpu.matmul %55, %56, %cst_18 {dimension_numbers = #tpu.dot_dimension_numbers<[1], [0], [0], [1], [0, 0, 1, 1], [], []>} : vector<16x128xf32>, vector<128x64xf32>, vector<16x64xf32> -> vector<16x64xf32>
    %c518 = arith.constant 518 : index
    %c0_19 = arith.constant 0 : index
    %58 = vector.load %arg3[%c518, %c0_19] : memref<2037x128xf32, #tpu.memory_space<vmem>>, vector<3x64xf32>
    %59 = vector.extract_strided_slice %58 {offsets = [0, 0], sizes = [1, 64], strides = [1, 1]} : vector<3x64xf32> to vector<1x64xf32>
    %60 = vector.broadcast %59 : vector<1x64xf32> to vector<16x64xf32>
    %61 = arith.mulf %57, %60 : vector<16x64xf32>
    %62 = vector.extract_strided_slice %58 {offsets = [1, 0], sizes = [1, 64], strides = [1, 1]} : vector<3x64xf32> to vector<1x64xf32>
    %63 = vector.broadcast %62 : vector<1x64xf32> to vector<16x64xf32>
    %64 = arith.addf %61, %63 : vector<16x64xf32>
    %cst_20 = arith.constant 0.000000e+00 : f32
    %65 = vector.broadcast %cst_20 : f32 to vector<16x64xf32>
    %66 = arith.cmpf oge, %64, %65 : vector<16x64xf32>
    %67 = vector.extract_strided_slice %58 {offsets = [2, 0], sizes = [1, 64], strides = [1, 1]} : vector<3x64xf32> to vector<1x64xf32>
    %68 = vector.broadcast %67 : vector<1x64xf32> to vector<16x64xf32>
    %69 = arith.mulf %68, %64 : vector<16x64xf32>
    %70 = arith.select %66, %64, %69 : vector<16x64xi1>, vector<16x64xf32>
    %c521 = arith.constant 521 : index
    %c0_21 = arith.constant 0 : index
    %71 = vector.load %arg3[%c521, %c0_21] : memref<2037x128xf32, #tpu.memory_space<vmem>>, vector<64x128xf32>
    %cst_22 = arith.constant dense<0.000000e+00> : vector<16x128xf32>
    %72 = tpu.matmul %70, %71, %cst_22 {dimension_numbers = #tpu.dot_dimension_numbers<[1], [0], [0], [1], [0, 0, 1, 1], [], []>} : vector<16x64xf32>, vector<64x128xf32>, vector<16x128xf32> -> vector<16x128xf32>
    %c585 = arith.constant 585 : index
    %c0_23 = arith.constant 0 : index
    %73 = vector.load %arg3[%c585, %c0_23] : memref<2037x128xf32, #tpu.memory_space<vmem>>, vector<1x128xf32>
    %74 = vector.broadcast %73 : vector<1x128xf32> to vector<16x128xf32>
    %75 = arith.addf %72, %74 : vector<16x128xf32>
    %c586 = arith.constant 586 : index
    %c0_24 = arith.constant 0 : index
    %76 = vector.load %arg3[%c586, %c0_24] : memref<2037x128xf32, #tpu.memory_space<vmem>>, vector<64x128xf32>
    %c650 = arith.constant 650 : index
    %c0_25 = arith.constant 0 : index
    %77 = vector.load %arg3[%c650, %c0_25] : memref<2037x128xf32, #tpu.memory_space<vmem>>, vector<64x128xf32>
    %78 = tpu.concatenate %76, %77 in 1 : vector<64x128xf32>, vector<64x128xf32> -> vector<64x256xf32>
    %c714 = arith.constant 714 : index
    %c0_26 = arith.constant 0 : index
    %79 = vector.load %arg3[%c714, %c0_26] : memref<2037x128xf32, #tpu.memory_space<vmem>>, vector<1x128xf32>
    %cst_27 = arith.constant 0.000000e+00 : f32
    %80 = vector.broadcast %cst_27 : f32 to vector<2x32xf32>
    %cst_28 = arith.constant 0.000000e+00 : f32
    %81 = vector.broadcast %cst_28 : f32 to vector<2x32xf32>
    %cst_29 = arith.constant 0.000000e+00 : f32
    %82 = vector.broadcast %cst_29 : f32 to vector<2x32xf32>
    %83 = vector.extract_strided_slice %75 {offsets = [0, 0], sizes = [2, 128], strides = [1, 1]} : vector<16x128xf32> to vector<2x128xf32>
    %84 = vector.extract_strided_slice %83 {offsets = [0, 0], sizes = [2, 96], strides = [1, 1]} : vector<2x128xf32> to vector<2x96xf32>
    %85 = arith.negf %84 : vector<2x96xf32>
    %86 = math.exp %85 : vector<2x96xf32>
    %cst_30 = arith.constant 1.000000e+00 : f32
    %87 = vector.broadcast %cst_30 : f32 to vector<2x96xf32>
    %88 = arith.addf %87, %86 : vector<2x96xf32>
    %89 = arith.divf %87, %88 : vector<2x96xf32>
    %90 = vector.extract_strided_slice %89 {offsets = [0, 0], sizes = [2, 32], strides = [1, 1]} : vector<2x96xf32> to vector<2x32xf32>
    %91 = vector.extract_strided_slice %89 {offsets = [0, 32], sizes = [2, 32], strides = [1, 1]} : vector<2x96xf32> to vector<2x32xf32>
    %92 = vector.extract_strided_slice %89 {offsets = [0, 64], sizes = [2, 32], strides = [1, 1]} : vector<2x96xf32> to vector<2x32xf32>
    %93 = vector.extract_strided_slice %83 {offsets = [0, 96], sizes = [2, 32], strides = [1, 1]} : vector<2x128xf32> to vector<2x32xf32>
    %94 = math.tanh %93 : vector<2x32xf32>
    %95 = arith.mulf %91, %80 : vector<2x32xf32>
    %96 = arith.mulf %90, %94 : vector<2x32xf32>
    %97 = arith.addf %95, %96 : vector<2x32xf32>
    %98 = math.tanh %97 : vector<2x32xf32>
    %99 = arith.mulf %92, %98 : vector<2x32xf32>
    %100 = tpu.concatenate %99, %81 in 1 : vector<2x32xf32>, vector<2x32xf32> -> vector<2x64xf32>
    %cst_31 = arith.constant dense<0.000000e+00> : vector<2x256xf32>
    %101 = tpu.matmul %100, %78, %cst_31 {dimension_numbers = #tpu.dot_dimension_numbers<[1], [0], [0], [1], [0, 0, 1, 1], [], []>} : vector<2x64xf32>, vector<64x256xf32>, vector<2x256xf32> -> vector<2x256xf32>
    %102 = vector.extract_strided_slice %101 {offsets = [0, 128], sizes = [2, 128], strides = [1, 1]} : vector<2x256xf32> to vector<2x128xf32>
    %103 = vector.broadcast %79 : vector<1x128xf32> to vector<2x128xf32>
    %104 = arith.addf %102, %103 : vector<2x128xf32>
    %105 = vector.extract_strided_slice %75 {offsets = [2, 0], sizes = [2, 128], strides = [1, 1]} : vector<16x128xf32> to vector<2x128xf32>
    %106 = vector.extract_strided_slice %101 {offsets = [0, 0], sizes = [2, 128], strides = [1, 1]} : vector<2x256xf32> to vector<2x128xf32>
    %107 = arith.addf %105, %106 : vector<2x128xf32>
    %108 = vector.extract_strided_slice %107 {offsets = [0, 0], sizes = [2, 96], strides = [1, 1]} : vector<2x128xf32> to vector<2x96xf32>
    %109 = arith.negf %108 : vector<2x96xf32>
    %110 = math.exp %109 : vector<2x96xf32>
    %cst_32 = arith.constant 1.000000e+00 : f32
    %111 = vector.broadcast %cst_32 : f32 to vector<2x96xf32>
    %112 = arith.addf %111, %110 : vector<2x96xf32>
    %113 = arith.divf %111, %112 : vector<2x96xf32>
    %114 = vector.extract_strided_slice %113 {offsets = [0, 0], sizes = [2, 32], strides = [1, 1]} : vector<2x96xf32> to vector<2x32xf32>
    %115 = vector.extract_strided_slice %113 {offsets = [0, 32], sizes = [2, 32], strides = [1, 1]} : vector<2x96xf32> to vector<2x32xf32>
    %116 = vector.extract_strided_slice %113 {offsets = [0, 64], sizes = [2, 32], strides = [1, 1]} : vector<2x96xf32> to vector<2x32xf32>
    %117 = vector.extract_strided_slice %107 {offsets = [0, 96], sizes = [2, 32], strides = [1, 1]} : vector<2x128xf32> to vector<2x32xf32>
    %118 = math.tanh %117 : vector<2x32xf32>
    %119 = arith.mulf %115, %97 : vector<2x32xf32>
    %120 = arith.mulf %114, %118 : vector<2x32xf32>
    %121 = arith.addf %119, %120 : vector<2x32xf32>
    %122 = math.tanh %121 : vector<2x32xf32>
    %123 = arith.mulf %116, %122 : vector<2x32xf32>
    %124 = vector.extract_strided_slice %104 {offsets = [0, 0], sizes = [2, 96], strides = [1, 1]} : vector<2x128xf32> to vector<2x96xf32>
    %125 = arith.negf %124 : vector<2x96xf32>
    %126 = math.exp %125 : vector<2x96xf32>
    %cst_33 = arith.constant 1.000000e+00 : f32
    %127 = vector.broadcast %cst_33 : f32 to vector<2x96xf32>
    %128 = arith.addf %127, %126 : vector<2x96xf32>
    %129 = arith.divf %127, %128 : vector<2x96xf32>
    %130 = vector.extract_strided_slice %129 {offsets = [0, 0], sizes = [2, 32], strides = [1, 1]} : vector<2x96xf32> to vector<2x32xf32>
    %131 = vector.extract_strided_slice %129 {offsets = [0, 32], sizes = [2, 32], strides = [1, 1]} : vector<2x96xf32> to vector<2x32xf32>
    %132 = vector.extract_strided_slice %129 {offsets = [0, 64], sizes = [2, 32], strides = [1, 1]} : vector<2x96xf32> to vector<2x32xf32>
    %133 = vector.extract_strided_slice %104 {offsets = [0, 96], sizes = [2, 32], strides = [1, 1]} : vector<2x128xf32> to vector<2x32xf32>
    %134 = math.tanh %133 : vector<2x32xf32>
    %135 = arith.mulf %131, %82 : vector<2x32xf32>
    %136 = arith.mulf %130, %134 : vector<2x32xf32>
    %137 = arith.addf %135, %136 : vector<2x32xf32>
    %138 = math.tanh %137 : vector<2x32xf32>
    %139 = arith.mulf %132, %138 : vector<2x32xf32>
    %140 = tpu.concatenate %123, %139 in 1 : vector<2x32xf32>, vector<2x32xf32> -> vector<2x64xf32>
    %cst_34 = arith.constant dense<0.000000e+00> : vector<2x256xf32>
    %141 = tpu.matmul %140, %78, %cst_34 {dimension_numbers = #tpu.dot_dimension_numbers<[1], [0], [0], [1], [0, 0, 1, 1], [], []>} : vector<2x64xf32>, vector<64x256xf32>, vector<2x256xf32> -> vector<2x256xf32>
    %142 = vector.extract_strided_slice %141 {offsets = [0, 128], sizes = [2, 128], strides = [1, 1]} : vector<2x256xf32> to vector<2x128xf32>
    %143 = vector.broadcast %79 : vector<1x128xf32> to vector<2x128xf32>
    %144 = arith.addf %142, %143 : vector<2x128xf32>
    %145 = vector.extract_strided_slice %75 {offsets = [4, 0], sizes = [2, 128], strides = [1, 1]} : vector<16x128xf32> to vector<2x128xf32>
    %146 = vector.extract_strided_slice %141 {offsets = [0, 0], sizes = [2, 128], strides = [1, 1]} : vector<2x256xf32> to vector<2x128xf32>
    %147 = arith.addf %145, %146 : vector<2x128xf32>
    %148 = vector.extract_strided_slice %147 {offsets = [0, 0], sizes = [2, 96], strides = [1, 1]} : vector<2x128xf32> to vector<2x96xf32>
    %149 = arith.negf %148 : vector<2x96xf32>
    %150 = math.exp %149 : vector<2x96xf32>
    %cst_35 = arith.constant 1.000000e+00 : f32
    %151 = vector.broadcast %cst_35 : f32 to vector<2x96xf32>
    %152 = arith.addf %151, %150 : vector<2x96xf32>
    %153 = arith.divf %151, %152 : vector<2x96xf32>
    %154 = vector.extract_strided_slice %153 {offsets = [0, 0], sizes = [2, 32], strides = [1, 1]} : vector<2x96xf32> to vector<2x32xf32>
    %155 = vector.extract_strided_slice %153 {offsets = [0, 32], sizes = [2, 32], strides = [1, 1]} : vector<2x96xf32> to vector<2x32xf32>
    %156 = vector.extract_strided_slice %153 {offsets = [0, 64], sizes = [2, 32], strides = [1, 1]} : vector<2x96xf32> to vector<2x32xf32>
    %157 = vector.extract_strided_slice %147 {offsets = [0, 96], sizes = [2, 32], strides = [1, 1]} : vector<2x128xf32> to vector<2x32xf32>
    %158 = math.tanh %157 : vector<2x32xf32>
    %159 = arith.mulf %155, %121 : vector<2x32xf32>
    %160 = arith.mulf %154, %158 : vector<2x32xf32>
    %161 = arith.addf %159, %160 : vector<2x32xf32>
    %162 = math.tanh %161 : vector<2x32xf32>
    %163 = arith.mulf %156, %162 : vector<2x32xf32>
    %164 = vector.extract_strided_slice %144 {offsets = [0, 0], sizes = [2, 96], strides = [1, 1]} : vector<2x128xf32> to vector<2x96xf32>
    %165 = arith.negf %164 : vector<2x96xf32>
    %166 = math.exp %165 : vector<2x96xf32>
    %cst_36 = arith.constant 1.000000e+00 : f32
    %167 = vector.broadcast %cst_36 : f32 to vector<2x96xf32>
    %168 = arith.addf %167, %166 : vector<2x96xf32>
    %169 = arith.divf %167, %168 : vector<2x96xf32>
    %170 = vector.extract_strided_slice %169 {offsets = [0, 0], sizes = [2, 32], strides = [1, 1]} : vector<2x96xf32> to vector<2x32xf32>
    %171 = vector.extract_strided_slice %169 {offsets = [0, 32], sizes = [2, 32], strides = [1, 1]} : vector<2x96xf32> to vector<2x32xf32>
    %172 = vector.extract_strided_slice %169 {offsets = [0, 64], sizes = [2, 32], strides = [1, 1]} : vector<2x96xf32> to vector<2x32xf32>
    %173 = vector.extract_strided_slice %144 {offsets = [0, 96], sizes = [2, 32], strides = [1, 1]} : vector<2x128xf32> to vector<2x32xf32>
    %174 = math.tanh %173 : vector<2x32xf32>
    %175 = arith.mulf %171, %137 : vector<2x32xf32>
    %176 = arith.mulf %170, %174 : vector<2x32xf32>
    %177 = arith.addf %175, %176 : vector<2x32xf32>
    %178 = math.tanh %177 : vector<2x32xf32>
    %179 = arith.mulf %172, %178 : vector<2x32xf32>
    %180 = tpu.concatenate %163, %179 in 1 : vector<2x32xf32>, vector<2x32xf32> -> vector<2x64xf32>
    %cst_37 = arith.constant dense<0.000000e+00> : vector<2x256xf32>
    %181 = tpu.matmul %180, %78, %cst_37 {dimension_numbers = #tpu.dot_dimension_numbers<[1], [0], [0], [1], [0, 0, 1, 1], [], []>} : vector<2x64xf32>, vector<64x256xf32>, vector<2x256xf32> -> vector<2x256xf32>
    %182 = vector.extract_strided_slice %181 {offsets = [0, 128], sizes = [2, 128], strides = [1, 1]} : vector<2x256xf32> to vector<2x128xf32>
    %183 = vector.broadcast %79 : vector<1x128xf32> to vector<2x128xf32>
    %184 = arith.addf %182, %183 : vector<2x128xf32>
    %185 = vector.extract_strided_slice %75 {offsets = [6, 0], sizes = [2, 128], strides = [1, 1]} : vector<16x128xf32> to vector<2x128xf32>
    %186 = vector.extract_strided_slice %181 {offsets = [0, 0], sizes = [2, 128], strides = [1, 1]} : vector<2x256xf32> to vector<2x128xf32>
    %187 = arith.addf %185, %186 : vector<2x128xf32>
    %188 = vector.extract_strided_slice %187 {offsets = [0, 0], sizes = [2, 96], strides = [1, 1]} : vector<2x128xf32> to vector<2x96xf32>
    %189 = arith.negf %188 : vector<2x96xf32>
    %190 = math.exp %189 : vector<2x96xf32>
    %cst_38 = arith.constant 1.000000e+00 : f32
    %191 = vector.broadcast %cst_38 : f32 to vector<2x96xf32>
    %192 = arith.addf %191, %190 : vector<2x96xf32>
    %193 = arith.divf %191, %192 : vector<2x96xf32>
    %194 = vector.extract_strided_slice %193 {offsets = [0, 0], sizes = [2, 32], strides = [1, 1]} : vector<2x96xf32> to vector<2x32xf32>
    %195 = vector.extract_strided_slice %193 {offsets = [0, 32], sizes = [2, 32], strides = [1, 1]} : vector<2x96xf32> to vector<2x32xf32>
    %196 = vector.extract_strided_slice %193 {offsets = [0, 64], sizes = [2, 32], strides = [1, 1]} : vector<2x96xf32> to vector<2x32xf32>
    %197 = vector.extract_strided_slice %187 {offsets = [0, 96], sizes = [2, 32], strides = [1, 1]} : vector<2x128xf32> to vector<2x32xf32>
    %198 = math.tanh %197 : vector<2x32xf32>
    %199 = arith.mulf %195, %161 : vector<2x32xf32>
    %200 = arith.mulf %194, %198 : vector<2x32xf32>
    %201 = arith.addf %199, %200 : vector<2x32xf32>
    %202 = math.tanh %201 : vector<2x32xf32>
    %203 = arith.mulf %196, %202 : vector<2x32xf32>
    %204 = vector.extract_strided_slice %184 {offsets = [0, 0], sizes = [2, 96], strides = [1, 1]} : vector<2x128xf32> to vector<2x96xf32>
    %205 = arith.negf %204 : vector<2x96xf32>
    %206 = math.exp %205 : vector<2x96xf32>
    %cst_39 = arith.constant 1.000000e+00 : f32
    %207 = vector.broadcast %cst_39 : f32 to vector<2x96xf32>
    %208 = arith.addf %207, %206 : vector<2x96xf32>
    %209 = arith.divf %207, %208 : vector<2x96xf32>
    %210 = vector.extract_strided_slice %209 {offsets = [0, 0], sizes = [2, 32], strides = [1, 1]} : vector<2x96xf32> to vector<2x32xf32>
    %211 = vector.extract_strided_slice %209 {offsets = [0, 32], sizes = [2, 32], strides = [1, 1]} : vector<2x96xf32> to vector<2x32xf32>
    %212 = vector.extract_strided_slice %209 {offsets = [0, 64], sizes = [2, 32], strides = [1, 1]} : vector<2x96xf32> to vector<2x32xf32>
    %213 = vector.extract_strided_slice %184 {offsets = [0, 96], sizes = [2, 32], strides = [1, 1]} : vector<2x128xf32> to vector<2x32xf32>
    %214 = math.tanh %213 : vector<2x32xf32>
    %215 = arith.mulf %211, %177 : vector<2x32xf32>
    %216 = arith.mulf %210, %214 : vector<2x32xf32>
    %217 = arith.addf %215, %216 : vector<2x32xf32>
    %218 = math.tanh %217 : vector<2x32xf32>
    %219 = arith.mulf %212, %218 : vector<2x32xf32>
    %220 = tpu.concatenate %203, %219 in 1 : vector<2x32xf32>, vector<2x32xf32> -> vector<2x64xf32>
    %cst_40 = arith.constant dense<0.000000e+00> : vector<2x256xf32>
    %221 = tpu.matmul %220, %78, %cst_40 {dimension_numbers = #tpu.dot_dimension_numbers<[1], [0], [0], [1], [0, 0, 1, 1], [], []>} : vector<2x64xf32>, vector<64x256xf32>, vector<2x256xf32> -> vector<2x256xf32>
    %222 = vector.extract_strided_slice %221 {offsets = [0, 128], sizes = [2, 128], strides = [1, 1]} : vector<2x256xf32> to vector<2x128xf32>
    %223 = vector.broadcast %79 : vector<1x128xf32> to vector<2x128xf32>
    %224 = arith.addf %222, %223 : vector<2x128xf32>
    %225 = vector.extract_strided_slice %75 {offsets = [8, 0], sizes = [2, 128], strides = [1, 1]} : vector<16x128xf32> to vector<2x128xf32>
    %226 = vector.extract_strided_slice %221 {offsets = [0, 0], sizes = [2, 128], strides = [1, 1]} : vector<2x256xf32> to vector<2x128xf32>
    %227 = arith.addf %225, %226 : vector<2x128xf32>
    %228 = vector.extract_strided_slice %227 {offsets = [0, 0], sizes = [2, 96], strides = [1, 1]} : vector<2x128xf32> to vector<2x96xf32>
    %229 = arith.negf %228 : vector<2x96xf32>
    %230 = math.exp %229 : vector<2x96xf32>
    %cst_41 = arith.constant 1.000000e+00 : f32
    %231 = vector.broadcast %cst_41 : f32 to vector<2x96xf32>
    %232 = arith.addf %231, %230 : vector<2x96xf32>
    %233 = arith.divf %231, %232 : vector<2x96xf32>
    %234 = vector.extract_strided_slice %233 {offsets = [0, 0], sizes = [2, 32], strides = [1, 1]} : vector<2x96xf32> to vector<2x32xf32>
    %235 = vector.extract_strided_slice %233 {offsets = [0, 32], sizes = [2, 32], strides = [1, 1]} : vector<2x96xf32> to vector<2x32xf32>
    %236 = vector.extract_strided_slice %233 {offsets = [0, 64], sizes = [2, 32], strides = [1, 1]} : vector<2x96xf32> to vector<2x32xf32>
    %237 = vector.extract_strided_slice %227 {offsets = [0, 96], sizes = [2, 32], strides = [1, 1]} : vector<2x128xf32> to vector<2x32xf32>
    %238 = math.tanh %237 : vector<2x32xf32>
    %239 = arith.mulf %235, %201 : vector<2x32xf32>
    %240 = arith.mulf %234, %238 : vector<2x32xf32>
    %241 = arith.addf %239, %240 : vector<2x32xf32>
    %242 = math.tanh %241 : vector<2x32xf32>
    %243 = arith.mulf %236, %242 : vector<2x32xf32>
    %244 = vector.extract_strided_slice %224 {offsets = [0, 0], sizes = [2, 96], strides = [1, 1]} : vector<2x128xf32> to vector<2x96xf32>
    %245 = arith.negf %244 : vector<2x96xf32>
    %246 = math.exp %245 : vector<2x96xf32>
    %cst_42 = arith.constant 1.000000e+00 : f32
    %247 = vector.broadcast %cst_42 : f32 to vector<2x96xf32>
    %248 = arith.addf %247, %246 : vector<2x96xf32>
    %249 = arith.divf %247, %248 : vector<2x96xf32>
    %250 = vector.extract_strided_slice %249 {offsets = [0, 0], sizes = [2, 32], strides = [1, 1]} : vector<2x96xf32> to vector<2x32xf32>
    %251 = vector.extract_strided_slice %249 {offsets = [0, 32], sizes = [2, 32], strides = [1, 1]} : vector<2x96xf32> to vector<2x32xf32>
    %252 = vector.extract_strided_slice %249 {offsets = [0, 64], sizes = [2, 32], strides = [1, 1]} : vector<2x96xf32> to vector<2x32xf32>
    %253 = vector.extract_strided_slice %224 {offsets = [0, 96], sizes = [2, 32], strides = [1, 1]} : vector<2x128xf32> to vector<2x32xf32>
    %254 = math.tanh %253 : vector<2x32xf32>
    %255 = arith.mulf %251, %217 : vector<2x32xf32>
    %256 = arith.mulf %250, %254 : vector<2x32xf32>
    %257 = arith.addf %255, %256 : vector<2x32xf32>
    %258 = math.tanh %257 : vector<2x32xf32>
    %259 = arith.mulf %252, %258 : vector<2x32xf32>
    %260 = tpu.concatenate %243, %259 in 1 : vector<2x32xf32>, vector<2x32xf32> -> vector<2x64xf32>
    %cst_43 = arith.constant dense<0.000000e+00> : vector<2x256xf32>
    %261 = tpu.matmul %260, %78, %cst_43 {dimension_numbers = #tpu.dot_dimension_numbers<[1], [0], [0], [1], [0, 0, 1, 1], [], []>} : vector<2x64xf32>, vector<64x256xf32>, vector<2x256xf32> -> vector<2x256xf32>
    %262 = vector.extract_strided_slice %261 {offsets = [0, 128], sizes = [2, 128], strides = [1, 1]} : vector<2x256xf32> to vector<2x128xf32>
    %263 = vector.broadcast %79 : vector<1x128xf32> to vector<2x128xf32>
    %264 = arith.addf %262, %263 : vector<2x128xf32>
    %265 = vector.extract_strided_slice %75 {offsets = [10, 0], sizes = [2, 128], strides = [1, 1]} : vector<16x128xf32> to vector<2x128xf32>
    %266 = vector.extract_strided_slice %261 {offsets = [0, 0], sizes = [2, 128], strides = [1, 1]} : vector<2x256xf32> to vector<2x128xf32>
    %267 = arith.addf %265, %266 : vector<2x128xf32>
    %268 = vector.extract_strided_slice %267 {offsets = [0, 0], sizes = [2, 96], strides = [1, 1]} : vector<2x128xf32> to vector<2x96xf32>
    %269 = arith.negf %268 : vector<2x96xf32>
    %270 = math.exp %269 : vector<2x96xf32>
    %cst_44 = arith.constant 1.000000e+00 : f32
    %271 = vector.broadcast %cst_44 : f32 to vector<2x96xf32>
    %272 = arith.addf %271, %270 : vector<2x96xf32>
    %273 = arith.divf %271, %272 : vector<2x96xf32>
    %274 = vector.extract_strided_slice %273 {offsets = [0, 0], sizes = [2, 32], strides = [1, 1]} : vector<2x96xf32> to vector<2x32xf32>
    %275 = vector.extract_strided_slice %273 {offsets = [0, 32], sizes = [2, 32], strides = [1, 1]} : vector<2x96xf32> to vector<2x32xf32>
    %276 = vector.extract_strided_slice %273 {offsets = [0, 64], sizes = [2, 32], strides = [1, 1]} : vector<2x96xf32> to vector<2x32xf32>
    %277 = vector.extract_strided_slice %267 {offsets = [0, 96], sizes = [2, 32], strides = [1, 1]} : vector<2x128xf32> to vector<2x32xf32>
    %278 = math.tanh %277 : vector<2x32xf32>
    %279 = arith.mulf %275, %241 : vector<2x32xf32>
    %280 = arith.mulf %274, %278 : vector<2x32xf32>
    %281 = arith.addf %279, %280 : vector<2x32xf32>
    %282 = math.tanh %281 : vector<2x32xf32>
    %283 = arith.mulf %276, %282 : vector<2x32xf32>
    %284 = vector.extract_strided_slice %264 {offsets = [0, 0], sizes = [2, 96], strides = [1, 1]} : vector<2x128xf32> to vector<2x96xf32>
    %285 = arith.negf %284 : vector<2x96xf32>
    %286 = math.exp %285 : vector<2x96xf32>
    %cst_45 = arith.constant 1.000000e+00 : f32
    %287 = vector.broadcast %cst_45 : f32 to vector<2x96xf32>
    %288 = arith.addf %287, %286 : vector<2x96xf32>
    %289 = arith.divf %287, %288 : vector<2x96xf32>
    %290 = vector.extract_strided_slice %289 {offsets = [0, 0], sizes = [2, 32], strides = [1, 1]} : vector<2x96xf32> to vector<2x32xf32>
    %291 = vector.extract_strided_slice %289 {offsets = [0, 32], sizes = [2, 32], strides = [1, 1]} : vector<2x96xf32> to vector<2x32xf32>
    %292 = vector.extract_strided_slice %289 {offsets = [0, 64], sizes = [2, 32], strides = [1, 1]} : vector<2x96xf32> to vector<2x32xf32>
    %293 = vector.extract_strided_slice %264 {offsets = [0, 96], sizes = [2, 32], strides = [1, 1]} : vector<2x128xf32> to vector<2x32xf32>
    %294 = math.tanh %293 : vector<2x32xf32>
    %295 = arith.mulf %291, %257 : vector<2x32xf32>
    %296 = arith.mulf %290, %294 : vector<2x32xf32>
    %297 = arith.addf %295, %296 : vector<2x32xf32>
    %298 = math.tanh %297 : vector<2x32xf32>
    %299 = arith.mulf %292, %298 : vector<2x32xf32>
    %300 = tpu.concatenate %283, %299 in 1 : vector<2x32xf32>, vector<2x32xf32> -> vector<2x64xf32>
    %cst_46 = arith.constant dense<0.000000e+00> : vector<2x256xf32>
    %301 = tpu.matmul %300, %78, %cst_46 {dimension_numbers = #tpu.dot_dimension_numbers<[1], [0], [0], [1], [0, 0, 1, 1], [], []>} : vector<2x64xf32>, vector<64x256xf32>, vector<2x256xf32> -> vector<2x256xf32>
    %302 = vector.extract_strided_slice %301 {offsets = [0, 128], sizes = [2, 128], strides = [1, 1]} : vector<2x256xf32> to vector<2x128xf32>
    %303 = vector.broadcast %79 : vector<1x128xf32> to vector<2x128xf32>
    %304 = arith.addf %302, %303 : vector<2x128xf32>
    %305 = vector.extract_strided_slice %75 {offsets = [12, 0], sizes = [2, 128], strides = [1, 1]} : vector<16x128xf32> to vector<2x128xf32>
    %306 = vector.extract_strided_slice %301 {offsets = [0, 0], sizes = [2, 128], strides = [1, 1]} : vector<2x256xf32> to vector<2x128xf32>
    %307 = arith.addf %305, %306 : vector<2x128xf32>
    %308 = vector.extract_strided_slice %307 {offsets = [0, 0], sizes = [2, 96], strides = [1, 1]} : vector<2x128xf32> to vector<2x96xf32>
    %309 = arith.negf %308 : vector<2x96xf32>
    %310 = math.exp %309 : vector<2x96xf32>
    %cst_47 = arith.constant 1.000000e+00 : f32
    %311 = vector.broadcast %cst_47 : f32 to vector<2x96xf32>
    %312 = arith.addf %311, %310 : vector<2x96xf32>
    %313 = arith.divf %311, %312 : vector<2x96xf32>
    %314 = vector.extract_strided_slice %313 {offsets = [0, 0], sizes = [2, 32], strides = [1, 1]} : vector<2x96xf32> to vector<2x32xf32>
    %315 = vector.extract_strided_slice %313 {offsets = [0, 32], sizes = [2, 32], strides = [1, 1]} : vector<2x96xf32> to vector<2x32xf32>
    %316 = vector.extract_strided_slice %313 {offsets = [0, 64], sizes = [2, 32], strides = [1, 1]} : vector<2x96xf32> to vector<2x32xf32>
    %317 = vector.extract_strided_slice %307 {offsets = [0, 96], sizes = [2, 32], strides = [1, 1]} : vector<2x128xf32> to vector<2x32xf32>
    %318 = math.tanh %317 : vector<2x32xf32>
    %319 = arith.mulf %315, %281 : vector<2x32xf32>
    %320 = arith.mulf %314, %318 : vector<2x32xf32>
    %321 = arith.addf %319, %320 : vector<2x32xf32>
    %322 = math.tanh %321 : vector<2x32xf32>
    %323 = arith.mulf %316, %322 : vector<2x32xf32>
    %324 = vector.extract_strided_slice %304 {offsets = [0, 0], sizes = [2, 96], strides = [1, 1]} : vector<2x128xf32> to vector<2x96xf32>
    %325 = arith.negf %324 : vector<2x96xf32>
    %326 = math.exp %325 : vector<2x96xf32>
    %cst_48 = arith.constant 1.000000e+00 : f32
    %327 = vector.broadcast %cst_48 : f32 to vector<2x96xf32>
    %328 = arith.addf %327, %326 : vector<2x96xf32>
    %329 = arith.divf %327, %328 : vector<2x96xf32>
    %330 = vector.extract_strided_slice %329 {offsets = [0, 0], sizes = [2, 32], strides = [1, 1]} : vector<2x96xf32> to vector<2x32xf32>
    %331 = vector.extract_strided_slice %329 {offsets = [0, 32], sizes = [2, 32], strides = [1, 1]} : vector<2x96xf32> to vector<2x32xf32>
    %332 = vector.extract_strided_slice %329 {offsets = [0, 64], sizes = [2, 32], strides = [1, 1]} : vector<2x96xf32> to vector<2x32xf32>
    %333 = vector.extract_strided_slice %304 {offsets = [0, 96], sizes = [2, 32], strides = [1, 1]} : vector<2x128xf32> to vector<2x32xf32>
    %334 = math.tanh %333 : vector<2x32xf32>
    %335 = arith.mulf %331, %297 : vector<2x32xf32>
    %336 = arith.mulf %330, %334 : vector<2x32xf32>
    %337 = arith.addf %335, %336 : vector<2x32xf32>
    %338 = math.tanh %337 : vector<2x32xf32>
    %339 = arith.mulf %332, %338 : vector<2x32xf32>
    %340 = tpu.concatenate %323, %339 in 1 : vector<2x32xf32>, vector<2x32xf32> -> vector<2x64xf32>
    %cst_49 = arith.constant dense<0.000000e+00> : vector<2x256xf32>
    %341 = tpu.matmul %340, %78, %cst_49 {dimension_numbers = #tpu.dot_dimension_numbers<[1], [0], [0], [1], [0, 0, 1, 1], [], []>} : vector<2x64xf32>, vector<64x256xf32>, vector<2x256xf32> -> vector<2x256xf32>
    %342 = vector.extract_strided_slice %341 {offsets = [0, 128], sizes = [2, 128], strides = [1, 1]} : vector<2x256xf32> to vector<2x128xf32>
    %343 = vector.broadcast %79 : vector<1x128xf32> to vector<2x128xf32>
    %344 = arith.addf %342, %343 : vector<2x128xf32>
    %345 = vector.extract_strided_slice %75 {offsets = [14, 0], sizes = [2, 128], strides = [1, 1]} : vector<16x128xf32> to vector<2x128xf32>
    %346 = vector.extract_strided_slice %341 {offsets = [0, 0], sizes = [2, 128], strides = [1, 1]} : vector<2x256xf32> to vector<2x128xf32>
    %347 = arith.addf %345, %346 : vector<2x128xf32>
    %348 = vector.extract_strided_slice %347 {offsets = [0, 0], sizes = [2, 96], strides = [1, 1]} : vector<2x128xf32> to vector<2x96xf32>
    %349 = arith.negf %348 : vector<2x96xf32>
    %350 = math.exp %349 : vector<2x96xf32>
    %cst_50 = arith.constant 1.000000e+00 : f32
    %351 = vector.broadcast %cst_50 : f32 to vector<2x96xf32>
    %352 = arith.addf %351, %350 : vector<2x96xf32>
    %353 = arith.divf %351, %352 : vector<2x96xf32>
    %354 = vector.extract_strided_slice %353 {offsets = [0, 0], sizes = [2, 32], strides = [1, 1]} : vector<2x96xf32> to vector<2x32xf32>
    %355 = vector.extract_strided_slice %353 {offsets = [0, 32], sizes = [2, 32], strides = [1, 1]} : vector<2x96xf32> to vector<2x32xf32>
    %356 = vector.extract_strided_slice %353 {offsets = [0, 64], sizes = [2, 32], strides = [1, 1]} : vector<2x96xf32> to vector<2x32xf32>
    %357 = vector.extract_strided_slice %347 {offsets = [0, 96], sizes = [2, 32], strides = [1, 1]} : vector<2x128xf32> to vector<2x32xf32>
    %358 = math.tanh %357 : vector<2x32xf32>
    %359 = arith.mulf %355, %321 : vector<2x32xf32>
    %360 = arith.mulf %354, %358 : vector<2x32xf32>
    %361 = arith.addf %359, %360 : vector<2x32xf32>
    %362 = math.tanh %361 : vector<2x32xf32>
    %363 = arith.mulf %356, %362 : vector<2x32xf32>
    %364 = vector.extract_strided_slice %344 {offsets = [0, 0], sizes = [2, 96], strides = [1, 1]} : vector<2x128xf32> to vector<2x96xf32>
    %365 = arith.negf %364 : vector<2x96xf32>
    %366 = math.exp %365 : vector<2x96xf32>
    %cst_51 = arith.constant 1.000000e+00 : f32
    %367 = vector.broadcast %cst_51 : f32 to vector<2x96xf32>
    %368 = arith.addf %367, %366 : vector<2x96xf32>
    %369 = arith.divf %367, %368 : vector<2x96xf32>
    %370 = vector.extract_strided_slice %369 {offsets = [0, 0], sizes = [2, 32], strides = [1, 1]} : vector<2x96xf32> to vector<2x32xf32>
    %371 = vector.extract_strided_slice %369 {offsets = [0, 32], sizes = [2, 32], strides = [1, 1]} : vector<2x96xf32> to vector<2x32xf32>
    %372 = vector.extract_strided_slice %369 {offsets = [0, 64], sizes = [2, 32], strides = [1, 1]} : vector<2x96xf32> to vector<2x32xf32>
    %373 = vector.extract_strided_slice %344 {offsets = [0, 96], sizes = [2, 32], strides = [1, 1]} : vector<2x128xf32> to vector<2x32xf32>
    %374 = math.tanh %373 : vector<2x32xf32>
    %375 = arith.mulf %371, %337 : vector<2x32xf32>
    %376 = arith.mulf %370, %374 : vector<2x32xf32>
    %377 = arith.addf %375, %376 : vector<2x32xf32>
    %378 = math.tanh %377 : vector<2x32xf32>
    %379 = arith.mulf %372, %378 : vector<2x32xf32>
    %380 = tpu.concatenate %363, %379 in 1 : vector<2x32xf32>, vector<2x32xf32> -> vector<2x64xf32>
    %cst_52 = arith.constant dense<0.000000e+00> : vector<2x256xf32>
    %381 = tpu.matmul %380, %78, %cst_52 {dimension_numbers = #tpu.dot_dimension_numbers<[1], [0], [0], [1], [0, 0, 1, 1], [], []>} : vector<2x64xf32>, vector<64x256xf32>, vector<2x256xf32> -> vector<2x256xf32>
    %382 = vector.extract_strided_slice %381 {offsets = [0, 128], sizes = [2, 128], strides = [1, 1]} : vector<2x256xf32> to vector<2x128xf32>
    %383 = vector.broadcast %79 : vector<1x128xf32> to vector<2x128xf32>
    %384 = arith.addf %382, %383 : vector<2x128xf32>
    %385 = vector.extract_strided_slice %384 {offsets = [0, 0], sizes = [2, 96], strides = [1, 1]} : vector<2x128xf32> to vector<2x96xf32>
    %386 = arith.negf %385 : vector<2x96xf32>
    %387 = math.exp %386 : vector<2x96xf32>
    %cst_53 = arith.constant 1.000000e+00 : f32
    %388 = vector.broadcast %cst_53 : f32 to vector<2x96xf32>
    %389 = arith.addf %388, %387 : vector<2x96xf32>
    %390 = arith.divf %388, %389 : vector<2x96xf32>
    %391 = vector.extract_strided_slice %390 {offsets = [0, 0], sizes = [2, 32], strides = [1, 1]} : vector<2x96xf32> to vector<2x32xf32>
    %392 = vector.extract_strided_slice %390 {offsets = [0, 32], sizes = [2, 32], strides = [1, 1]} : vector<2x96xf32> to vector<2x32xf32>
    %393 = vector.extract_strided_slice %390 {offsets = [0, 64], sizes = [2, 32], strides = [1, 1]} : vector<2x96xf32> to vector<2x32xf32>
    %394 = vector.extract_strided_slice %384 {offsets = [0, 96], sizes = [2, 32], strides = [1, 1]} : vector<2x128xf32> to vector<2x32xf32>
    %395 = math.tanh %394 : vector<2x32xf32>
    %396 = arith.mulf %392, %377 : vector<2x32xf32>
    %397 = arith.mulf %391, %395 : vector<2x32xf32>
    %398 = arith.addf %396, %397 : vector<2x32xf32>
    %399 = math.tanh %398 : vector<2x32xf32>
    %400 = arith.mulf %393, %399 : vector<2x32xf32>
    %401 = tpu.concatenate %139, %179, %219, %259, %299, %339, %379, %400 in 0 : vector<2x32xf32>, vector<2x32xf32>, vector<2x32xf32>, vector<2x32xf32>, vector<2x32xf32>, vector<2x32xf32>, vector<2x32xf32>, vector<2x32xf32> -> vector<16x32xf32>
    %c715 = arith.constant 715 : index
    %c0_54 = arith.constant 0 : index
    %402 = vector.load %arg3[%c715, %c0_54] : memref<2037x128xf32, #tpu.memory_space<vmem>>, vector<32x64xf32>
    %cst_55 = arith.constant dense<0.000000e+00> : vector<16x64xf32>
    %403 = tpu.matmul %401, %402, %cst_55 {dimension_numbers = #tpu.dot_dimension_numbers<[1], [0], [0], [1], [0, 0, 1, 1], [], []>} : vector<16x32xf32>, vector<32x64xf32>, vector<16x64xf32> -> vector<16x64xf32>
    %c747 = arith.constant 747 : index
    %c0_56 = arith.constant 0 : index
    %404 = vector.load %arg3[%c747, %c0_56] : memref<2037x128xf32, #tpu.memory_space<vmem>>, vector<1x64xf32>
    %405 = vector.broadcast %404 : vector<1x64xf32> to vector<16x64xf32>
    %406 = arith.addf %403, %405 : vector<16x64xf32>
    %407 = tpu.concatenate %406, %70 in 1 : vector<16x64xf32>, vector<16x64xf32> -> vector<16x128xf32>
    %cst_57 = arith.constant 0.000000e+00 : f32
    %408 = vector.broadcast %cst_57 : f32 to vector<2x128xf32>
    %409 = vector.extract_strided_slice %407 {offsets = [0, 0], sizes = [14, 128], strides = [1, 1]} : vector<16x128xf32> to vector<14x128xf32>
    %410 = tpu.concatenate %408, %409 in 0 : vector<2x128xf32>, vector<14x128xf32> -> vector<16x128xf32>
    %411 = tpu.concatenate %407, %410 in 1 : vector<16x128xf32>, vector<16x128xf32> -> vector<16x256xf32>
    %c748 = arith.constant 748 : index
    %c0_58 = arith.constant 0 : index
    %412 = vector.load %arg3[%c748, %c0_58] : memref<2037x128xf32, #tpu.memory_space<vmem>>, vector<256x64xf32>
    %cst_59 = arith.constant dense<0.000000e+00> : vector<16x64xf32>
    %413 = tpu.matmul %411, %412, %cst_59 {dimension_numbers = #tpu.dot_dimension_numbers<[1], [0], [0], [1], [0, 0, 1, 1], [], []>} : vector<16x256xf32>, vector<256x64xf32>, vector<16x64xf32> -> vector<16x64xf32>
    %c1004 = arith.constant 1004 : index
    %c0_60 = arith.constant 0 : index
    %414 = vector.load %arg3[%c1004, %c0_60] : memref<2037x128xf32, #tpu.memory_space<vmem>>, vector<3x64xf32>
    %415 = vector.extract_strided_slice %414 {offsets = [0, 0], sizes = [1, 64], strides = [1, 1]} : vector<3x64xf32> to vector<1x64xf32>
    %416 = vector.broadcast %415 : vector<1x64xf32> to vector<16x64xf32>
    %417 = arith.mulf %413, %416 : vector<16x64xf32>
    %418 = vector.extract_strided_slice %414 {offsets = [1, 0], sizes = [1, 64], strides = [1, 1]} : vector<3x64xf32> to vector<1x64xf32>
    %419 = vector.broadcast %418 : vector<1x64xf32> to vector<16x64xf32>
    %420 = arith.addf %417, %419 : vector<16x64xf32>
    %cst_61 = arith.constant 0.000000e+00 : f32
    %421 = vector.broadcast %cst_61 : f32 to vector<16x64xf32>
    %422 = arith.cmpf oge, %420, %421 : vector<16x64xf32>
    %423 = vector.extract_strided_slice %414 {offsets = [2, 0], sizes = [1, 64], strides = [1, 1]} : vector<3x64xf32> to vector<1x64xf32>
    %424 = vector.broadcast %423 : vector<1x64xf32> to vector<16x64xf32>
    %425 = arith.mulf %424, %420 : vector<16x64xf32>
    %426 = arith.select %422, %420, %425 : vector<16x64xi1>, vector<16x64xf32>
    %427 = tpu.concatenate %426, %51 in 1 : vector<16x64xf32>, vector<16x64xf32> -> vector<16x128xf32>
    %cst_62 = arith.constant 0.000000e+00 : f32
    %428 = vector.broadcast %cst_62 : f32 to vector<2x128xf32>
    %429 = vector.extract_strided_slice %427 {offsets = [0, 0], sizes = [14, 128], strides = [1, 1]} : vector<16x128xf32> to vector<14x128xf32>
    %430 = tpu.concatenate %428, %429 in 0 : vector<2x128xf32>, vector<14x128xf32> -> vector<16x128xf32>
    %431 = tpu.concatenate %427, %430 in 1 : vector<16x128xf32>, vector<16x128xf32> -> vector<16x256xf32>
    %c1007 = arith.constant 1007 : index
    %c0_63 = arith.constant 0 : index
    %432 = vector.load %arg3[%c1007, %c0_63] : memref<2037x128xf32, #tpu.memory_space<vmem>>, vector<256x128xf32>
    %cst_64 = arith.constant dense<0.000000e+00> : vector<16x128xf32>
    %433 = tpu.matmul %431, %432, %cst_64 {dimension_numbers = #tpu.dot_dimension_numbers<[1], [0], [0], [1], [0, 0, 1, 1], [], []>} : vector<16x256xf32>, vector<256x128xf32>, vector<16x128xf32> -> vector<16x128xf32>
    %c1263 = arith.constant 1263 : index
    %c0_65 = arith.constant 0 : index
    %434 = vector.load %arg3[%c1263, %c0_65] : memref<2037x128xf32, #tpu.memory_space<vmem>>, vector<3x128xf32>
    %435 = vector.extract_strided_slice %434 {offsets = [0, 0], sizes = [1, 128], strides = [1, 1]} : vector<3x128xf32> to vector<1x128xf32>
    %436 = vector.broadcast %435 : vector<1x128xf32> to vector<16x128xf32>
    %437 = arith.mulf %433, %436 : vector<16x128xf32>
    %438 = vector.extract_strided_slice %434 {offsets = [1, 0], sizes = [1, 128], strides = [1, 1]} : vector<3x128xf32> to vector<1x128xf32>
    %439 = vector.broadcast %438 : vector<1x128xf32> to vector<16x128xf32>
    %440 = arith.addf %437, %439 : vector<16x128xf32>
    %cst_66 = arith.constant 0.000000e+00 : f32
    %441 = vector.broadcast %cst_66 : f32 to vector<16x128xf32>
    %442 = arith.cmpf oge, %440, %441 : vector<16x128xf32>
    %443 = vector.extract_strided_slice %434 {offsets = [2, 0], sizes = [1, 128], strides = [1, 1]} : vector<3x128xf32> to vector<1x128xf32>
    %444 = vector.broadcast %443 : vector<1x128xf32> to vector<16x128xf32>
    %445 = arith.mulf %444, %440 : vector<16x128xf32>
    %446 = arith.select %442, %440, %445 : vector<16x128xi1>, vector<16x128xf32>
    %447 = tpu.concatenate %446, %32 in 1 : vector<16x128xf32>, vector<16x128xf32> -> vector<16x256xf32>
    %cst_67 = arith.constant 0.000000e+00 : f32
    %448 = vector.broadcast %cst_67 : f32 to vector<2x256xf32>
    %449 = vector.extract_strided_slice %447 {offsets = [0, 0], sizes = [14, 256], strides = [1, 1]} : vector<16x256xf32> to vector<14x256xf32>
    %450 = tpu.concatenate %448, %449 in 0 : vector<2x256xf32>, vector<14x256xf32> -> vector<16x256xf32>
    %451 = tpu.concatenate %447, %450 in 1 : vector<16x256xf32>, vector<16x256xf32> -> vector<16x512xf32>
    %c1266 = arith.constant 1266 : index
    %c0_68 = arith.constant 0 : index
    %452 = vector.load %arg3[%c1266, %c0_68] : memref<2037x128xf32, #tpu.memory_space<vmem>>, vector<512x64xf32>
    %cst_69 = arith.constant dense<0.000000e+00> : vector<16x64xf32>
    %453 = tpu.matmul %451, %452, %cst_69 {dimension_numbers = #tpu.dot_dimension_numbers<[1], [0], [0], [1], [0, 0, 1, 1], [], []>} : vector<16x512xf32>, vector<512x64xf32>, vector<16x64xf32> -> vector<16x64xf32>
    %c1778 = arith.constant 1778 : index
    %c0_70 = arith.constant 0 : index
    %454 = vector.load %arg3[%c1778, %c0_70] : memref<2037x128xf32, #tpu.memory_space<vmem>>, vector<3x64xf32>
    %455 = vector.extract_strided_slice %454 {offsets = [0, 0], sizes = [1, 64], strides = [1, 1]} : vector<3x64xf32> to vector<1x64xf32>
    %456 = vector.broadcast %455 : vector<1x64xf32> to vector<16x64xf32>
    %457 = arith.mulf %453, %456 : vector<16x64xf32>
    %458 = vector.extract_strided_slice %454 {offsets = [1, 0], sizes = [1, 64], strides = [1, 1]} : vector<3x64xf32> to vector<1x64xf32>
    %459 = vector.broadcast %458 : vector<1x64xf32> to vector<16x64xf32>
    %460 = arith.addf %457, %459 : vector<16x64xf32>
    %cst_71 = arith.constant 0.000000e+00 : f32
    %461 = vector.broadcast %cst_71 : f32 to vector<16x64xf32>
    %462 = arith.cmpf oge, %460, %461 : vector<16x64xf32>
    %463 = vector.extract_strided_slice %454 {offsets = [2, 0], sizes = [1, 64], strides = [1, 1]} : vector<3x64xf32> to vector<1x64xf32>
    %464 = vector.broadcast %463 : vector<1x64xf32> to vector<16x64xf32>
    %465 = arith.mulf %464, %460 : vector<16x64xf32>
    %466 = arith.select %462, %460, %465 : vector<16x64xi1>, vector<16x64xf32>
    %c0_72 = arith.constant 0 : index
    %467 = memref.load %arg0[%c0_72] : memref<2xf32, #tpu.memory_space<smem>>
    %c1 = arith.constant 1 : index
    %468 = memref.load %arg0[%c1] : memref<2xf32, #tpu.memory_space<smem>>
    %469 = vector.extract_strided_slice %13 {offsets = [0, 32], sizes = [16, 32], strides = [1, 1]} : vector<16x64xf32> to vector<16x32xf32>
    %470 = vector.extract_strided_slice %466 {offsets = [0, 0], sizes = [16, 32], strides = [1, 1]} : vector<16x64xf32> to vector<16x32xf32>
    %471 = arith.subf %469, %470 : vector<16x32xf32>
    %472 = vector.broadcast %467 : f32 to vector<16x32xf32>
    %473 = arith.mulf %472, %471 : vector<16x32xf32>
    %474 = vector.extract_strided_slice %466 {offsets = [0, 32], sizes = [16, 32], strides = [1, 1]} : vector<16x64xf32> to vector<16x32xf32>
    %475 = vector.broadcast %468 : f32 to vector<16x32xf32>
    %476 = arith.mulf %475, %474 : vector<16x32xf32>
    %477 = arith.addf %473, %476 : vector<16x32xf32>
    %478 = vector.extract_strided_slice %477 {offsets = [0, 0], sizes = [2, 32], strides = [1, 1]} : vector<16x32xf32> to vector<2x32xf32>
    %479 = vector.extract_strided_slice %477 {offsets = [2, 0], sizes = [2, 32], strides = [1, 1]} : vector<16x32xf32> to vector<2x32xf32>
    %480 = vector.extract_strided_slice %477 {offsets = [4, 0], sizes = [2, 32], strides = [1, 1]} : vector<16x32xf32> to vector<2x32xf32>
    %481 = vector.extract_strided_slice %477 {offsets = [6, 0], sizes = [2, 32], strides = [1, 1]} : vector<16x32xf32> to vector<2x32xf32>
    %482 = vector.extract_strided_slice %477 {offsets = [8, 0], sizes = [2, 32], strides = [1, 1]} : vector<16x32xf32> to vector<2x32xf32>
    %483 = vector.extract_strided_slice %477 {offsets = [10, 0], sizes = [2, 32], strides = [1, 1]} : vector<16x32xf32> to vector<2x32xf32>
    %484 = vector.extract_strided_slice %477 {offsets = [12, 0], sizes = [2, 32], strides = [1, 1]} : vector<16x32xf32> to vector<2x32xf32>
    %485 = vector.extract_strided_slice %477 {offsets = [14, 0], sizes = [2, 32], strides = [1, 1]} : vector<16x32xf32> to vector<2x32xf32>
    %486 = tpu.concatenate %478, %479, %480, %481, %482, %483, %484, %485 in 1 : vector<2x32xf32>, vector<2x32xf32>, vector<2x32xf32>, vector<2x32xf32>, vector<2x32xf32>, vector<2x32xf32>, vector<2x32xf32>, vector<2x32xf32> -> vector<2x256xf32>
    %c1781 = arith.constant 1781 : index
    %c0_73 = arith.constant 0 : index
    %487 = vector.load %arg3[%c1781, %c0_73] : memref<2037x128xf32, #tpu.memory_space<vmem>>, vector<256x128xf32>
    %cst_74 = arith.constant dense<0.000000e+00> : vector<2x128xf32>
    %488 = tpu.matmul %486, %487, %cst_74 {dimension_numbers = #tpu.dot_dimension_numbers<[1], [0], [0], [1], [0, 0, 1, 1], [], []>} : vector<2x256xf32>, vector<256x128xf32>, vector<2x128xf32> -> vector<2x128xf32>
    %489 = tpu.concatenate %486, %488 in 1 : vector<2x256xf32>, vector<2x128xf32> -> vector<2x384xf32>
    %c0_75 = arith.constant 0 : index
    %c0_76 = arith.constant 0 : index
    %490 = vector.load %arg5[%c0_75, %c0_76] : memref<2x384xf32, #tpu.memory_space<vmem>>, vector<2x384xf32>
    tpu.vector_store %arg5[%c0_75, %c0_76], %489 {strides = array<i32>} : memref<2x384xf32, #tpu.memory_space<vmem>>, vector<2x384xf32>,
    return
  }
}

</mosaic_0001>

<bundles_post_ra>
// kernel: dctcrn_forward.1
= control target key start
LH: loop header
LB: loop body
LE: loop exit
PB: predicated region body
PF: predicated region fallthrough
CT: control target
= control target key end

     0   :  { %10 = vsyncpa [#allocation4], 0  ;;  %s4323_s0 = inlined_call_operand.vmem [shape: f32[2], index: 0, kind: input, shape index: {}]   ;;  %s4324_s1 = inlined_call_operand.vmem [shape: f32[2,56], index: 1, kind: input, shape index: {}]   ;;  %s4325_s2 = inlined_call_operand.vmem [shape: f32[2,56], index: 2, kind: input, shape index: {}]   ;;  %s4326_s3 = inlined_call_operand.hbm [shape: f32[2037,128], index: 3, kind: input, shape index: {}]   ;;  %s4327_s4 = inlined_call_operand.hbm [shape: f32[112,512], index: 4, kind: input, shape index: {}]   ;;  %s4328_s5 = inlined_call_operand.vmem [shape: f32[2,384], index: 5, kind: output, shape index: {}]  }
   0x1   :  { %11 = vsyncpa [#allocation3], 0  ;;  %s19_s20 = sshll.u32 %s4323_s0, 4  ;;  %s20_s20 = int_to_ptr.vmem [resolvable:$true] %s19_s20 }
   0x2   :  { %12 = vsyncpa [#allocation7], 0  ;;  %s3798_s21 = scalar_lea.vmem %s20_s20, 16  ;;  %p3803_p1 = scmp.lt.s32.totalorder %s20_s20, %s20_s20 }
   0x3   :  { %p3799_p0 = scmp.ne.s32.totalorder %s20_s20, %s3798_s21  ;;  %p3804_p2 = scmp.lt.s32.totalorder %s3798_s21, %s3798_s21 }
   0x5   :  { %p3805_p3 = por %p3804_p2, %p3803_p1 }
   0x7   :  { %p3806_p4 = pnand %p3805_p3, %p3799_p0 }
   0x9   :  { %3809 = shalt.err (!%p3806_p4)
}
   0xa   :  { %s3860_s22 = smov [#allocation2]   ;;  %s3861_s23 = smov [#allocation5]  }
   0xb   :  { %22 = dma.vmem_to_smem %s20_s20, 16, %s3860_s22, [#allocation4]  }
   0xc   :  { %s32_s24 = sshll.u32 %s3861_s23, 4  ;;  %s3810_s27 = scalar_lea.hbm %s4326_s3, 32640  ;;  %s33_s24 = int_to_ptr.vmem [resolvable:$true] %s32_s24 }
   0xd   :  { %p3811_p5 = scmp.ne.s32.totalorder %s4326_s3, %s3810_s27  ;;  %p3814_p6 = scmp.lt.u32.totalorder %s3810_s27, %s4326_s3 }
   0xf   :  { %p3816_p7 = pnand %p3814_p6, %p3811_p5 }
  0x11   :  { %3819 = shalt.err (!%p3816_p7)
}
  0x12   :  { %s3820_s6 = scalar_lea.vmem %s33_s24, 32640  ;;  %p3825_p9 = scmp.lt.s32.totalorder %s33_s24, %s33_s24 }
  0x13   :  { %p3821_p8 = scmp.ne.s32.totalorder %s33_s24, %s3820_s6  ;;  %p3826_p10 = scmp.lt.s32.totalorder %s3820_s6, %s3820_s6 }
  0x15   :  { %p3827_p11 = por %p3826_p10, %p3825_p9 }
  0x17   :  { %p3828_p12 = pnand %p3827_p11, %p3821_p8 }
  0x19   :  { %3831 = shalt.err (!%p3828_p12)
}
  0x1a   :  { %s3862_s7 = smov 128   ;;  %s3863_s8 = smov 8  }
  0x1b   :  { %38 = dma.hbm_to_vmem [thread:$0]  %s4326_s3, 32640, %s33_s24, [#allocation3], %s3862_s7, %s3862_s7, %s3863_s8  }
  0x1c   :  { %s3864_s11 = smov [#allocation6]   ;;  %s3832_s15 = scalar_lea.hbm %s4327_s4, 7168 }
  0x1d   :  { %s44_s12 = sshll.u32 %s3864_s11, 4  ;;  %p3833_p13 = scmp.ne.s32.totalorder %s4327_s4, %s3832_s15  ;;  %s45_s12 = int_to_ptr.vmem [resolvable:$true] %s44_s12 }
  0x1e   :  { %p3836_p0 = scmp.lt.u32.totalorder %s3832_s15, %s4327_s4 }
  0x20   :  { %p3838_p1 = pnand %p3836_p0, %p3833_p13 }
  0x22   :  { %3841 = shalt.err (!%p3838_p1)
}
  0x23   :  { %s3842_s20 = scalar_lea.vmem %s45_s12, 7168  ;;  %p3847_p3 = scmp.lt.s32.totalorder %s45_s12, %s45_s12 }
  0x24   :  { %p3843_p2 = scmp.ne.s32.totalorder %s45_s12, %s3842_s20  ;;  %p3848_p4 = scmp.lt.s32.totalorder %s3842_s20, %s3842_s20 }
  0x26   :  { %p3849_p5 = por %p3848_p4, %p3847_p3 }
  0x28   :  { %p3850_p6 = pnand %p3849_p5, %p3843_p2 }
  0x2a   :  { %3853 = shalt.err (!%p3850_p6)
}
  0x2b   :  { %s3865_s3 = smov 512   ;;  %s3866_s21 = smov 32  }
  0x2c   :  { %50 = dma.hbm_to_vmem [thread:$0]  %s4327_s4, 7168, %s45_s12, [#allocation7], %s3865_s3, %s3865_s3, %s3866_s21  }
  0x2d   :  { %3854 = dma.done.wait [#allocation4], 16  }
  0x2e   :  { %3855 = vsyncadd [#allocation4], 4294967280 }
  0x2f   :  { %3856 = dma.done.wait [#allocation3], 32640  }
  0x30   :  { %3857 = vsyncadd [#allocation3], 4294934656 }
  0x31   :  { %3858 = dma.done.wait [#allocation7], 7168  }
  0x32   :  { %3859 = vsyncadd [#allocation7], 4294960128 }
  0x33   :  { %60 = sfence }
  0x34   :  { %v62_v0 = vld [vmem:[%s4325_s2] sm:$0x3]  ;;  %s3867_s26 = smov 56   ;;  %v72_v4 = vld [vmem:[#allocation6 + $0x18] sm:$0xff]  ;;  %v69_v6 = vld [vmem:[#allocation6] sm:$0xff]  ;;  %v3868_v11 = vmov 0.0  }
  0x35   :  { %v70_v1 = vld [vmem:[#allocation6 + $0x8] sm:$0xff]  ;;  %64 = vrot.lane.b32.xlu0 %v62_v0, %s3867_s26  ;;  %v76_v5 = vld [vmem:[#allocation6 + $0x38] sm:$0xff]  ;;  %v73_v8 = vld [vmem:[#allocation6 + $0x20] sm:$0xff]  ;;  %193 = vmatprep.mubr.f32.mxu0 %v3868_v11  ;;  %vm67_vm0 = vcmask 457728   ;;  %vm125_vm1 = vcmask 916480   ;;  %s3869_s27 = smov 64  }
  0x36   :  { %v74_v2 = vld [vmem:[#allocation6 + $0x28] sm:$0xff]  ;;  %v3212_v7 = vpack.c.bf16 %v76_v5, %v72_v4  ;;  %v71_v9 = vld [vmem:[#allocation6 + $0x10] sm:$0xff]  ;;  %264 = vmatprep.mubr.f32.mxu1 %v3868_v11  ;;  %v3186_v12 = vpack.c.bf16 %v73_v8, %v69_v6  ;;  %v80_v16 = vld [vmem:[#allocation6 + $0x58] sm:$0xff]  ;;  %vm295_vm2 = vcmask 1041408   ;;  %vm297_vm3 = vcmask 1043456   ;;  %s4299_s28 = sld [smem:[#allocation2 + $0x1]] }
  0x37   :  { %v3184_v3 = vpack.c.bf16 %v74_v2, %v70_v1  ;;  %v75_v10 = vld [vmem:[#allocation6 + $0x30] sm:$0xff]  ;;  %v78_v14 = vld [vmem:[#allocation6 + $0x48] sm:$0xff]  ;;  %v84_v18 = vld [vmem:[#allocation6 + $0x78] sm:$0xff]  ;;  %vm299_vm4 = vcmask 1045504   ;;  %vm318_vm5 = vcmask 523264   ;;  %vm842_vm13 = vcmask 261120  }
  0x38   :  { %v3214_v13 = vpack.c.bf16 %v75_v10, %v71_v9  ;;  %v82_v15 = vld [vmem:[#allocation6 + $0x68] sm:$0xff]  ;;  %3213 = vmatprep.subr.bf16.mxu1 %v3212_v7  ;;  %v77_v19 = vld [vmem:[#allocation6 + $0x40] sm:$0xff]  ;;  %v3216_v21 = vpack.c.bf16 %v84_v18, %v80_v16  ;;  %v79_v23 = vld [vmem:[#allocation6 + $0x50] sm:$0xff]  ;;  %s4301_s0 = sld [smem:[#allocation2]] }
  0x39   :  { %3185 = vmatprep.subr.bf16.mxu0 %v3184_v3  ;;  %v3188_v17 = vpack.c.bf16 %v82_v15, %v78_v14  ;;  %v81_v20 = vld [vmem:[#allocation6 + $0x60] sm:$0xff]  ;;  %v83_v24 = vld [vmem:[#allocation6 + $0x70] sm:$0xff]  ;;  %v86_v25 = vld [vmem:[#allocation6 + $0x88] sm:$0xff] }
  0x3a   :  { %3187 = vmatpush1.bf16.msra.mxu0 %v3186_v12  ;;  %3215 = vmatpush1.bf16.msra.mxu1 %v3214_v13  ;;  %v3190_v22 = vpack.c.bf16 %v81_v20, %v77_v19  ;;  %v3218_v26 = vpack.c.bf16 %v83_v24, %v79_v23  ;;  %v90_v27 = vld [vmem:[#allocation6 + $0xa8] sm:$0xff]  ;;  %v88_v28 = vld [vmem:[#allocation6 + $0x98] sm:$0xff]  ;;  %v85_v32 = vld [vmem:[#allocation6 + $0x80] sm:$0xff] }
  0x3b   :  { %3189 = vmatprep.subr.bf16.mxu0 %v3188_v17  ;;  %v92_v29 = vld [vmem:[#allocation6 + $0xb8] sm:$0xff]  ;;  %3217 = vmatprep.subr.bf16.mxu1 %v3216_v21  ;;  %v3192_v30 = vpack.c.bf16 %v90_v27, %v86_v25  ;;  %v89_v33 = vld [vmem:[#allocation6 + $0xa0] sm:$0xff]  ;;  %v87_v34 = vld [vmem:[#allocation6 + $0x90] sm:$0xff] }
  0x3c   :  { %v3220_v31 = vpack.c.bf16 %v92_v29, %v88_v28  ;;  %v91_v35 = vld [vmem:[#allocation6 + $0xb0] sm:$0xff]  ;;  %v94_v36 = vld [vmem:[#allocation6 + $0xc8] sm:$0xff]  ;;  %v3194_v38 = vpack.c.bf16 %v89_v33, %v85_v32  ;;  %v96_v40 = vld [vmem:[#allocation6 + $0xd8] sm:$0xff] }
  0x3d   :  { %v98_v37 = vld [vmem:[#allocation6 + $0xe8] sm:$0xff]  ;;  %v3222_v39 = vpack.c.bf16 %v91_v35, %v87_v34  ;;  %v100_v41 = vld [vmem:[#allocation6 + $0xf8] sm:$0xff]  ;;  %v93_v42 = vld [vmem:[#allocation6 + $0xc0] sm:$0xff] }
  0x3e   :  { %3191 = vmatpush1.bf16.msra.mxu0 %v3190_v22  ;;  %3219 = vmatpush1.bf16.msra.mxu1 %v3218_v26  ;;  %v3196_v43 = vpack.c.bf16 %v98_v37, %v94_v36  ;;  %v3224_v44 = vpack.c.bf16 %v100_v41, %v96_v40  ;;  %v97_v45 = vld [vmem:[#allocation6 + $0xe0] sm:$0xff]  ;;  %v95_v46 = vld [vmem:[#allocation6 + $0xd0] sm:$0xff]  ;;  %v102_v48 = vld [vmem:[#allocation6 + $0x108] sm:$0xff] }
  0x3f   :  { %3193 = vmatprep.subr.bf16.mxu0 %v3192_v30  ;;  %3221 = vmatprep.subr.bf16.mxu1 %v3220_v31  ;;  %v99_v47 = vld [vmem:[#allocation6 + $0xf0] sm:$0xff]  ;;  %v106_v49 = vld [vmem:[#allocation6 + $0x128] sm:$0xff]  ;;  %v104_v50 = vld [vmem:[#allocation6 + $0x118] sm:$0xff]  ;;  %v3198_v52 = vpack.c.bf16 %v97_v45, %v93_v42 }
  0x40   :  { %v108_v51 = vld [vmem:[#allocation6 + $0x138] sm:$0xff]  ;;  %v3226_v53 = vpack.c.bf16 %v99_v47, %v95_v46  ;;  %v101_v54 = vld [vmem:[#allocation6 + $0x100] sm:$0xff]  ;;  %v3200_v56 = vpack.c.bf16 %v106_v49, %v102_v48  ;;  %v103_v58 = vld [vmem:[#allocation6 + $0x110] sm:$0xff] }
  0x41   :  { %v105_v55 = vld [vmem:[#allocation6 + $0x120] sm:$0xff]  ;;  %v3228_v57 = vpack.c.bf16 %v108_v51, %v104_v50  ;;  %v107_v59 = vld [vmem:[#allocation6 + $0x130] sm:$0xff]  ;;  %v110_v60 = vld [vmem:[#allocation6 + $0x148] sm:$0xff] }
  0x42   :  { %3195 = vmatpush1.bf16.msra.mxu0 %v3194_v38  ;;  %3223 = vmatpush1.bf16.msra.mxu1 %v3222_v39  ;;  %v114_v61 = vld [vmem:[#allocation6 + $0x168] sm:$0xff]  ;;  %v112_v62 = vld [vmem:[#allocation6 + $0x158] sm:$0xff]  ;;  %v3202_v0 = vpack.c.bf16 %v105_v55, %v101_v54  ;;  %v3230_v1 = vpack.c.bf16 %v107_v59, %v103_v58  ;;  %v109_v2 = vld [vmem:[#allocation6 + $0x140] sm:$0xff] }
  0x43   :  { %3197 = vmatprep.subr.bf16.mxu0 %v3196_v43  ;;  %3225 = vmatprep.subr.bf16.mxu1 %v3224_v44  ;;  %v116_v63 = vld [vmem:[#allocation6 + $0x178] sm:$0xff]  ;;  %v113_v3 = vld [vmem:[#allocation6 + $0x160] sm:$0xff]  ;;  %v3204_v4 = vpack.c.bf16 %v114_v61, %v110_v60  ;;  %v111_v6 = vld [vmem:[#allocation6 + $0x150] sm:$0xff] }
  0x44   :  { %v3232_v5 = vpack.c.bf16 %v116_v63, %v112_v62  ;;  %v115_v7 = vld [vmem:[#allocation6 + $0x170] sm:$0xff]  ;;  %v118_v8 = vld [vmem:[#allocation6 + $0x188] sm:$0xff]  ;;  %v120_v10 = vld [vmem:[#allocation6 + $0x198] sm:$0xff]  ;;  %v3206_v13 = vpack.c.bf16 %v113_v3, %v109_v2 }
  0x45   :  { %v122_v9 = vld [vmem:[#allocation6 + $0x1a8] sm:$0xff]  ;;  %v124_v12 = vld [vmem:[#allocation6 + $0x1b8] sm:$0xff]  ;;  %v3234_v14 = vpack.c.bf16 %v115_v7, %v111_v6  ;;  %v117_v15 = vld [vmem:[#allocation6 + $0x180] sm:$0xff] }
  0x46   :  { %3199 = vmatpush1.bf16.msra.mxu0 %v3198_v52  ;;  %3227 = vmatpush1.bf16.msra.mxu1 %v3226_v53  ;;  %v3208_v16 = vpack.c.bf16 %v122_v9, %v118_v8  ;;  %v3236_v17 = vpack.c.bf16 %v124_v12, %v120_v10  ;;  %v121_v18 = vld [vmem:[#allocation6 + $0x1a0] sm:$0xff]  ;;  %v119_v19 = vld [vmem:[#allocation6 + $0x190] sm:$0xff]  ;;  %v61_v23 = vld [vmem:[%s4324_s1] sm:$0x3]  ;;  %s3870_s1 = smov 96  }
  0x47   :  { %3201 = vmatprep.subr.bf16.mxu0 %v3200_v56  ;;  %3229 = vmatprep.subr.bf16.mxu1 %v3228_v57  ;;  %v123_v20 = vld [vmem:[#allocation6 + $0x1b0] sm:$0xff]  ;;  %v3210_v21 = vpack.c.bf16 %v121_v18, %v117_v15  ;;  %v321_v28 = vld [vmem:[#allocation5] sm:$0xff]  ;;  %v323_v30 = vld [vmem:[#allocation5 + $0x10] sm:$0xff] }
  0x48   :  { %v3238_v22 = vpack.c.bf16 %v123_v20, %v119_v19  ;;  %v322_v29 = vld [vmem:[#allocation5 + $0x8] sm:$0xff]  ;;  %v324_v36 = vld [vmem:[#allocation5 + $0x18] sm:$0xff]  ;;  %v325_v38 = vld [vmem:[#allocation5 + $0x20] sm:$0xff] }
  0x49   :  { %v3240_v35 = vpack.c.bf16 %v322_v29, %v321_v28  ;;  %v3244_v37 = vpack.c.bf16 %v324_v36, %v323_v30  ;;  %v326_v39 = vld [vmem:[#allocation5 + $0x28] sm:$0xff]  ;;  %v327_v43 = vld [vmem:[#allocation5 + $0x30] sm:$0xff]  ;;  %v328_v44 = vld [vmem:[#allocation5 + $0x38] sm:$0xff] }
  0x4a   :  { %3203 = vmatpush1.bf16.msra.mxu0 %v3202_v0  ;;  %3231 = vmatpush1.bf16.msra.mxu1 %v3230_v1  ;;  %v3248_v42 = vpack.c.bf16 %v326_v39, %v325_v38  ;;  %v3252_v45 = vpack.c.bf16 %v328_v44, %v327_v43  ;;  %v329_v46 = vld [vmem:[#allocation5 + $0x40] sm:$0xff]  ;;  %v330_v47 = vld [vmem:[#allocation5 + $0x48] sm:$0xff]  ;;  %v331_v49 = vld [vmem:[#allocation5 + $0x50] sm:$0xff] }
  0x4b   :  { %3205 = vmatprep.subr.bf16.mxu0 %v3204_v4  ;;  %3233 = vmatprep.subr.bf16.mxu1 %v3232_v5  ;;  %v3256_v48 = vpack.c.bf16 %v330_v47, %v329_v46  ;;  %v332_v50 = vld [vmem:[#allocation5 + $0x58] sm:$0xff]  ;;  %v333_v52 = vld [vmem:[#allocation5 + $0x60] sm:$0xff]  ;;  %v334_v53 = vld [vmem:[#allocation5 + $0x68] sm:$0xff] }
  0x4c   :  { %v3260_v51 = vpack.c.bf16 %v332_v50, %v331_v49  ;;  %v3264_v54 = vpack.c.bf16 %v334_v53, %v333_v52  ;;  %v335_v55 = vld [vmem:[#allocation5 + $0x70] sm:$0xff]  ;;  %v336_v56 = vld [vmem:[#allocation5 + $0x78] sm:$0xff]  ;;  %v459_v2 = vld [vmem:[#allocation5 + $0x103] sm:$0xff] }
  0x4d   :  { %v3268_v57 = vpack.c.bf16 %v336_v56, %v335_v55  ;;  %v460_v3 = vld [vmem:[#allocation5 + $0x10b] sm:$0xff]  ;;  %v443_v4 = vld [vmem:[#allocation5 + $0x83] sm:$0xff]  ;;  %v461_v7 = vld [vmem:[#allocation5 + $0x113] sm:$0xff] }
  0x4e   :  { %3207 = vmatpush1.bf16.msra.mxu0 %v3206_v13  ;;  %3235 = vmatpush1.bf16.msra.mxu1 %v3234_v14  ;;  %v3272_v5 = vpack.c.bf16 %v460_v3, %v459_v2  ;;  %v444_v6 = vld [vmem:[#allocation5 + $0x8b] sm:$0xff]  ;;  %v462_v8 = vld [vmem:[#allocation5 + $0x11b] sm:$0xff]  ;;  %v445_v14 = vld [vmem:[#allocation5 + $0x93] sm:$0xff] }
  0x4f   :  { %3209 = vmatprep.subr.bf16.mxu0 %v3208_v16  ;;  %3237 = vmatprep.subr.bf16.mxu1 %v3236_v17  ;;  %v3274_v12 = vpack.c.bf16 %v444_v6, %v443_v4  ;;  %v3276_v13 = vpack.c.bf16 %v462_v8, %v461_v7  ;;  %v446_v15 = vld [vmem:[#allocation5 + $0x9b] sm:$0xff]  ;;  %v463_v16 = vld [vmem:[#allocation5 + $0x123] sm:$0xff]  ;;  %v464_v19 = vld [vmem:[#allocation5 + $0x12b] sm:$0xff] }
  0x50   :  { %v465_v28 = vld [vmem:[#allocation5 + $0x133] sm:$0xff]  ;;  %v466_v29 = vld [vmem:[#allocation5 + $0x13b] sm:$0xff]  ;;  %v468_v36 = vld [vmem:[#allocation5 + $0x14b] sm:$0xff] }
  0x51   :  { %v451_v39 = vld [vmem:[#allocation5 + $0xc3] sm:$0xff]  ;;  %v469_v47 = vld [vmem:[#allocation5 + $0x153] sm:$0xff]  ;;  %v412_v4 = vld [vmem:[#allocation5 + $0x80] sm:$0x7] }
  0x52   :  { %3211 = vmatpush1.bf16.msra.mxu0 %v3210_v21  ;;  %3239 = vmatpush1.bf16.msra.mxu1 %v3238_v22  ;;  %v3278_v22 = vpack.c.bf16 %v446_v15, %v445_v14  ;;  %v453_v50 = vld [vmem:[#allocation5 + $0xd3] sm:$0xff]  ;;  %v471_v53 = vld [vmem:[#allocation5 + $0x163] sm:$0xff]  ;;  %vm3980_vm8 = vmneg %vm295_vm2 }
  0x53   :  { %3241 = vmatprep.subr.bf16.mxu0 %v3240_v35  ;;  %3273 = vmatprep.subr.bf16.mxu1 %v3272_v5  ;;  %v455_v56 = vld [vmem:[#allocation5 + $0xe3] sm:$0xff] }
  0xa7   :  { %v65_v24 = vpop.permute.xlu0 %64 }
  0xa8   :  { %v68_v25 = vsel %vm67_vm0, %v61_v23, %v65_v24  ;;  %v3280_v23 = vpack.c.bf16 %v464_v19, %v463_v16  ;;  %v447_v24 = vld [vmem:[#allocation5 + $0xa3] sm:$0xff] }
  0xa9   :  { %2763 = vmatmul.mubr.msk.f32.vlgmr.msra.gmra.mrb[0].mxu0 %vm125_vm1, %v68_v25  ;;  %2764 = vmatmul.mubr.msk.f32.vlgmr.msra.gmra.mrb[0].mxu1 %vm125_vm1, %v68_v25  ;;  %v448_v25 = vld [vmem:[#allocation5 + $0xab] sm:$0xff] }
  0xaa   :  { %3243 = vmatpush3.bf16.msra.mxu0 %v3240_v35  ;;  %3275 = vmatpush3.bf16.msra.mxu1 %v3274_v12  ;;  %v467_v35 = vld [vmem:[#allocation5 + $0x143] sm:$0xff] }
  0xab   :  { %3245 = vmatprep.subr.bf16.mxu0 %v3244_v37  ;;  %3277 = vmatprep.subr.bf16.mxu1 %v3276_v13  ;;  %v3288_v38 = vpack.c.bf16 %v468_v36, %v467_v35  ;;  %v595_v36 = vld [vmem:[#allocation5 + $0x1b6] sm:$0xff] }
  0xae   :  { %3247 = vmatpush3.bf16.msra.mxu0 %v3244_v37  ;;  %3279 = vmatpush3.bf16.msra.mxu1 %v3278_v22 }
  0xaf   :  { %3249 = vmatprep.subr.bf16.mxu0 %v3248_v42  ;;  %3281 = vmatprep.subr.bf16.mxu1 %v3280_v23 }
  0xb2   :  { %3251 = vmatpush3.bf16.msra.mxu0 %v3248_v42 }
  0xb3   :  { %3253 = vmatprep.subr.bf16.mxu0 %v3252_v45 }
  0xb6   :  { %3255 = vmatpush3.bf16.msra.mxu0 %v3252_v45 }
  0xb7   :  { %3257 = vmatprep.subr.bf16.mxu0 %v3256_v48 }
  0xba   :  { %3259 = vmatpush3.bf16.msra.mxu0 %v3256_v48  ;;  %v470_v48 = vld [vmem:[#allocation5 + $0x15b] sm:$0xff] }
  0xbb   :  { %3261 = vmatprep.subr.bf16.mxu0 %v3260_v51  ;;  %v3292_v49 = vpack.c.bf16 %v470_v48, %v469_v47  ;;  %v550_v48 = vld [vmem:[#allocation5 + $0x183] sm:$0x7] }
  0xbe   :  { %3263 = vmatpush3.bf16.msra.mxu0 %v3260_v51  ;;  %v454_v51 = vld [vmem:[#allocation5 + $0xdb] sm:$0xff] }
  0xbf   :  { %3265 = vmatprep.subr.bf16.mxu0 %v3264_v54  ;;  %v3294_v52 = vpack.c.bf16 %v454_v51, %v453_v50 }
  0xc2   :  { %3267 = vmatpush3.bf16.msra.mxu0 %v3264_v54  ;;  %v472_v54 = vld [vmem:[#allocation5 + $0x16b] sm:$0xff] }
  0xc3   :  { %3269 = vmatprep.subr.bf16.mxu0 %v3268_v57  ;;  %v3296_v55 = vpack.c.bf16 %v472_v54, %v471_v53 }
  0xc6   :  { %3271 = vmatpush3.bf16.msra.mxu0 %v3268_v57  ;;  %v456_v57 = vld [vmem:[#allocation5 + $0xeb] sm:$0xff] }
 0x17c   :  { %v195_v26 = vpop.f32.mrb[0].mxu0  ;;  %v266_v27 = vpop.f32.mrb[0].mxu1 }
 0x17d   :  { %v272_v31 = vrot.slane %v195_v26, 6  ;;  %v197_v32 = vpop.f32.mrb[1].mxu0  ;;  %v268_v33 = vpop.f32.mrb[1].mxu1  ;;  %v284_v34 = vrot.slane %v266_v27, 6 }
 0x17e   :  { %v279_v40 = vrot.slane %v197_v32, 2  ;;  %v291_v41 = vrot.slane %v268_v33, 2  ;;  %v277_v58 = vrot.slane %v197_v32, 4  ;;  %v289_v59 = vrot.slane %v268_v33, 4  ;;  %v449_v33 = vld [vmem:[#allocation5 + $0xb3] sm:$0xff] }
 0x17f   :  { %285 = vrot.lane.b32.xlu1 %v284_v34, %s3869_s27  ;;  %273 = vrot.lane.b32.xlu0 %v272_v31, %s3869_s27  ;;  %v3282_v31 = vpack.c.bf16 %v448_v25, %v447_v24  ;;  %v3284_v32 = vpack.c.bf16 %v466_v29, %v465_v28  ;;  %v450_v34 = vld [vmem:[#allocation5 + $0xbb] sm:$0xff]  ;;  %v590_v28 = vld [vmem:[#allocation5 + $0x18e] sm:$0xff] }
 0x180   :  { %v3286_v37 = vpack.c.bf16 %v450_v34, %v449_v33  ;;  %v591_v29 = vld [vmem:[#allocation5 + $0x196] sm:$0xff]  ;;  %v593_v33 = vld [vmem:[#allocation5 + $0x1a6] sm:$0xff]  ;;  %v594_v34 = vld [vmem:[#allocation5 + $0x1ae] sm:$0xff] }
 0x181   :  { %3283 = vmatpush3.bf16.msra.mxu1 %v3282_v31  ;;  %v592_v31 = vld [vmem:[#allocation5 + $0x19e] sm:$0xff]  ;;  %v3312_v35 = vpack.c.bf16 %v594_v34, %v593_v33  ;;  %v707_v33 = vld [vmem:[#allocation5 + $0x229] sm:$0xff]  ;;  %v708_v34 = vld [vmem:[#allocation5 + $0x231] sm:$0xff] }
 0x182   :  { %3285 = vmatprep.subr.bf16.mxu1 %v3284_v32  ;;  %v3308_v32 = vpack.c.bf16 %v592_v31, %v591_v29 }
 0x183   :  { %292 = vrot.lane.b32.xlu0 %v291_v41, %s3869_s27  ;;  %280 = vrot.lane.b32.xlu1 %v279_v40, %s3869_s27  ;;  %v452_v40 = vld [vmem:[#allocation5 + $0xcb] sm:$0xff] }
 0x184   :  { %v3290_v41 = vpack.c.bf16 %v452_v40, %v451_v39  ;;  %v597_v39 = vld [vmem:[#allocation5 + $0x1c6] sm:$0xff]  ;;  %v598_v40 = vld [vmem:[#allocation5 + $0x1ce] sm:$0xff] }
 0x185   :  { %3287 = vmatpush3.bf16.msra.mxu1 %v3286_v37  ;;  %v596_v37 = vld [vmem:[#allocation5 + $0x1be] sm:$0xff] }
 0x186   :  { %3289 = vmatprep.subr.bf16.mxu1 %v3288_v38  ;;  %v3316_v38 = vpack.c.bf16 %v596_v37, %v595_v36  ;;  %v709_v36 = vld [vmem:[#allocation5 + $0x239] sm:$0xff]  ;;  %v710_v37 = vld [vmem:[#allocation5 + $0x241] sm:$0xff] }
 0x189   :  { %3291 = vmatpush3.bf16.msra.mxu1 %v3290_v41  ;;  %v3320_v41 = vpack.c.bf16 %v598_v40, %v597_v39  ;;  %v680_v39 = vld [vmem:[#allocation5 + $0x206] sm:$0x7] }
 0x18a   :  { %3293 = vmatprep.subr.bf16.mxu1 %v3292_v49 }
 0x18d   :  { %3295 = vmatpush3.bf16.msra.mxu1 %v3294_v52 }
 0x18e   :  { %3297 = vmatprep.subr.bf16.mxu1 %v3296_v55 }
 0x1f1   :  { %v286_v60 = vpop.permute.xlu1 %285  ;;  %v274_v61 = vpop.permute.xlu0 %273 }
 0x1f2   :  { %v301_v62 = vsel %vm295_vm2, %v266_v27, %v286_v60  ;;  %v296_v63 = vsel %vm295_vm2, %v195_v26, %v274_v61  ;;  %v474_v60 = vld [vmem:[#allocation5 + $0x17b] sm:$0xff] }
 0x1f3   :  { %v302_v0 = vsel %vm297_vm3, %v301_v62, %v289_v59  ;;  %v298_v1 = vsel %vm297_vm3, %v296_v63, %v277_v58  ;;  %v3298_v58 = vpack.c.bf16 %v456_v57, %v455_v56  ;;  %v473_v59 = vld [vmem:[#allocation5 + $0x173] sm:$0xff]  ;;  %v458_v63 = vld [vmem:[#allocation5 + $0xfb] sm:$0xff] }
 0x1f4   :  { %v3300_v61 = vpack.c.bf16 %v474_v60, %v473_v59  ;;  %v457_v62 = vld [vmem:[#allocation5 + $0xf3] sm:$0xff] }
 0x1f5   :  { %v293_v9 = vpop.permute.xlu0 %292  ;;  %v281_v10 = vpop.permute.xlu1 %280  ;;  %3299 = vmatpush3.bf16.msra.mxu1 %v3298_v58  ;;  %v603_v57 = vld [vmem:[#allocation5 + $0x1f6] sm:$0xff]  ;;  %v604_v58 = vld [vmem:[#allocation5 + $0x1fe] sm:$0xff] }
 0x1f6   :  { %v3947_v17 = vsel %vm299_vm4, %v302_v0, %v293_v9  ;;  %v3950_v18 = vsel %vm299_vm4, %v298_v1, %v281_v10  ;;  %v3302_v0 = vpack.c.bf16 %v458_v63, %v457_v62  ;;  %3301 = vmatprep.subr.bf16.mxu1 %v3300_v61  ;;  %v413_v1 = vlaneseq }
 0x1f7   :  { %v307_v20 = vrot.slane %v3947_v17, 6  ;;  %v306_v21 = vrot.slane %v3950_v18, 6  ;;  %v3332_v60 = vpack.c.bf16 %v604_v58, %v603_v57 }
 0x1f8   :  { %v3961_v2 = vshrl.u32 %v413_v1, 7 }
 0x1f9   :  { %v308_v26 = vsel %vm295_vm2, %v306_v21, %v307_v20  ;;  %v310_v27 = vsel %vm295_vm2, 0.0, %v306_v21  ;;  %3303 = vmatpush3.bf16.msra.mxu1 %v3302_v0 }
 0x1fa   :  { %v3660_v30 = vpack.i.bf16 %v308_v26, %v310_v27  ;;  %v3964_v3 = vsub.s32 0, %v3961_v2  ;;  %v3967_v5 = vsub.s32 1, %v3961_v2  ;;  %v3971_v7 = vsub.s32 2, %v3961_v2  ;;  %v589_v27 = vld [vmem:[#allocation5 + $0x186] sm:$0xff] }
 0x1fc   :  { %3661 = vrot.lane.b32.xlu1 %v3660_v30, %s3869_s27  ;;  %v416_v6 = vrot.slane %v412_v4, %v3964_v3  ;;  %v422_v8 = vrot.slane %v412_v4, %v3967_v5  ;;  %v430_v12 = vrot.slane %v412_v4, %v3971_v7  ;;  %v3304_v30 = vpack.c.bf16 %v590_v28, %v589_v27 }
 0x1fd   :  { %v554_v50 = vrot.slane %v550_v48, %v3964_v3  ;;  %v560_v53 = vrot.slane %v550_v48, %v3967_v5  ;;  %v568_v55 = vrot.slane %v550_v48, %v3971_v7  ;;  %v684_v40 = vrot.slane %v680_v39, %v3964_v3 }
 0x1fe   :  { %3305 = vmatprep.subr.bf16.mxu0 %v3304_v30 }
 0x26e   :  { %v3662_v42 = vpop.permute.xlu1 %3661 }
 0x26f   :  { %v3664_v43 = vunpack.i.h.bf16 %v3662_v42  ;;  %v3663_v44 = vunpack.i.l.bf16 %v3662_v42  ;;  %v599_v42 = vld [vmem:[#allocation5 + $0x1d6] sm:$0xff] }
 0x271   :  { %v319_v45 = vsel %vm318_vm5, %v3950_v18, %v3663_v44  ;;  %v320_v46 = vsel %vm318_vm5, %v3947_v17, %v3664_v43  ;;  %v600_v43 = vld [vmem:[#allocation5 + $0x1de] sm:$0xff] }
 0x272   :  { %3116 = vmatprep.mubr.f32.mxu0 %v319_v45  ;;  %v3324_v44 = vpack.c.bf16 %v600_v43, %v599_v42  ;;  %v601_v45 = vld [vmem:[#allocation5 + $0x1e6] sm:$0xff] }
 0x273   :  { %3117 = vmatmul.mubr.f32.vlgmr.msra.gmra.mrb[2].mxu0 %v320_v46  ;;  %v602_v46 = vld [vmem:[#allocation5 + $0x1ee] sm:$0xff] }
 0x274   :  { %3307 = vmatpush3.bf16.msra.mxu0 %v3304_v30  ;;  %v3328_v47 = vpack.c.bf16 %v602_v46, %v601_v45 }
 0x275   :  { %3309 = vmatprep.subr.bf16.mxu0 %v3308_v32 }
 0x278   :  { %3311 = vmatpush3.bf16.msra.mxu0 %v3308_v32 }
 0x279   :  { %3313 = vmatprep.subr.bf16.mxu0 %v3312_v35 }
 0x27c   :  { %3315 = vmatpush3.bf16.msra.mxu0 %v3312_v35  ;;  %v3344_v35 = vpack.c.bf16 %v708_v34, %v707_v33  ;;  %v801_v33 = vld [vmem:[#allocation5 + $0x26a] sm:$0xff]  ;;  %v802_v34 = vld [vmem:[#allocation5 + $0x272] sm:$0xff] }
 0x27d   :  { %3317 = vmatprep.subr.bf16.mxu0 %v3316_v38 }
 0x280   :  { %3319 = vmatpush3.bf16.msra.mxu0 %v3316_v38  ;;  %v3348_v38 = vpack.c.bf16 %v710_v37, %v709_v36  ;;  %v812_v36 = vld [vmem:[#allocation5 + $0x2c2] sm:$0xff]  ;;  %v4055_v37 = vpack.c.bf16 %v802_v34, %v801_v33 }
 0x281   :  { %3321 = vmatprep.subr.bf16.mxu0 %v3320_v41 }
 0x284   :  { %3323 = vmatpush3.bf16.msra.mxu0 %v3320_v41  ;;  %v690_v41 = vrot.slane %v680_v39, %v3967_v5 }
 0x285   :  { %3325 = vmatprep.subr.bf16.mxu0 %v3324_v44 }
 0x288   :  { %3327 = vmatpush3.bf16.msra.mxu0 %v3324_v44  ;;  %v698_v44 = vrot.slane %v680_v39, %v3971_v7  ;;  %v803_v39 = vld [vmem:[#allocation5 + $0x27a] sm:$0xff] }
 0x289   :  { %3329 = vmatprep.subr.bf16.mxu0 %v3328_v47 }
 0x28c   :  { %3331 = vmatpush3.bf16.msra.mxu0 %v3328_v47 }
 0x28d   :  { %3333 = vmatprep.subr.bf16.mxu0 %v3332_v60 }
 0x290   :  { %3335 = vmatpush3.bf16.msra.mxu0 %v3332_v60 }
 0x346   :  { %v3118_v9 = vpop.f32.mrb[2].mxu0 }
 0x347   :  { %v418_v10 = vmul.f32 %v3118_v9, %v416_v6  ;;  %v403_v13 = vpop.f32.mrb[3].mxu0  ;;  %v705_v9 = vld [vmem:[#allocation5 + $0x219] sm:$0xff] }
 0x348   :  { %v417_v14 = vmul.f32 %v416_v6, %v403_v13  ;;  %v703_v6 = vld [vmem:[#allocation5 + $0x209] sm:$0xff]  ;;  %v706_v13 = vld [vmem:[#allocation5 + $0x221] sm:$0xff] }
 0x349   :  { %v424_v15 = vadd.f32 %v422_v8, %v418_v10 }
 0x34a   :  { %v423_v16 = vadd.f32 %v422_v8, %v417_v14  ;;  %v704_v8 = vld [vmem:[#allocation5 + $0x211] sm:$0xff] }
 0x34b   :  { %vm426_vm6 = vcmp.ge.f32.partialorder %v424_v15, 0.0  ;;  %v432_v19 = vmul.f32 %v430_v12, %v424_v15 }
 0x34c   :  { %vm425_vm7 = vcmp.ge.f32.partialorder %v423_v16, 0.0  ;;  %v431_v20 = vmul.f32 %v430_v12, %v423_v16  ;;  %v3336_v12 = vpack.c.bf16 %v704_v8, %v703_v6 }
 0x34d   :  { %v3975_v21 = vsel %vm426_vm6, %v424_v15, %v432_v19  ;;  %v3340_v15 = vpack.c.bf16 %v706_v13, %v705_v9  ;;  %v805_v9 = vld [vmem:[#allocation5 + $0x28a] sm:$0xff] }
 0x34e   :  { %v3977_v22 = vsel %vm425_vm7, %v423_v16, %v431_v20  ;;  %v438_v24 = vrot.slane %v3975_v21, 6  ;;  %3337 = vmatprep.subr.bf16.mxu1 %v3336_v12 }
 0x34f   :  { %v3986_v25 = vrot.slane %v3977_v22, 6 }
 0x351   :  { %2766 = vmatprep.mubr.msk.f32.mxu1 %vm3980_vm8, %v3986_v25  ;;  %v3993_v26 = vsel %vm295_vm2, %v3986_v25, %v438_v24 }
 0x352   :  { %540 = vmatmul.mubr.f32.vlgmr.msra.gmra.mrb[2].mxu1 %v3977_v22 }
 0x353   :  { %544 = vmatprep.mubr.f32.mxu1 %v3993_v26  ;;  %3339 = vmatpush3.bf16.msra.mxu1 %v3336_v12  ;;  %v797_v12 = vld [vmem:[#allocation5 + $0x24a] sm:$0xff] }
 0x354   :  { %3341 = vmatprep.subr.bf16.mxu1 %v3340_v15 }
 0x356   :  { %545 = vmatmul.mubr.f32.gmra.mrb[4].mxu1 %v3975_v21 }
 0x357   :  { %3343 = vmatpush3.bf16.msra.mxu1 %v3340_v15  ;;  %v807_v15 = vld [vmem:[#allocation5 + $0x29a] sm:$0xff] }
 0x358   :  { %3345 = vmatprep.subr.bf16.mxu1 %v3344_v35 }
 0x35b   :  { %3347 = vmatpush3.bf16.msra.mxu1 %v3344_v35  ;;  %v811_v35 = vld [vmem:[#allocation5 + $0x2ba] sm:$0xff] }
 0x35c   :  { %3349 = vmatprep.subr.bf16.mxu1 %v3348_v38 }
 0x35f   :  { %3351 = vmatpush3.bf16.msra.mxu1 %v3348_v38  ;;  %v4059_v38 = vpack.c.bf16 %v812_v36, %v811_v35 }
 0x425   :  { %v2857_v49 = vpop.f32.mrb[2].mxu1 }
 0x426   :  { %v2858_v51 = vpop.f32.mrb[3].mxu1 }
 0x427   :  { %v2859_v52 = vadd.f32 %v2858_v51, %v2857_v49 }
 0x429   :  { %v555_v54 = vmul.f32 %v2859_v52, %v554_v50  ;;  %v2860_v56 = vpop.f32.mrb[4].mxu1 }
 0x42a   :  { %v2861_v59 = vpop.f32.mrb[5].mxu1 }
 0x42b   :  { %v561_v61 = vadd.f32 %v560_v53, %v555_v54  ;;  %v2862_v62 = vadd.f32 %v2861_v59, %v2860_v56 }
 0x42d   :  { %vm563_vm9 = vcmp.ge.f32.partialorder %v561_v61, 0.0  ;;  %v569_v63 = vmul.f32 %v568_v55, %v561_v61  ;;  %v556_v0 = vmul.f32 %v2862_v62, %v554_v50 }
 0x42f   :  { %v4001_v1 = vsel %vm563_vm9, %v561_v61, %v569_v63  ;;  %v562_v4 = vadd.f32 %v560_v53, %v556_v0  ;;  %v2767_v53 = vld [vmem:[#allocation5 + $0x249] ss:$0 sm:$0xff] }
 0x430   :  { %v575_v14 = vrot.slane %v4001_v1, 6 }
 0x431   :  { %vm564_vm10 = vcmp.ge.f32.partialorder %v562_v4, 0.0  ;;  %v570_v10 = vmul.f32 %v568_v55, %v562_v4 }
 0x432   :  { %v579_v24 = vsel %vm295_vm2, 0.0, %v575_v14 }
 0x433   :  { %v4004_v16 = vsel %vm564_vm10, %v562_v4, %v570_v10  ;;  %v806_v10 = vld [vmem:[#allocation5 + $0x292] sm:$0xff] }
 0x434   :  { %v576_v19 = vrot.slane %v4004_v16, 6  ;;  %v4038_v13 = vpack.c.bf16 %v806_v10, %v805_v9 }
 0x436   :  { %v577_v20 = vsel %vm295_vm2, %v575_v14, %v576_v19  ;;  %v798_v14 = vld [vmem:[#allocation5 + $0x252] sm:$0xff]  ;;  %v808_v19 = vld [vmem:[#allocation5 + $0x2a2] sm:$0xff]  ;;  %3353 = vmatprep.subr.bf16.mxu1 %v4038_v13  ;;  %3369 = vmatprep.subr.bf16.mxu0 %v4038_v13 }
 0x437   :  { %v3665_v27 = vpack.i.bf16 %v577_v20, %v579_v24  ;;  %v4040_v20 = vpack.c.bf16 %v798_v14, %v797_v12  ;;  %v4042_v24 = vpack.c.bf16 %v808_v19, %v807_v15 }
 0x439   :  { %3666 = vrot.lane.b32.xlu0 %v3665_v27, %s3869_s27  ;;  %v799_v27 = vld [vmem:[#allocation5 + $0x25a] sm:$0xff] }
 0x4ab   :  { %v3667_v28 = vpop.permute.xlu0 %3666 }
 0x4ac   :  { %v3669_v29 = vunpack.i.h.bf16 %v3667_v28  ;;  %v3668_v30 = vunpack.i.l.bf16 %v3667_v28  ;;  %v800_v28 = vld [vmem:[#allocation5 + $0x262] sm:$0xff] }
 0x4ae   :  { %v587_v31 = vsel %vm318_vm5, %v4001_v1, %v3668_v30  ;;  %v588_v32 = vsel %vm318_vm5, %v4004_v16, %v3669_v29  ;;  %v809_v29 = vld [vmem:[#allocation5 + $0x2aa] sm:$0xff]  ;;  %v810_v30 = vld [vmem:[#allocation5 + $0x2b2] sm:$0xff] }
 0x4af   :  { %3151 = vmatprep.mubr.f32.mxu0 %v587_v31  ;;  %v4047_v31 = vpack.c.bf16 %v800_v28, %v799_v27 }
 0x4b0   :  { %3152 = vmatmul.mubr.f32.vlgmr.msra.gmra.mrb[4].mxu0 %v588_v32  ;;  %v4051_v32 = vpack.c.bf16 %v810_v30, %v809_v29 }
 0x4b1   :  { %1056 = vmatprep.mubr.f32.mxu0 %v3868_v11  ;;  %3371 = vmatpush1.bf16.msra.mxu0 %v4040_v20 }
 0x4b2   :  { %3373 = vmatprep.subr.bf16.mxu0 %v4042_v24 }
 0x4b5   :  { %3375 = vmatpush1.bf16.msra.mxu0 %v4047_v31 }
 0x4b6   :  { %3377 = vmatprep.subr.bf16.mxu0 %v4051_v32 }
 0x4b9   :  { %3379 = vmatpush1.bf16.msra.mxu0 %v4055_v37 }
 0x4ba   :  { %3381 = vmatprep.subr.bf16.mxu0 %v4059_v38 }
 0x583   :  { %v3153_v42 = vpop.f32.mrb[4].mxu0 }
 0x584   :  { %v686_v43 = vmul.f32 %v3153_v42, %v684_v40  ;;  %v671_v45 = vpop.f32.mrb[5].mxu0 }
 0x585   :  { %v685_v46 = vmul.f32 %v684_v40, %v671_v45  ;;  %v804_v40 = vld [vmem:[#allocation5 + $0x282] sm:$0xff] }
 0x586   :  { %v692_v47 = vadd.f32 %v690_v41, %v686_v43  ;;  %v4064_v42 = vpack.c.bf16 %v804_v40, %v803_v39 }
 0x587   :  { %v691_v48 = vadd.f32 %v690_v41, %v685_v46 }
 0x588   :  { %v700_v49 = vmul.f32 %v698_v44, %v692_v47  ;;  %vm694_vm11 = vcmp.ge.f32.partialorder %v692_v47, 0.0  ;;  %3383 = vmatpush1.bf16.msra.mxu0 %v4064_v42 }
 0x589   :  { %v699_v50 = vmul.f32 %v698_v44, %v691_v48  ;;  %vm693_vm12 = vcmp.ge.f32.partialorder %v691_v48, 0.0  ;;  %3401 = vmatprep.subr.bf16.mxu0 %v4038_v13 }
 0x58a   :  { %v4020_v52 = vsel %vm694_vm11, %v692_v47, %v700_v49  ;;  %v4085_v47 = vld [vmem:[#allocation5 + $0x2ca] ss:$0 sm:$0xff] }
 0x58b   :  { %v4018_v51 = vsel %vm693_vm12, %v691_v48, %v699_v50 }
 0x58c   :  { %3170 = vmatprep.mubr.msk.f32.mxu1 %vm318_vm5, %v4018_v51 }
 0x58d   :  { %3171 = vmatmul.mubr.msk.f32.vlgmr.msra.gmra.mrb[6].mxu1 %vm318_vm5, %v4020_v52 }
 0x58e   :  { %911 = vmatprep.mubr.f32.mxu1 %v3868_v11  ;;  %3355 = vmatpush1.bf16.msra.mxu1 %v4040_v20 }
 0x58f   :  { %3357 = vmatprep.subr.bf16.mxu1 %v4042_v24 }
 0x592   :  { %3359 = vmatpush1.bf16.msra.mxu1 %v4047_v31 }
 0x593   :  { %3361 = vmatprep.subr.bf16.mxu1 %v4051_v32 }
 0x596   :  { %3363 = vmatpush1.bf16.msra.mxu1 %v4055_v37 }
 0x597   :  { %3365 = vmatprep.subr.bf16.mxu1 %v4059_v38 }
 0x59a   :  { %3367 = vmatpush1.bf16.msra.mxu1 %v4064_v42 }
 0x59b   :  { %3385 = vmatprep.subr.bf16.mxu1 %v4038_v13 }
 0x660   :  { %v3172_v54 = vpop.f32.mrb[6].mxu1 }
 0x661   :  { %v4027_v55 = vadd.f32 %v3172_v54, %v2767_v53  ;;  %v788_v56 = vpop.f32.mrb[7].mxu1 }
 0x662   :  { %v4029_v57 = vadd.f32 %v2767_v53, %v788_v56 }
 0x664   :  { %3670 = vtanh.f32 %v4029_v57  ;;  %v2770_v59 = vmul.f32 -1.442695, %v4029_v57 }
 0x666   :  { %3672 = vpow2.f32 %v2770_v59 }
 0x66e   :  { %v3671_v58 = vpop.eup %3670 }
 0x66f   :  { %823 = vrot.lane.b32.xlu1 %v3671_v58, %s3866_s21 }
 0x670   :  { %v3673_v60 = vpop.eup %3672 }
 0x671   :  { %v817_v61 = vadd.f32 1.0, %v3673_v60 }
 0x673   :  { %3674 = vrcp.f32 %v817_v61 }
 0x67d   :  { %v3675_v62 = vpop.eup %3674 }
 0x67e   :  { %v821_v4 = vmul.f32 0.0, %v3675_v62 }
 0x6e1   :  { %v824_v63 = vpop.permute.xlu1 %823 }
 0x6e2   :  { %v826_v0 = vmul.f32 %v3675_v62, %v824_v63 }
 0x6e4   :  { %828 = vrot.lane.b32.xlu0 %v826_v0, %s3866_s21 }
 0x756   :  { %v829_v6 = vpop.permute.xlu0 %828 }
 0x757   :  { %v4035_v8 = vadd.f32 %v829_v6, %v821_v4 }
 0x759   :  { %3676 = vtanh.f32 %v4035_v8  ;;  %v935_v15 = vrot.slane %v4035_v8, 6 }
 0x763   :  { %v3677_v41 = vpop.eup %3676 }
 0x764   :  { %834 = vrot.lane.b32.xlu1 %v3677_v41, %s3866_s21 }
 0x7d6   :  { %v835_v43 = vpop.permute.xlu1 %834 }
 0x7d7   :  { %v837_v44 = vmul.f32 %v3675_v62, %v835_v43 }
 0x7d9   :  { %839 = vrot.lane.b32.xlu0 %v837_v44, %s3869_s27 }
 0x84b   :  { %v840_v45 = vpop.permute.xlu0 %839 }
 0x84c   :  { %v843_v46 = vsel %vm842_vm13, %v840_v45, 0.0 }
 0x84d   :  { %2771 = vmatmul.mubr.msk.f32.vlgmr.msra.gmra.mrb[8].mxu1 %vm318_vm5, %v843_v46 }
 0x84e   :  { %3387 = vmatpush1.bf16.msra.mxu1 %v4040_v20  ;;  %1197 = vmatprep.mubr.f32.mxu1 %v3868_v11 }
 0x84f   :  { %3389 = vmatprep.subr.bf16.mxu1 %v4042_v24 }
 0x852   :  { %3391 = vmatpush1.bf16.msra.mxu1 %v4047_v31 }
 0x853   :  { %3393 = vmatprep.subr.bf16.mxu1 %v4051_v32 }
 0x856   :  { %3395 = vmatpush1.bf16.msra.mxu1 %v4055_v37 }
 0x857   :  { %3397 = vmatprep.subr.bf16.mxu1 %v4059_v38 }
 0x85a   :  { %3399 = vmatpush1.bf16.msra.mxu1 %v4064_v42 }
 0x85b   :  { %3417 = vmatprep.subr.bf16.mxu1 %v4038_v13 }
 0x920   :  { %v913_v48 = vpop.f32.mrb[8].mxu1 }
 0x921   :  { %v924_v49 = vrot.slane %v913_v48, 6  ;;  %v915_v50 = vpop.f32.mrb[9].mxu1 }
 0x922   :  { %v922_v53 = vadd.f32 %v4085_v47, %v915_v50 }
 0x923   :  { %v926_v54 = vadd.f32 %v924_v49, %v4029_v57 }
 0x924   :  { %3678 = vtanh.f32 %v922_v53  ;;  %v2774_v59 = vmul.f32 -1.442695, %v922_v53 }
 0x925   :  { %3680 = vtanh.f32 %v926_v54  ;;  %v2773_v60 = vmul.f32 -1.442695, %v926_v54 }
 0x926   :  { %3682 = vpow2.f32 %v2774_v59 }
 0x927   :  { %3684 = vpow2.f32 %v2773_v60 }
 0x92e   :  { %v3679_v56 = vpop.eup %3678 }
 0x92f   :  { %v3681_v58 = vpop.eup %3680  ;;  %963 = vrot.lane.b32.xlu1 %v3679_v56, %s3866_s21 }
 0x930   :  { %939 = vrot.lane.b32.xlu0 %v3681_v58, %s3866_s21  ;;  %v3683_v61 = vpop.eup %3682 }
 0x931   :  { %v3685_v62 = vpop.eup %3684  ;;  %v957_v63 = vadd.f32 1.0, %v3683_v61 }
 0x932   :  { %v930_v0 = vadd.f32 1.0, %v3685_v62 }
 0x933   :  { %3686 = vrcp.f32 %v957_v63 }
 0x934   :  { %3688 = vrcp.f32 %v930_v0 }
 0x93d   :  { %v3687_v4 = vpop.eup %3686 }
 0x93e   :  { %v3689_v9 = vpop.eup %3688  ;;  %v961_v19 = vmul.f32 0.0, %v3687_v4 }
 0x93f   :  { %v937_v28 = vmul.f32 %v3689_v9, %v935_v15 }
 0x9a1   :  { %v964_v6 = vpop.permute.xlu1 %963 }
 0x9a2   :  { %v966_v10 = vmul.f32 %v3687_v4, %v964_v6  ;;  %v940_v12 = vpop.permute.xlu0 %939 }
 0x9a3   :  { %v942_v14 = vmul.f32 %v3689_v9, %v940_v12 }
 0x9a4   :  { %968 = vrot.lane.b32.xlu1 %v966_v10, %s3866_s21 }
 0x9a5   :  { %944 = vrot.lane.b32.xlu0 %v942_v14, %s3866_s21 }
 0xa16   :  { %v969_v27 = vpop.permute.xlu1 %968 }
 0xa17   :  { %v971_v29 = vadd.f32 %v969_v27, %v961_v19  ;;  %v945_v30 = vpop.permute.xlu0 %944 }
 0xa18   :  { %v947_v33 = vadd.f32 %v945_v30, %v937_v28 }
 0xa19   :  { %3690 = vtanh.f32 %v971_v29 }
 0xa1a   :  { %3692 = vtanh.f32 %v947_v33  ;;  %v1076_v15 = vrot.slane %v947_v33, 6 }
 0xa23   :  { %v3691_v34 = vpop.eup %3690 }
 0xa24   :  { %v3693_v35 = vpop.eup %3692  ;;  %974 = vrot.lane.b32.xlu1 %v3691_v34, %s3866_s21 }
 0xa25   :  { %950 = vrot.lane.b32.xlu0 %v3693_v35, %s3866_s21 }
 0xa96   :  { %v975_v36 = vpop.permute.xlu1 %974 }
 0xa97   :  { %v4096_v39 = vmul.f32 %v3687_v4, %v975_v36  ;;  %v951_v40 = vpop.permute.xlu0 %950 }
 0xa98   :  { %v953_v41 = vmul.f32 %v3689_v9, %v951_v40 }
 0xa99   :  { %v983_v8 = vrot.slane %v4096_v39, 6 }
 0xa9a   :  { %979 = vrot.lane.b32.xlu1 %v953_v41, %s3869_s27 }
 0xa9b   :  { %984 = vrot.lane.b32.xlu0 %v983_v8, %s3870_s1 }
 0xb0c   :  { %v980_v43 = vpop.permute.xlu1 %979 }
 0xb0d   :  { %v985_v44 = vpop.permute.xlu0 %984 }
 0xb0e   :  { %v987_v45 = vsel %vm842_vm13, %v980_v43, %v985_v44 }
 0xb0f   :  { %v989_v46 = vrot.slane %v987_v45, 2 }
 0xb11   :  { %2775 = vmatmul.mubr.msk.f32.vlgmr.msra.gmra.mrb[6].mxu0 %vm318_vm5, %v989_v46 }
 0xb12   :  { %3403 = vmatpush1.bf16.msra.mxu0 %v4040_v20  ;;  %1338 = vmatprep.mubr.f32.mxu0 %v3868_v11 }
 0xb13   :  { %3405 = vmatprep.subr.bf16.mxu0 %v4042_v24 }
 0xb16   :  { %3407 = vmatpush1.bf16.msra.mxu0 %v4047_v31 }
 0xb17   :  { %3409 = vmatprep.subr.bf16.mxu0 %v4051_v32 }
 0xb1a   :  { %3411 = vmatpush1.bf16.msra.mxu0 %v4055_v37 }
 0xb1b   :  { %3413 = vmatprep.subr.bf16.mxu0 %v4059_v38 }
 0xb1e   :  { %3415 = vmatpush1.bf16.msra.mxu0 %v4064_v42 }
 0xb1f   :  { %3433 = vmatprep.subr.bf16.mxu0 %v4038_v13 }
 0xbe4   :  { %v1058_v48 = vpop.f32.mrb[6].mxu0 }
 0xbe5   :  { %v1065_v49 = vrot.slane %v1058_v48, 4  ;;  %v1060_v50 = vpop.f32.mrb[7].mxu0 }
 0xbe6   :  { %v1063_v53 = vadd.f32 %v4085_v47, %v1060_v50 }
 0xbe7   :  { %v1067_v54 = vadd.f32 %v1065_v49, %v4029_v57 }
 0xbe8   :  { %3694 = vtanh.f32 %v1063_v53  ;;  %v2777_v59 = vmul.f32 -1.442695, %v1063_v53 }
 0xbe9   :  { %3696 = vtanh.f32 %v1067_v54  ;;  %v2776_v60 = vmul.f32 -1.442695, %v1067_v54 }
 0xbea   :  { %3698 = vpow2.f32 %v2777_v59 }
 0xbeb   :  { %3700 = vpow2.f32 %v2776_v60 }
 0xbf2   :  { %v3695_v56 = vpop.eup %3694 }
 0xbf3   :  { %v3697_v58 = vpop.eup %3696  ;;  %1104 = vrot.lane.b32.xlu1 %v3695_v56, %s3866_s21 }
 0xbf4   :  { %1080 = vrot.lane.b32.xlu0 %v3697_v58, %s3866_s21  ;;  %v3699_v61 = vpop.eup %3698 }
 0xbf5   :  { %v3701_v62 = vpop.eup %3700  ;;  %v1098_v63 = vadd.f32 1.0, %v3699_v61 }
 0xbf6   :  { %v1071_v0 = vadd.f32 1.0, %v3701_v62 }
 0xbf7   :  { %3702 = vrcp.f32 %v1098_v63 }
 0xbf8   :  { %3704 = vrcp.f32 %v1071_v0 }
 0xc01   :  { %v3703_v4 = vpop.eup %3702 }
 0xc02   :  { %v3705_v9 = vpop.eup %3704  ;;  %v1102_v19 = vmul.f32 %v3703_v4, %v971_v29 }
 0xc03   :  { %v1078_v28 = vmul.f32 %v3705_v9, %v1076_v15 }
 0xc65   :  { %v1105_v6 = vpop.permute.xlu1 %1104 }
 0xc66   :  { %v1107_v10 = vmul.f32 %v3703_v4, %v1105_v6  ;;  %v1081_v12 = vpop.permute.xlu0 %1080 }
 0xc67   :  { %v1083_v14 = vmul.f32 %v3705_v9, %v1081_v12 }
 0xc68   :  { %1109 = vrot.lane.b32.xlu1 %v1107_v10, %s3866_s21 }
 0xc69   :  { %1085 = vrot.lane.b32.xlu0 %v1083_v14, %s3866_s21 }
 0xcda   :  { %v1110_v27 = vpop.permute.xlu1 %1109 }
 0xcdb   :  { %v1112_v30 = vadd.f32 %v1110_v27, %v1102_v19  ;;  %v1086_v34 = vpop.permute.xlu0 %1085 }
 0xcdc   :  { %v1088_v35 = vadd.f32 %v1086_v34, %v1078_v28 }
 0xcdd   :  { %3706 = vtanh.f32 %v1112_v30 }
 0xcde   :  { %3708 = vtanh.f32 %v1088_v35  ;;  %v1217_v15 = vrot.slane %v1088_v35, 6 }
 0xce7   :  { %v3707_v36 = vpop.eup %3706 }
 0xce8   :  { %v3709_v40 = vpop.eup %3708  ;;  %1115 = vrot.lane.b32.xlu1 %v3707_v36, %s3866_s21 }
 0xce9   :  { %1091 = vrot.lane.b32.xlu0 %v3709_v40, %s3866_s21 }
 0xd5a   :  { %v1116_v41 = vpop.permute.xlu1 %1115 }
 0xd5b   :  { %v4120_v8 = vmul.f32 %v3703_v4, %v1116_v41  ;;  %v1092_v43 = vpop.permute.xlu0 %1091 }
 0xd5c   :  { %v1094_v44 = vmul.f32 %v3705_v9, %v1092_v43 }
 0xd5d   :  { %v1124_v29 = vrot.slane %v4120_v8, 4 }
 0xd5e   :  { %1120 = vrot.lane.b32.xlu1 %v1094_v44, %s3869_s27  ;;  %v1928_v44 = vrot.slane %v4120_v8, 6 }
 0xd5f   :  { %1125 = vrot.lane.b32.xlu0 %v1124_v29, %s3870_s1 }
 0xdd0   :  { %v1121_v33 = vpop.permute.xlu1 %1120 }
 0xdd1   :  { %v1126_v45 = vpop.permute.xlu0 %1125 }
 0xdd2   :  { %v1128_v46 = vsel %vm842_vm13, %v1121_v33, %v1126_v45 }
 0xdd3   :  { %v1130_v48 = vrot.slane %v1128_v46, 4 }
 0xdd5   :  { %2778 = vmatmul.mubr.msk.f32.vlgmr.msra.gmra.mrb[10].mxu1 %vm318_vm5, %v1130_v48  ;;  %v1941_v48 = vsel %vm295_vm2, %v4096_v39, %v1928_v44 }
 0xdd6   :  { %3419 = vmatpush1.bf16.msra.mxu1 %v4040_v20  ;;  %1474 = vmatprep.mubr.f32.mxu1 %v3868_v11 }
 0xdd7   :  { %3421 = vmatprep.subr.bf16.mxu1 %v4042_v24 }
 0xdda   :  { %3423 = vmatpush1.bf16.msra.mxu1 %v4047_v31 }
 0xddb   :  { %3425 = vmatprep.subr.bf16.mxu1 %v4051_v32 }
 0xdde   :  { %3427 = vmatpush1.bf16.msra.mxu1 %v4055_v37 }
 0xddf   :  { %3429 = vmatprep.subr.bf16.mxu1 %v4059_v38 }
 0xde2   :  { %3431 = vmatpush1.bf16.msra.mxu1 %v4064_v42 }
 0xde3   :  { %3449 = vmatprep.subr.bf16.mxu1 %v4038_v13 }
 0xea8   :  { %v1199_v49 = vpop.f32.mrb[10].mxu1 }
 0xea9   :  { %v1206_v50 = vrot.slane %v1199_v49, 2  ;;  %v1201_v53 = vpop.f32.mrb[11].mxu1 }
 0xeaa   :  { %v1204_v54 = vadd.f32 %v4085_v47, %v1201_v53 }
 0xeab   :  { %v1208_v56 = vadd.f32 %v1206_v50, %v4029_v57 }
 0xeac   :  { %3710 = vtanh.f32 %v1204_v54  ;;  %v2780_v60 = vmul.f32 -1.442695, %v1204_v54 }
 0xead   :  { %3712 = vtanh.f32 %v1208_v56  ;;  %v2779_v61 = vmul.f32 -1.442695, %v1208_v56 }
 0xeae   :  { %3714 = vpow2.f32 %v2780_v60 }
 0xeaf   :  { %3716 = vpow2.f32 %v2779_v61 }
 0xeb6   :  { %v3711_v58 = vpop.eup %3710 }
 0xeb7   :  { %v3713_v59 = vpop.eup %3712  ;;  %1245 = vrot.lane.b32.xlu1 %v3711_v58, %s3866_s21 }
 0xeb8   :  { %1221 = vrot.lane.b32.xlu0 %v3713_v59, %s3866_s21  ;;  %v3715_v62 = vpop.eup %3714 }
 0xeb9   :  { %v3717_v63 = vpop.eup %3716  ;;  %v1239_v0 = vadd.f32 1.0, %v3715_v62 }
 0xeba   :  { %v1212_v4 = vadd.f32 1.0, %v3717_v63 }
 0xebb   :  { %3718 = vrcp.f32 %v1239_v0 }
 0xebc   :  { %3720 = vrcp.f32 %v1212_v4 }
 0xec5   :  { %v3719_v6 = vpop.eup %3718 }
 0xec6   :  { %v3721_v9 = vpop.eup %3720  ;;  %v1243_v19 = vmul.f32 %v3719_v6, %v1112_v30 }
 0xec7   :  { %v1219_v28 = vmul.f32 %v3721_v9, %v1217_v15 }
 0xf29   :  { %v1246_v57 = vpop.permute.xlu1 %1245 }
 0xf2a   :  { %v1248_v10 = vmul.f32 %v3719_v6, %v1246_v57  ;;  %v1222_v12 = vpop.permute.xlu0 %1221 }
 0xf2b   :  { %v1224_v14 = vmul.f32 %v3721_v9, %v1222_v12 }
 0xf2c   :  { %1250 = vrot.lane.b32.xlu1 %v1248_v10, %s3866_s21 }
 0xf2d   :  { %1226 = vrot.lane.b32.xlu0 %v1224_v14, %s3866_s21 }
 0xf9e   :  { %v1251_v27 = vpop.permute.xlu1 %1250 }
 0xf9f   :  { %v4142_v34 = vadd.f32 %v1251_v27, %v1243_v19  ;;  %v1227_v36 = vpop.permute.xlu0 %1226 }
 0xfa0   :  { %v1229_v40 = vadd.f32 %v1227_v36, %v1219_v28 }
 0xfa1   :  { %3722 = vtanh.f32 %v4142_v34 }
 0xfa2   :  { %3724 = vtanh.f32 %v1229_v40  ;;  %v1355_v19 = vrot.slane %v1229_v40, 6 }
 0xfab   :  { %v3723_v41 = vpop.eup %3722 }
 0xfac   :  { %v3725_v43 = vpop.eup %3724  ;;  %1256 = vrot.lane.b32.xlu1 %v3723_v41, %s3866_s21 }
 0xfad   :  { %1232 = vrot.lane.b32.xlu0 %v3725_v43, %s3866_s21 }
0x101e   :  { %v1257_v29 = vpop.permute.xlu1 %1256 }
0x101f   :  { %v1259_v35 = vmul.f32 %v3719_v6, %v1257_v29  ;;  %v1233_v30 = vpop.permute.xlu0 %1232 }
0x1020   :  { %v1235_v33 = vmul.f32 %v3721_v9, %v1233_v30 }
0x1021   :  { %v1265_v45 = vrot.slane %v1259_v35, 2  ;;  %v1930_v46 = vrot.slane %v1259_v35, 4 }
0x1022   :  { %1261 = vrot.lane.b32.xlu1 %v1235_v33, %s3869_s27 }
0x1023   :  { %1266 = vrot.lane.b32.xlu0 %v1265_v45, %s3870_s1  ;;  %v4153_v49 = vsel %vm297_vm3, %v1941_v48, %v1930_v46 }
0x1094   :  { %v1262_v50 = vpop.permute.xlu1 %1261 }
0x1095   :  { %v1267_v53 = vpop.permute.xlu0 %1266 }
0x1096   :  { %v1269_v8 = vsel %vm842_vm13, %v1262_v50, %v1267_v53 }
0x1097   :  { %v1271_v54 = vrot.slane %v1269_v8, 6 }
0x1099   :  { %2781 = vmatmul.mubr.msk.f32.vlgmr.msra.gmra.mrb[8].mxu0 %vm318_vm5, %v1271_v54 }
0x109a   :  { %3435 = vmatpush1.bf16.msra.mxu0 %v4040_v20  ;;  %1615 = vmatprep.mubr.f32.mxu0 %v3868_v11 }
0x109b   :  { %3437 = vmatprep.subr.bf16.mxu0 %v4042_v24 }
0x109e   :  { %3439 = vmatpush1.bf16.msra.mxu0 %v4047_v31 }
0x109f   :  { %3441 = vmatprep.subr.bf16.mxu0 %v4051_v32 }
0x10a2   :  { %3443 = vmatpush1.bf16.msra.mxu0 %v4055_v37 }
0x10a3   :  { %3445 = vmatprep.subr.bf16.mxu0 %v4059_v38 }
0x10a6   :  { %3447 = vmatpush1.bf16.msra.mxu0 %v4064_v42 }
0x10a7   :  { %3465 = vmatprep.subr.bf16.mxu0 %v4038_v13 }
0x116c   :  { %v1340_v39 = vpop.f32.mrb[8].mxu0 }
0x116d   :  { %v1346_v56 = vadd.f32 %v1340_v39, %v4027_v55  ;;  %v1342_v58 = vpop.f32.mrb[9].mxu0 }
0x116e   :  { %v1345_v59 = vadd.f32 %v4085_v47, %v1342_v58 }
0x116f   :  { %3726 = vtanh.f32 %v1346_v56  ;;  %v2782_v62 = vmul.f32 -1.442695, %v1346_v56 }
0x1170   :  { %3728 = vtanh.f32 %v1345_v59  ;;  %v2783_v63 = vmul.f32 -1.442695, %v1345_v59 }
0x1171   :  { %3730 = vpow2.f32 %v2782_v62 }
0x1172   :  { %3732 = vpow2.f32 %v2783_v63 }
0x1179   :  { %v3727_v60 = vpop.eup %3726 }
0x117a   :  { %v3729_v61 = vpop.eup %3728  ;;  %1359 = vrot.lane.b32.xlu1 %v3727_v60, %s3866_s21 }
0x117b   :  { %1383 = vrot.lane.b32.xlu0 %v3729_v61, %s3866_s21  ;;  %v3731_v0 = vpop.eup %3730 }
0x117c   :  { %v3733_v13 = vpop.eup %3732  ;;  %v1350_v4 = vadd.f32 1.0, %v3731_v0 }
0x117d   :  { %v1377_v6 = vadd.f32 1.0, %v3733_v13 }
0x117e   :  { %3734 = vrcp.f32 %v1350_v4 }
0x117f   :  { %3736 = vrcp.f32 %v1377_v6 }
0x1188   :  { %v3735_v57 = vpop.eup %3734 }
0x1189   :  { %v3737_v10 = vpop.eup %3736  ;;  %v1357_v27 = vmul.f32 %v3735_v57, %v1355_v19 }
0x118a   :  { %v1381_v36 = vmul.f32 %v3737_v10, %v4142_v34 }
0x11ec   :  { %v1360_v9 = vpop.permute.xlu1 %1359 }
0x11ed   :  { %v1362_v12 = vmul.f32 %v3735_v57, %v1360_v9  ;;  %v1384_v14 = vpop.permute.xlu0 %1383 }
0x11ee   :  { %v1386_v15 = vmul.f32 %v3737_v10, %v1384_v14 }
0x11ef   :  { %1364 = vrot.lane.b32.xlu1 %v1362_v12, %s3866_s21 }
0x11f0   :  { %1388 = vrot.lane.b32.xlu0 %v1386_v15, %s3866_s21 }
0x1261   :  { %v1365_v28 = vpop.permute.xlu1 %1364 }
0x1262   :  { %v1367_v41 = vadd.f32 %v1365_v28, %v1357_v27  ;;  %v1389_v43 = vpop.permute.xlu0 %1388 }
0x1263   :  { %v1391_v44 = vadd.f32 %v1389_v43, %v1381_v36 }
0x1264   :  { %3738 = vtanh.f32 %v1367_v41  ;;  %v1494_v14 = vrot.slane %v1367_v41, 6 }
0x1265   :  { %3740 = vtanh.f32 %v1391_v44 }
0x126e   :  { %v3739_v29 = vpop.eup %3738 }
0x126f   :  { %v3741_v35 = vpop.eup %3740  ;;  %1370 = vrot.lane.b32.xlu1 %v3739_v29, %s3866_s21 }
0x1270   :  { %1394 = vrot.lane.b32.xlu0 %v3741_v35, %s3866_s21 }
0x12e1   :  { %v1371_v30 = vpop.permute.xlu1 %1370 }
0x12e2   :  { %v1373_v33 = vmul.f32 %v3735_v57, %v1371_v30  ;;  %v1395_v45 = vpop.permute.xlu0 %1394 }
0x12e3   :  { %v1397_v46 = vmul.f32 %v3737_v10, %v1395_v45 }
0x12e4   :  { %1399 = vrot.lane.b32.xlu1 %v1373_v33, %s3869_s27 }
0x12e5   :  { %v1932_v40 = vrot.slane %v1397_v46, 2  ;;  %1403 = vrot.lane.b32.xlu0 %v1397_v46, %s3870_s1 }
0x12e7   :  { %v4179_v34 = vsel %vm299_vm4, %v4153_v49, %v1932_v40 }
0x1356   :  { %v1400_v48 = vpop.permute.xlu1 %1399 }
0x1357   :  { %v1404_v50 = vpop.permute.xlu0 %1403 }
0x1358   :  { %v1406_v53 = vsel %vm842_vm13, %v1400_v48, %v1404_v50 }
0x1359   :  { %2784 = vmatmul.mubr.msk.f32.vlgmr.msra.gmra.mrb[12].mxu1 %vm318_vm5, %v1406_v53 }
0x135a   :  { %3451 = vmatpush1.bf16.msra.mxu1 %v4040_v20  ;;  %1756 = vmatprep.mubr.f32.mxu1 %v3868_v11 }
0x135b   :  { %3453 = vmatprep.subr.bf16.mxu1 %v4042_v24 }
0x135e   :  { %3455 = vmatpush1.bf16.msra.mxu1 %v4047_v31 }
0x135f   :  { %3457 = vmatprep.subr.bf16.mxu1 %v4051_v32 }
0x1362   :  { %3459 = vmatpush1.bf16.msra.mxu1 %v4055_v37 }
0x1363   :  { %3461 = vmatprep.subr.bf16.mxu1 %v4059_v38 }
0x1366   :  { %3463 = vmatpush1.bf16.msra.mxu1 %v4064_v42 }
0x142c   :  { %v1476_v49 = vpop.f32.mrb[12].mxu1 }
0x142d   :  { %v1483_v8 = vrot.slane %v1476_v49, 6  ;;  %v1478_v54 = vpop.f32.mrb[13].mxu1 }
0x142e   :  { %v1481_v39 = vadd.f32 %v4085_v47, %v1478_v54 }
0x142f   :  { %v1485_v56 = vadd.f32 %v1483_v8, %v4027_v55 }
0x1430   :  { %3742 = vtanh.f32 %v1481_v39  ;;  %v2786_v60 = vmul.f32 -1.442695, %v1481_v39 }
0x1431   :  { %3744 = vtanh.f32 %v1485_v56  ;;  %v2785_v61 = vmul.f32 -1.442695, %v1485_v56 }
0x1432   :  { %3746 = vpow2.f32 %v2786_v60 }
0x1433   :  { %3748 = vpow2.f32 %v2785_v61 }
0x143a   :  { %v3743_v58 = vpop.eup %3742 }
0x143b   :  { %v3745_v59 = vpop.eup %3744  ;;  %1522 = vrot.lane.b32.xlu1 %v3743_v58, %s3866_s21 }
0x143c   :  { %1498 = vrot.lane.b32.xlu0 %v3745_v59, %s3866_s21  ;;  %v3747_v62 = vpop.eup %3746 }
0x143d   :  { %v3749_v63 = vpop.eup %3748  ;;  %v1516_v0 = vadd.f32 1.0, %v3747_v62 }
0x143e   :  { %v1489_v13 = vadd.f32 1.0, %v3749_v63 }
0x143f   :  { %3750 = vrcp.f32 %v1516_v0 }
0x1440   :  { %3752 = vrcp.f32 %v1489_v13 }
0x1449   :  { %v3751_v4 = vpop.eup %3750 }
0x144a   :  { %v3753_v57 = vpop.eup %3752  ;;  %v1520_v15 = vmul.f32 %v3751_v4, %v1391_v44 }
0x144b   :  { %v1496_v27 = vmul.f32 %v3753_v57, %v1494_v14 }
0x14ad   :  { %v1523_v6 = vpop.permute.xlu1 %1522 }
0x14ae   :  { %v1525_v9 = vmul.f32 %v3751_v4, %v1523_v6  ;;  %v1499_v10 = vpop.permute.xlu0 %1498 }
0x14af   :  { %v1501_v12 = vmul.f32 %v3753_v57, %v1499_v10 }
0x14b0   :  { %1527 = vrot.lane.b32.xlu1 %v1525_v9, %s3866_s21 }
0x14b1   :  { %1503 = vrot.lane.b32.xlu0 %v1501_v12, %s3866_s21 }
0x1522   :  { %v1528_v19 = vpop.permute.xlu1 %1527 }
0x1523   :  { %v1530_v28 = vadd.f32 %v1528_v19, %v1520_v15  ;;  %v1504_v36 = vpop.permute.xlu0 %1503 }
0x1524   :  { %v1506_v43 = vadd.f32 %v1504_v36, %v1496_v27 }
0x1525   :  { %3754 = vtanh.f32 %v1530_v28 }
0x1526   :  { %3756 = vtanh.f32 %v1506_v43  ;;  %v1635_v63 = vrot.slane %v1506_v43, 6 }
0x152f   :  { %v3755_v29 = vpop.eup %3754 }
0x1530   :  { %v3757_v35 = vpop.eup %3756  ;;  %1533 = vrot.lane.b32.xlu1 %v3755_v29, %s3866_s21 }
0x1531   :  { %1509 = vrot.lane.b32.xlu0 %v3757_v35, %s3866_s21 }
0x15a2   :  { %v1534_v30 = vpop.permute.xlu1 %1533 }
0x15a3   :  { %v4199_v33 = vmul.f32 %v3751_v4, %v1534_v30  ;;  %v1510_v45 = vpop.permute.xlu0 %1509 }
0x15a4   :  { %v1512_v46 = vmul.f32 %v3753_v57, %v1510_v45 }
0x15a5   :  { %v1542_v41 = vrot.slane %v4199_v33, 6 }
0x15a6   :  { %1538 = vrot.lane.b32.xlu1 %v1512_v46, %s3869_s27 }
0x15a7   :  { %1543 = vrot.lane.b32.xlu0 %v1542_v41, %s3870_s1 }
0x1618   :  { %v1539_v44 = vpop.permute.xlu1 %1538 }
0x1619   :  { %v1544_v40 = vpop.permute.xlu0 %1543 }
0x161a   :  { %v1546_v48 = vsel %vm842_vm13, %v1539_v44, %v1544_v40 }
0x161b   :  { %v1548_v50 = vrot.slane %v1546_v48, 2 }
0x161d   :  { %2787 = vmatmul.mubr.msk.f32.vlgmr.msra.gmra.mrb[10].mxu0 %vm318_vm5, %v1548_v50 }
0x161e   :  { %3467 = vmatpush1.bf16.msra.mxu0 %v4040_v20  ;;  %1897 = vmatprep.mubr.f32.mxu0 %v3868_v11 }
0x161f   :  { %3469 = vmatprep.subr.bf16.mxu0 %v4042_v24 }
0x1622   :  { %3471 = vmatpush1.bf16.msra.mxu0 %v4047_v31 }
0x1623   :  { %3473 = vmatprep.subr.bf16.mxu0 %v4051_v32 }
0x1626   :  { %3475 = vmatpush1.bf16.msra.mxu0 %v4055_v37 }
0x1627   :  { %3477 = vmatprep.subr.bf16.mxu0 %v4059_v38 }
0x162a   :  { %3479 = vmatpush1.bf16.msra.mxu0 %v4064_v42 }
0x16f0   :  { %v1617_v53 = vpop.f32.mrb[10].mxu0 }
0x16f1   :  { %v1624_v49 = vrot.slane %v1617_v53, 4  ;;  %v1619_v8 = vpop.f32.mrb[11].mxu0 }
0x16f2   :  { %v1622_v54 = vadd.f32 %v4085_v47, %v1619_v8 }
0x16f3   :  { %v1626_v20 = vadd.f32 %v1624_v49, %v4027_v55 }
0x16f4   :  { %3758 = vtanh.f32 %v1622_v54  ;;  %v2789_v31 = vmul.f32 -1.442695, %v1622_v54 }
0x16f5   :  { %3760 = vtanh.f32 %v1626_v20  ;;  %v2788_v32 = vmul.f32 -1.442695, %v1626_v20 }
0x16f6   :  { %3762 = vpow2.f32 %v2789_v31 }
0x16f7   :  { %3764 = vpow2.f32 %v2788_v32 }
0x16fe   :  { %v3759_v11 = vpop.eup %3758 }
0x16ff   :  { %v3761_v24 = vpop.eup %3760  ;;  %1663 = vrot.lane.b32.xlu1 %v3759_v11, %s3866_s21 }
0x1700   :  { %1639 = vrot.lane.b32.xlu0 %v3761_v24, %s3866_s21  ;;  %v3763_v37 = vpop.eup %3762 }
0x1701   :  { %v3765_v38 = vpop.eup %3764  ;;  %v1657_v42 = vadd.f32 1.0, %v3763_v37 }
0x1702   :  { %v1630_v39 = vadd.f32 1.0, %v3765_v38 }
0x1703   :  { %3766 = vrcp.f32 %v1657_v42 }
0x1704   :  { %3768 = vrcp.f32 %v1630_v39 }
0x170d   :  { %v3767_v56 = vpop.eup %3766 }
0x170e   :  { %v3769_v59 = vpop.eup %3768  ;;  %v1661_v0 = vmul.f32 %v3767_v56, %v1530_v28 }
0x170f   :  { %v1637_v4 = vmul.f32 %v3769_v59, %v1635_v63 }
0x1771   :  { %v1664_v58 = vpop.permute.xlu1 %1663 }
0x1772   :  { %v1666_v60 = vmul.f32 %v3767_v56, %v1664_v58  ;;  %v1640_v61 = vpop.permute.xlu0 %1639 }
0x1773   :  { %v1642_v62 = vmul.f32 %v3769_v59, %v1640_v61 }
0x1774   :  { %1668 = vrot.lane.b32.xlu1 %v1666_v60, %s3866_s21 }
0x1775   :  { %1644 = vrot.lane.b32.xlu0 %v1642_v62, %s3866_s21 }
0x17e6   :  { %v1669_v13 = vpop.permute.xlu1 %1668 }
0x17e7   :  { %v1671_v6 = vadd.f32 %v1669_v13, %v1661_v0  ;;  %v1645_v57 = vpop.permute.xlu0 %1644 }
0x17e8   :  { %v1647_v9 = vadd.f32 %v1645_v57, %v1637_v4 }
0x17e9   :  { %3770 = vtanh.f32 %v1671_v6 }
0x17ea   :  { %3772 = vtanh.f32 %v1647_v9  ;;  %v1776_v38 = vrot.slane %v1647_v9, 6 }
0x17f3   :  { %v3771_v10 = vpop.eup %3770 }
0x17f4   :  { %v3773_v12 = vpop.eup %3772  ;;  %1674 = vrot.lane.b32.xlu1 %v3771_v10, %s3866_s21 }
0x17f5   :  { %1650 = vrot.lane.b32.xlu0 %v3773_v12, %s3866_s21 }
0x1866   :  { %v1675_v14 = vpop.permute.xlu1 %1674 }
0x1867   :  { %v4222_v15 = vmul.f32 %v3767_v56, %v1675_v14  ;;  %v1651_v19 = vpop.permute.xlu0 %1650 }
0x1868   :  { %v1653_v27 = vmul.f32 %v3769_v59, %v1651_v19 }
0x1869   :  { %v1683_v28 = vrot.slane %v4222_v15, 4  ;;  %v1934_v63 = vrot.slane %v4222_v15, 6 }
0x186a   :  { %1679 = vrot.lane.b32.xlu1 %v1653_v27, %s3869_s27 }
0x186b   :  { %1684 = vrot.lane.b32.xlu0 %v1683_v28, %s3870_s1  ;;  %v1944_v10 = vsel %vm295_vm2, %v4199_v33, %v1934_v63 }
0x18dc   :  { %v1680_v36 = vpop.permute.xlu1 %1679 }
0x18dd   :  { %v1685_v43 = vpop.permute.xlu0 %1684 }
0x18de   :  { %v1687_v29 = vsel %vm842_vm13, %v1680_v36, %v1685_v43 }
0x18df   :  { %v1689_v35 = vrot.slane %v1687_v29, 4 }
0x18e1   :  { %2790 = vmatmul.mubr.msk.f32.vlgmr.msra.gmra.mrb[14].mxu1 %vm318_vm5, %v1689_v35 }
0x19b4   :  { %v1758_v30 = vpop.f32.mrb[14].mxu1 }
0x19b5   :  { %v1765_v45 = vrot.slane %v1758_v30, 2  ;;  %v1760_v46 = vpop.f32.mrb[15].mxu1 }
0x19b6   :  { %v1763_v41 = vadd.f32 %v4085_v47, %v1760_v46 }
0x19b7   :  { %v1767_v44 = vadd.f32 %v1765_v45, %v4027_v55 }
0x19b8   :  { %3774 = vtanh.f32 %v1763_v41  ;;  %v2792_v50 = vmul.f32 -1.442695, %v1763_v41 }
0x19b9   :  { %3776 = vtanh.f32 %v1767_v44  ;;  %v2791_v53 = vmul.f32 -1.442695, %v1767_v44 }
0x19ba   :  { %3778 = vpow2.f32 %v2792_v50 }
0x19bb   :  { %3780 = vpow2.f32 %v2791_v53  ;;  %v1947_v53 = vld [vmem:[#allocation5 + $0x2cb] sm:$0xff] }
0x19c2   :  { %v3775_v40 = vpop.eup %3774 }
0x19c3   :  { %v3777_v48 = vpop.eup %3776  ;;  %1804 = vrot.lane.b32.xlu1 %v3775_v40, %s3866_s21 }
0x19c4   :  { %1780 = vrot.lane.b32.xlu0 %v3777_v48, %s3866_s21  ;;  %v3779_v49 = vpop.eup %3778 }
0x19c5   :  { %v3781_v8 = vpop.eup %3780  ;;  %v1798_v54 = vadd.f32 1.0, %v3779_v49  ;;  %v1948_v49 = vld [vmem:[#allocation5 + $0x2d3] sm:$0xff] }
0x19c6   :  { %v1771_v20 = vadd.f32 1.0, %v3781_v8  ;;  %v1949_v8 = vld [vmem:[#allocation5 + $0x2db] sm:$0xff] }
0x19c7   :  { %3782 = vrcp.f32 %v1798_v54  ;;  %v1950_v54 = vld [vmem:[#allocation5 + $0x2e3] sm:$0xff] }
0x19c8   :  { %3784 = vrcp.f32 %v1771_v20  ;;  %v3484_v20 = vpack.c.bf16 %v1950_v54, %v1949_v8  ;;  %v2072_v54 = vld [vmem:[#allocation5 + $0x364] sm:$0xff] }
0x19d1   :  { %v3783_v11 = vpop.eup %3782 }
0x19d2   :  { %v3785_v24 = vpop.eup %3784  ;;  %v1802_v42 = vmul.f32 %v3783_v11, %v1671_v6 }
0x19d3   :  { %v1778_v56 = vmul.f32 %v3785_v24, %v1776_v38  ;;  %v2076_v38 = vld [vmem:[#allocation5 + $0x384] sm:$0xff] }
0x1a35   :  { %v1805_v55 = vpop.permute.xlu1 %1804 }
0x1a36   :  { %v1807_v31 = vmul.f32 %v3783_v11, %v1805_v55  ;;  %v1781_v32 = vpop.permute.xlu0 %1780  ;;  %v2057_v55 = vld [vmem:[#allocation5 + $0x2ec] sm:$0xff] }
0x1a37   :  { %v1783_v37 = vmul.f32 %v3785_v24, %v1781_v32  ;;  %v2058_v32 = vld [vmem:[#allocation5 + $0x2f4] sm:$0xff] }
0x1a38   :  { %1809 = vrot.lane.b32.xlu1 %v1807_v31, %s3866_s21 }
0x1a39   :  { %1785 = vrot.lane.b32.xlu0 %v1783_v37, %s3866_s21  ;;  %v2075_v37 = vld [vmem:[#allocation5 + $0x37c] sm:$0xff] }
0x1aaa   :  { %v1810_v39 = vpop.permute.xlu1 %1809 }
0x1aab   :  { %v1812_v58 = vadd.f32 %v1810_v39, %v1802_v42  ;;  %v1786_v59 = vpop.permute.xlu0 %1785  ;;  %v3490_v42 = vpack.c.bf16 %v2058_v32, %v2057_v55  ;;  %v3492_v39 = vpack.c.bf16 %v2076_v38, %v2075_v37  ;;  %v2222_v32 = vld [vmem:[#allocation5 + $0x487] sm:$0xff] }
0x1aac   :  { %v1788_v60 = vadd.f32 %v1786_v59, %v1778_v56  ;;  %v2059_v56 = vld [vmem:[#allocation5 + $0x2fc] sm:$0xff]  ;;  %v2077_v59 = vld [vmem:[#allocation5 + $0x38c] sm:$0xff] }
0x1aad   :  { %3786 = vtanh.f32 %v1812_v58 }
0x1aae   :  { %3788 = vtanh.f32 %v1788_v60 }
0x1ab7   :  { %v3787_v61 = vpop.eup %3786 }
0x1ab8   :  { %v3789_v62 = vpop.eup %3788  ;;  %1815 = vrot.lane.b32.xlu1 %v3787_v61, %s3866_s21  ;;  %v2078_v61 = vld [vmem:[#allocation5 + $0x394] sm:$0xff] }
0x1ab9   :  { %1791 = vrot.lane.b32.xlu0 %v3789_v62, %s3866_s21 }
0x1b2a   :  { %v1816_v0 = vpop.permute.xlu1 %1815 }
0x1b2b   :  { %v1818_v13 = vmul.f32 %v3783_v11, %v1816_v0  ;;  %v1792_v4 = vpop.permute.xlu0 %1791  ;;  %v2074_v11 = vld [vmem:[#allocation5 + $0x374] sm:$0xff]  ;;  %v3496_v0 = vpack.c.bf16 %v2078_v61, %v2077_v59 }
0x1b2c   :  { %v1794_v57 = vmul.f32 %v3785_v24, %v1792_v4  ;;  %v2062_v4 = vld [vmem:[#allocation5 + $0x314] sm:$0xff] }
0x1b2d   :  { %v1824_v6 = vrot.slane %v1818_v13, 2  ;;  %v1936_v9 = vrot.slane %v1818_v13, 4  ;;  %v2061_v13 = vld [vmem:[#allocation5 + $0x30c] sm:$0xff] }
0x1b2e   :  { %1820 = vrot.lane.b32.xlu1 %v1794_v57, %s3869_s27  ;;  %v2079_v57 = vld [vmem:[#allocation5 + $0x39c] sm:$0xff]  ;;  %v2207_v61 = vld [vmem:[#allocation5 + $0x40f] sm:$0xff] }
0x1b2f   :  { %1825 = vrot.lane.b32.xlu0 %v1824_v6, %s3870_s1  ;;  %v1945_v12 = vsel %vm297_vm3, %v1944_v10, %v1936_v9  ;;  %v2080_v6 = vld [vmem:[#allocation5 + $0x3a4] sm:$0xff]  ;;  %v3498_v9 = vpack.c.bf16 %v2062_v4, %v2061_v13 }
0x1b30   :  { %v3500_v10 = vpack.c.bf16 %v2080_v6, %v2079_v57  ;;  %v2209_v57 = vld [vmem:[#allocation5 + $0x41f] sm:$0xff]  ;;  %v2210_v6 = vld [vmem:[#allocation5 + $0x427] sm:$0xff] }
0x1ba0   :  { %v1821_v14 = vpop.permute.xlu1 %1820 }
0x1ba1   :  { %v1826_v19 = vpop.permute.xlu0 %1825 }
0x1ba2   :  { %v1828_v27 = vsel %vm842_vm13, %v1821_v14, %v1826_v19  ;;  %v2063_v14 = vld [vmem:[#allocation5 + $0x31c] sm:$0xff]  ;;  %v2064_v19 = vld [vmem:[#allocation5 + $0x324] sm:$0xff] }
0x1ba3   :  { %v1830_v15 = vrot.slane %v1828_v27, 6  ;;  %v2081_v27 = vld [vmem:[#allocation5 + $0x3ac] sm:$0xff] }
0x1ba5   :  { %2793 = vmatmul.mubr.msk.f32.vlgmr.msra.gmra.mrb[12].mxu0 %vm318_vm5, %v1830_v15  ;;  %v2082_v15 = vld [vmem:[#allocation5 + $0x3b4] sm:$0xff] }
0x1c78   :  { %v1899_v28 = vpop.f32.mrb[12].mxu0 }
0x1c79   :  { %v1900_v36 = vpop.f32.mrb[13].mxu0  ;;  %v3504_v28 = vpack.c.bf16 %v2082_v15, %v2081_v27  ;;  %v2795_v27 = vld [vmem:[#allocation5 + $0x2eb] ss:$0 sm:$0xff] }
0x1c7a   :  { %v1903_v43 = vadd.f32 %v4085_v47, %v1900_v36  ;;  %v2065_v36 = vld [vmem:[#allocation5 + $0x32c] sm:$0xff] }
0x1c7c   :  { %3790 = vtanh.f32 %v1903_v43  ;;  %v2794_v33 = vmul.f32 -1.442695, %v1903_v43  ;;  %v2066_v43 = vld [vmem:[#allocation5 + $0x334] sm:$0xff] }
0x1c7e   :  { %3792 = vpow2.f32 %v2794_v33  ;;  %v2084_v33 = vld [vmem:[#allocation5 + $0x3c4] sm:$0xff] }
0x1c86   :  { %v3791_v29 = vpop.eup %3790 }
0x1c87   :  { %1913 = vrot.lane.b32.xlu1 %v3791_v29, %s3866_s21  ;;  %v2083_v29 = vld [vmem:[#allocation5 + $0x3bc] sm:$0xff] }
0x1c88   :  { %v3793_v35 = vpop.eup %3792 }
0x1c89   :  { %v1907_v30 = vadd.f32 1.0, %v3793_v35  ;;  %v3506_v35 = vpack.c.bf16 %v2066_v43, %v2065_v36 }
0x1c8b   :  { %3794 = vrcp.f32 %v1907_v30  ;;  %v3508_v30 = vpack.c.bf16 %v2084_v33, %v2083_v29 }
0x1c95   :  { %v3795_v45 = vpop.eup %3794 }
0x1c96   :  { %v1911_v47 = vmul.f32 %v3795_v45, %v1812_v58  ;;  %v2060_v58 = vld [vmem:[#allocation5 + $0x304] sm:$0xff] }
0x1c97   :  { %v3494_v62 = vpack.c.bf16 %v2060_v58, %v2059_v56  ;;  %v2223_v56 = vld [vmem:[#allocation5 + $0x48f] sm:$0xff]  ;;  %v2224_v58 = vld [vmem:[#allocation5 + $0x497] sm:$0xff] }
0x1cf9   :  { %v1914_v46 = vpop.permute.xlu1 %1913 }
0x1cfa   :  { %v1916_v41 = vmul.f32 %v3795_v45, %v1914_v46  ;;  %v2068_v46 = vld [vmem:[#allocation5 + $0x344] sm:$0xff] }
0x1cfc   :  { %1918 = vrot.lane.b32.xlu0 %v1916_v41, %s3866_s21 }
0x1d00   :  { %1958 = vrot.lane.b32.xlu0 %v4179_v34, %s3869_s27  ;;  %v3480_v34 = vpack.c.bf16 %v1948_v49, %v1947_v53  ;;  %v2087_v53 = vld [vmem:[#allocation5 + $0x3dc] sm:$0xff]  ;;  %v2088_v49 = vld [vmem:[#allocation5 + $0x3e4] sm:$0xff] }
0x1d01   :  { %v3516_v8 = vpack.c.bf16 %v2088_v49, %v2087_v53  ;;  %v2231_v49 = vld [vmem:[#allocation5 + $0x4cf] sm:$0xff] }
0x1d02   :  { %3481 = vmatprep.subr.bf16.mxu0 %v3480_v34 }
0x1d03   :  { %3483 = vmatpush3.bf16.msra.mxu0 %v3480_v34  ;;  %v2071_v34 = vld [vmem:[#allocation5 + $0x35c] sm:$0xff] }
0x1d04   :  { %2041 = vrot.lane.b32.xlu0 %v4018_v51, %s3869_s27  ;;  %3485 = vmatprep.subr.bf16.mxu0 %v3484_v20  ;;  %v2073_v51 = vld [vmem:[#allocation5 + $0x36c] sm:$0xff] }
0x1d05   :  { %v3488_v31 = vpack.c.bf16 %v2074_v11, %v2073_v51  ;;  %v2220_v51 = vld [vmem:[#allocation5 + $0x477] sm:$0xff]  ;;  %v2203_v11 = vld [vmem:[#allocation5 + $0x3ef] sm:$0xff] }
0x1d07   :  { %3487 = vmatpush3.bf16.msra.mxu0 %v3484_v20  ;;  %3489 = vmatprep.subr.bf16.mxu1 %v3488_v31  ;;  %v3518_v20 = vpack.c.bf16 %v2072_v54, %v2071_v34  ;;  %v2221_v31 = vld [vmem:[#allocation5 + $0x47f] sm:$0xff]  ;;  %v2215_v54 = vld [vmem:[#allocation5 + $0x44f] sm:$0xff] }
0x1d08   :  { %2187 = vrot.lane.b32.xlu0 %v4001_v1, %s3869_s27  ;;  %3491 = vmatpush3.bf16.msra.mxu1 %v3490_v42  ;;  %v3524_v38 = vpack.c.bf16 %v2222_v32, %v2221_v31  ;;  %v2205_v42 = vld [vmem:[#allocation5 + $0x3ff] sm:$0xff]  ;;  %v2357_v32 = vld [vmem:[#allocation5 + $0x572] sm:$0xff] }
0x1d09   :  { %3493 = vmatprep.subr.bf16.mxu1 %v3492_v39  ;;  %v2206_v39 = vld [vmem:[#allocation5 + $0x407] sm:$0xff] }
0x1d0a   :  { %v3526_v59 = vpack.c.bf16 %v2206_v39, %v2205_v42  ;;  %v2342_v39 = vld [vmem:[#allocation5 + $0x4fa] sm:$0xff] }
0x1d0c   :  { %3495 = vmatpush3.bf16.msra.mxu1 %v3494_v62  ;;  %v2208_v62 = vld [vmem:[#allocation5 + $0x417] sm:$0xff] }
0x1d0d   :  { %3497 = vmatprep.subr.bf16.mxu1 %v3496_v0  ;;  %v2226_v0 = vld [vmem:[#allocation5 + $0x4a7] sm:$0xff]  ;;  %v3530_v13 = vpack.c.bf16 %v2208_v62, %v2207_v61 }
0x1d0e   :  { %v2359_v61 = vld [vmem:[#allocation5 + $0x582] sm:$0xff]  ;;  %v2360_v62 = vld [vmem:[#allocation5 + $0x58a] sm:$0xff] }
0x1d10   :  { %3499 = vmatpush3.bf16.msra.mxu1 %v3498_v9  ;;  %v2227_v9 = vld [vmem:[#allocation5 + $0x4af] sm:$0xff] }
0x1d11   :  { %3501 = vmatprep.subr.bf16.mxu1 %v3500_v10  ;;  %v2228_v10 = vld [vmem:[#allocation5 + $0x4b7] sm:$0xff] }
0x1d6e   :  { %v1919_v44 = vpop.permute.xlu0 %1918 }
0x1d6f   :  { %v1921_v40 = vadd.f32 %v1919_v44, %v1911_v47  ;;  %v2085_v47 = vld [vmem:[#allocation5 + $0x3cc] sm:$0xff]  ;;  %v2086_v44 = vld [vmem:[#allocation5 + $0x3d4] sm:$0xff] }
0x1d71   :  { %3796 = vtanh.f32 %v1921_v40  ;;  %v3512_v40 = vpack.c.bf16 %v2086_v44, %v2085_v47  ;;  %v2229_v44 = vld [vmem:[#allocation5 + $0x4bf] sm:$0xff] }
0x1d72   :  { %v1959_v48 = vpop.permute.xlu0 %1958 }
0x1d73   :  { %3181 = vmatprep.mubr.msk.f32.mxu0 %vm842_vm13, %v1959_v48  ;;  %v2069_v48 = vld [vmem:[#allocation5 + $0x34c] sm:$0xff] }
0x1d76   :  { %v2042_v29 = vpop.permute.xlu0 %2041 }
0x1d7b   :  { %v3797_v50 = vpop.eup %3796 }
0x1d7c   :  { %1924 = vrot.lane.b32.xlu1 %v3797_v50, %s3866_s21 }
0x1dee   :  { %v1925_v1 = vpop.permute.xlu1 %1924 }
0x1def   :  { %v1927_v24 = vmul.f32 %v3795_v45, %v1925_v1  ;;  %v2067_v45 = vld [vmem:[#allocation5 + $0x33c] sm:$0xff]  ;;  %v2219_v1 = vld [vmem:[#allocation5 + $0x46f] sm:$0xff] }
0x1df0   :  { %v3520_v55 = vpack.c.bf16 %v2220_v51, %v2219_v1  ;;  %v2234_v51 = vld [vmem:[#allocation5 + $0x4e7] sm:$0xff] }
0x1df1   :  { %v1939_v60 = vrot.slane %v1927_v24, 2  ;;  %v2204_v24 = vld [vmem:[#allocation5 + $0x3f7] sm:$0xff] }
0x1df2   :  { %v3522_v37 = vpack.c.bf16 %v2204_v24, %v2203_v11  ;;  %3521 = vmatprep.subr.bf16.mxu0 %v3520_v55  ;;  %v2217_v55 = vld [vmem:[#allocation5 + $0x45f] sm:$0xff]  ;;  %v2218_v24 = vld [vmem:[#allocation5 + $0x467] sm:$0xff] }
0x1df3   :  { %v1946_v63 = vsel %vm299_vm4, %v1945_v12, %v1939_v60  ;;  %v3502_v12 = vpack.c.bf16 %v2064_v19, %v2063_v14  ;;  %v3528_v60 = vpack.c.bf16 %v2224_v58, %v2223_v56  ;;  %v3534_v14 = vpack.c.bf16 %v2210_v6, %v2209_v57  ;;  %v2389_v56 = vld [vmem:[#allocation5 + $0x672] sm:$0xff]  ;;  %v2390_v58 = vld [vmem:[#allocation5 + $0x67a] sm:$0xff] }
0x1df4   :  { %1960 = vrot.lane.b32.xlu1 %v1946_v63, %s3869_s27  ;;  %v2225_v63 = vld [vmem:[#allocation5 + $0x49f] sm:$0xff]  ;;  %v3536_v19 = vpack.c.bf16 %v2228_v10, %v2227_v9  ;;  %v3550_v31 = vpack.c.bf16 %v2218_v24, %v2217_v55  ;;  %v2361_v57 = vld [vmem:[#allocation5 + $0x592] sm:$0xff]  ;;  %v2188_v24 = vpop.permute.xlu0 %2187  ;;  %vm2628_vm4 = vcmask 785408  }
0x1df5   :  { %3503 = vmatpush3.bf16.msra.mxu1 %v3502_v12  ;;  %v3532_v4 = vpack.c.bf16 %v2226_v0, %v2225_v63  ;;  %v2343_v63 = vld [vmem:[#allocation5 + $0x502] sm:$0xff]  ;;  %v2344_v0 = vld [vmem:[#allocation5 + $0x50a] sm:$0xff]  ;;  %v2362_v6 = vld [vmem:[#allocation5 + $0x59a] sm:$0xff] }
0x1df6   :  { %3505 = vmatprep.subr.bf16.mxu1 %v3504_v28  ;;  %v3560_v9 = vpack.c.bf16 %v2362_v6, %v2361_v57  ;;  %v2345_v10 = vld [vmem:[#allocation5 + $0x512] sm:$0xff]  ;;  %v2374_v55 = vld [vmem:[#allocation5 + $0x5fa] sm:$0xff] }
0x1df8   :  { %2043 = vrot.lane.b32.xlu1 %v4020_v52, %s3869_s27  ;;  %v3510_v52 = vpack.c.bf16 %v2068_v46, %v2067_v45 }
0x1df9   :  { %3507 = vmatpush3.bf16.msra.mxu1 %v3506_v35 }
0x1dfa   :  { %3509 = vmatprep.subr.bf16.mxu1 %v3508_v30 }
0x1dfc   :  { %2189 = vrot.lane.b32.xlu1 %v4004_v16, %s3869_s27  ;;  %v2070_v16 = vld [vmem:[#allocation5 + $0x354] sm:$0xff] }
0x1dfd   :  { %3511 = vmatpush3.bf16.msra.mxu1 %v3510_v52  ;;  %v3514_v50 = vpack.c.bf16 %v2070_v16, %v2069_v48  ;;  %v2211_v52 = vld [vmem:[#allocation5 + $0x42f] sm:$0xff]  ;;  %v2213_v16 = vld [vmem:[#allocation5 + $0x43f] sm:$0xff] }
0x1dfe   :  { %3513 = vmatprep.subr.bf16.mxu1 %v3512_v40  ;;  %v2230_v40 = vld [vmem:[#allocation5 + $0x4c7] sm:$0xff] }
0x1dff   :  { %v3540_v48 = vpack.c.bf16 %v2230_v40, %v2229_v44  ;;  %v2164_v44 = vld [vmem:[#allocation5 + $0x3ec] sm:$0x7] }
0x1e01   :  { %3515 = vmatpush3.bf16.msra.mxu1 %v3514_v50  ;;  %v2214_v50 = vld [vmem:[#allocation5 + $0x447] sm:$0xff] }
0x1e02   :  { %3517 = vmatprep.subr.bf16.mxu1 %v3516_v8  ;;  %v3542_v53 = vpack.c.bf16 %v2214_v50, %v2213_v16  ;;  %v2232_v8 = vld [vmem:[#allocation5 + $0x4d7] sm:$0xff] }
0x1e03   :  { %v3544_v34 = vpack.c.bf16 %v2232_v8, %v2231_v49  ;;  %v2182_v8 = vrot.slane %v2164_v44, %v3971_v7 }
0x1e05   :  { %3519 = vmatpush3.bf16.msra.mxu1 %v3518_v20  ;;  %v2216_v20 = vld [vmem:[#allocation5 + $0x457] sm:$0xff] }
0x1e06   :  { %v3546_v1 = vpack.c.bf16 %v2216_v20, %v2215_v54 }
0x1e66   :  { %v1961_v41 = vpop.permute.xlu1 %1960 }
0x1e67   :  { %3182 = vmatmul.mubr.msk.f32.vlgmr.msra.gmra.mrb[14].mxu0 %vm842_vm13, %v1961_v41  ;;  %v2212_v41 = vld [vmem:[#allocation5 + $0x437] sm:$0xff] }
0x1e68   :  { %3523 = vmatpush3.bf16.msra.mxu0 %v3522_v37  ;;  %v3538_v47 = vpack.c.bf16 %v2212_v41, %v2211_v52  ;;  %v2358_v37 = vld [vmem:[#allocation5 + $0x57a] sm:$0xff]  ;;  %v2368_v52 = vld [vmem:[#allocation5 + $0x5ca] sm:$0xff] }
0x1e69   :  { %3525 = vmatprep.subr.bf16.mxu0 %v3524_v38  ;;  %v2341_v38 = vld [vmem:[#allocation5 + $0x4f2] sm:$0xff]  ;;  %v3552_v42 = vpack.c.bf16 %v2358_v37, %v2357_v32  ;;  %v2391_v37 = vld [vmem:[#allocation5 + $0x682] sm:$0xff] }
0x1e6a   :  { %v2044_v36 = vpop.permute.xlu1 %2043 }
0x1e6b   :  { %3553 = vmatprep.subr.bf16.mxu1 %v3552_v42 }
0x1e6c   :  { %3527 = vmatpush3.bf16.msra.mxu0 %v3526_v59  ;;  %v3554_v59 = vpack.c.bf16 %v2342_v39, %v2341_v38  ;;  %v2392_v38 = vld [vmem:[#allocation5 + $0x68a] sm:$0xff] }
0x1e6d   :  { %3529 = vmatprep.subr.bf16.mxu0 %v3528_v60  ;;  %v3584_v60 = vpack.c.bf16 %v2390_v58, %v2389_v56 }
0x1e70   :  { %3531 = vmatpush3.bf16.msra.mxu0 %v3530_v13  ;;  %v3556_v13 = vpack.c.bf16 %v2360_v62, %v2359_v61  ;;  %v2375_v62 = vld [vmem:[#allocation5 + $0x602] sm:$0xff] }
0x1e71   :  { %3533 = vmatprep.subr.bf16.mxu0 %v3532_v4  ;;  %v3558_v4 = vpack.c.bf16 %v2344_v0, %v2343_v63  ;;  %v2376_v63 = vld [vmem:[#allocation5 + $0x60a] sm:$0xff] }
0x1e72   :  { %v3590_v6 = vpack.c.bf16 %v2376_v63, %v2375_v62  ;;  %v2388_v62 = vld [vmem:[#allocation5 + $0x66a] sm:$0xff] }
0x1e74   :  { %3535 = vmatpush3.bf16.msra.mxu0 %v3534_v14  ;;  %v2346_v14 = vld [vmem:[#allocation5 + $0x51a] sm:$0xff] }
0x1e75   :  { %3537 = vmatprep.subr.bf16.mxu0 %v3536_v19  ;;  %v3562_v19 = vpack.c.bf16 %v2346_v14, %v2345_v10  ;;  %v2377_v14 = vld [vmem:[#allocation5 + $0x612] sm:$0xff] }
0x1e78   :  { %3539 = vmatpush3.bf16.msra.mxu0 %v3538_v47 }
0x1e79   :  { %3541 = vmatprep.subr.bf16.mxu0 %v3540_v48  ;;  %v2168_v48 = vrot.slane %v2164_v44, %v3964_v3 }
0x1e7c   :  { %3543 = vmatpush3.bf16.msra.mxu0 %v3542_v53  ;;  %v2174_v53 = vrot.slane %v2164_v44, %v3967_v5  ;;  %v2399_v44 = vld [vmem:[#allocation5 + $0x6c2] sm:$0xff] }
0x1e7d   :  { %3545 = vmatprep.subr.bf16.mxu0 %v3544_v34 }
0x1e80   :  { %3547 = vmatpush3.bf16.msra.mxu0 %v3546_v1 }
0x1f3a   :  { %v3183_v15 = vpop.f32.mrb[14].mxu0 }
0x1f3b   :  { %v2038_v12 = vadd.f32 %v3183_v15, %v2795_v27  ;;  %v2032_v28 = vpop.f32.mrb[15].mxu0  ;;  %v2364_v15 = vld [vmem:[#allocation5 + $0x5aa] sm:$0xff] }
0x1f3c   :  { %v2033_v43 = vadd.f32 %v2795_v27, %v2032_v28  ;;  %v2363_v27 = vld [vmem:[#allocation5 + $0x5a2] sm:$0xff] }
0x1f3d   :  { %v2048_v33 = vsel %vm318_vm5, %v2038_v12, %v2044_v36  ;;  %v3564_v12 = vpack.c.bf16 %v2364_v15, %v2363_v27  ;;  %v2347_v28 = vld [vmem:[#allocation5 + $0x522] sm:$0xff]  ;;  %v2348_v36 = vld [vmem:[#allocation5 + $0x52a] sm:$0xff] }
0x1f3e   :  { %v2052_v35 = vrot.slane %v2048_v33, 6  ;;  %v2047_v30 = vsel %vm318_vm5, %v2033_v43, %v2042_v29  ;;  %v2365_v43 = vld [vmem:[#allocation5 + $0x5b2] sm:$0xff]  ;;  %v2366_v29 = vld [vmem:[#allocation5 + $0x5ba] sm:$0xff]  ;;  %v2395_v27 = vld [vmem:[#allocation5 + $0x6a2] sm:$0xff] }
0x1f3f   :  { %v2051_v45 = vrot.slane %v2047_v30, 6  ;;  %v2396_v15 = vld [vmem:[#allocation5 + $0x6aa] sm:$0xff] }
0x1f41   :  { %2799 = vmatprep.mubr.msk.f32.mxu1 %vm3980_vm8, %v2051_v45  ;;  %v2053_v46 = vsel %vm295_vm2, %v2051_v45, %v2052_v35  ;;  %v3568_v35 = vpack.c.bf16 %v2366_v29, %v2365_v43  ;;  %v2350_v45 = vld [vmem:[#allocation5 + $0x53a] sm:$0xff]  ;;  %v2380_v43 = vld [vmem:[#allocation5 + $0x62a] sm:$0xff]  ;;  %v2397_v29 = vld [vmem:[#allocation5 + $0x6b2] sm:$0xff] }
0x1f42   :  { %2154 = vmatmul.mubr.f32.vlgmr.msra.gmra.mrb[16].mxu1 %v2047_v30  ;;  %v2349_v30 = vld [vmem:[#allocation5 + $0x532] sm:$0xff] }
0x1f43   :  { %2158 = vmatprep.mubr.f32.mxu1 %v2053_v46  ;;  %3555 = vmatpush3.bf16.msra.mxu1 %v3554_v59  ;;  %v2367_v46 = vld [vmem:[#allocation5 + $0x5c2] sm:$0xff]  ;;  %v3570_v41 = vpack.c.bf16 %v2350_v45, %v2349_v30  ;;  %v3588_v59 = vpack.c.bf16 %v2392_v38, %v2391_v37  ;;  %v2381_v45 = vld [vmem:[#allocation5 + $0x632] sm:$0xff]  ;;  %v2372_v37 = vld [vmem:[#allocation5 + $0x5ea] sm:$0xff] }
0x1f44   :  { %3557 = vmatprep.subr.bf16.mxu1 %v3556_v13  ;;  %v3572_v47 = vpack.c.bf16 %v2368_v52, %v2367_v46  ;;  %v2393_v13 = vld [vmem:[#allocation5 + $0x692] sm:$0xff]  ;;  %v2382_v46 = vld [vmem:[#allocation5 + $0x63a] sm:$0xff] }
0x1f45   :  { %v3602_v52 = vpack.c.bf16 %v2382_v46, %v2381_v45 }
0x1f46   :  { %2159 = vmatmul.mubr.f32.gmra.mrb[18].mxu1 %v2048_v33  ;;  %v3566_v33 = vpack.c.bf16 %v2348_v36, %v2347_v28  ;;  %v3596_v28 = vpack.c.bf16 %v2396_v15, %v2395_v27  ;;  %v2379_v36 = vld [vmem:[#allocation5 + $0x622] sm:$0xff] }
0x1f47   :  { %2469 = vmatprep.mubr.f32.mxu1 %v3977_v22  ;;  %v2233_v22 = vld [vmem:[#allocation5 + $0x4df] sm:$0xff]  ;;  %3559 = vmatpush3.bf16.msra.mxu1 %v3558_v4 }
0x1f48   :  { %v3548_v11 = vpack.c.bf16 %v2234_v51, %v2233_v22  ;;  %3561 = vmatprep.subr.bf16.mxu1 %v3560_v9  ;;  %v2394_v4 = vld [vmem:[#allocation5 + $0x69a] sm:$0xff] }
0x1f49   :  { %v3592_v10 = vpack.c.bf16 %v2394_v4, %v2393_v13 }
0x1f4a   :  { %3549 = vmatprep.subr.bf16.mxu0 %v3548_v11  ;;  %v2373_v11 = vld [vmem:[#allocation5 + $0x5f2] sm:$0xff] }
0x1f4b   :  { %3551 = vmatpush3.bf16.msra.mxu0 %v3550_v31  ;;  %3563 = vmatpush3.bf16.msra.mxu1 %v3562_v19  ;;  %v3586_v58 = vpack.c.bf16 %v2374_v55, %v2373_v11  ;;  %v2378_v19 = vld [vmem:[#allocation5 + $0x61a] sm:$0xff]  ;;  %v2385_v55 = vld [vmem:[#allocation5 + $0x652] sm:$0xff] }
0x1f4c   :  { %3585 = vmatprep.subr.bf16.mxu0 %v3584_v60  ;;  %3565 = vmatprep.subr.bf16.mxu1 %v3564_v12  ;;  %v2190_v60 = vpop.permute.xlu1 %2189  ;;  %v3594_v12 = vpack.c.bf16 %v2378_v19, %v2377_v14 }
0x1f4f   :  { %3567 = vmatpush3.bf16.msra.mxu1 %v3566_v33  ;;  %v2398_v33 = vld [vmem:[#allocation5 + $0x6ba] sm:$0xff] }
0x1f50   :  { %3569 = vmatprep.subr.bf16.mxu1 %v3568_v35  ;;  %v3598_v35 = vpack.c.bf16 %v2380_v43, %v2379_v36  ;;  %v3600_v30 = vpack.c.bf16 %v2398_v33, %v2397_v29 }
0x1f53   :  { %3571 = vmatpush3.bf16.msra.mxu1 %v3570_v41  ;;  %v2351_v41 = vld [vmem:[#allocation5 + $0x542] sm:$0xff] }
0x1f54   :  { %3573 = vmatprep.subr.bf16.mxu1 %v3572_v47 }
0x2015   :  { %v2929_v40 = vpop.f32.mrb[16].mxu1 }
0x2016   :  { %v2930_v16 = vpop.f32.mrb[17].mxu1 }
0x2017   :  { %v2931_v50 = vadd.f32 %v2930_v16, %v2929_v40  ;;  %v2400_v40 = vld [vmem:[#allocation5 + $0x6ca] sm:$0xff]  ;;  %v2383_v16 = vld [vmem:[#allocation5 + $0x642] sm:$0xff] }
0x2019   :  { %v2169_v49 = vmul.f32 %v2931_v50, %v2168_v48  ;;  %v2932_v34 = vpop.f32.mrb[18].mxu1  ;;  %v2384_v50 = vld [vmem:[#allocation5 + $0x64a] sm:$0xff] }
0x201a   :  { %v2933_v54 = vpop.f32.mrb[19].mxu1 }
0x201b   :  { %v2175_v20 = vadd.f32 %v2174_v53, %v2169_v49  ;;  %v2934_v1 = vadd.f32 %v2933_v54, %v2932_v34  ;;  %v2369_v49 = vld [vmem:[#allocation5 + $0x5d2] sm:$0xff] }
0x201c   :  { %v2353_v54 = vld [vmem:[#allocation5 + $0x552] sm:$0xff] }
0x201d   :  { %vm2177_vm14 = vcmp.ge.f32.partialorder %v2175_v20, 0.0  ;;  %v2183_v22 = vmul.f32 %v2182_v8, %v2175_v20  ;;  %v2170_v51 = vmul.f32 %v2934_v1, %v2168_v48  ;;  %v3604_v48 = vpack.c.bf16 %v2400_v40, %v2399_v44 }
0x201f   :  { %v2185_v31 = vsel %vm2177_vm14, %v2175_v20, %v2183_v22  ;;  %v2176_v32 = vadd.f32 %v2174_v53, %v2170_v51  ;;  %v3606_v53 = vpack.c.bf16 %v2384_v50, %v2383_v16  ;;  %v2354_v20 = vld [vmem:[#allocation5 + $0x55a] sm:$0xff]  ;;  %v2401_v22 = vld [vmem:[#allocation5 + $0x6d2] sm:$0xff] }
0x2020   :  { %v2193_v42 = vsel %vm318_vm5, %v2185_v31, %v2188_v24  ;;  %v3578_v1 = vpack.c.bf16 %v2354_v20, %v2353_v54  ;;  %v2402_v51 = vld [vmem:[#allocation5 + $0x6da] sm:$0xff] }
0x2021   :  { %vm2178_vm15 = vcmp.ge.f32.partialorder %v2176_v32, 0.0  ;;  %v2184_v39 = vmul.f32 %v2182_v8, %v2176_v32  ;;  %v2197_v56 = vrot.slane %v2193_v42, 6  ;;  %v2370_v8 = vld [vmem:[#allocation5 + $0x5da] sm:$0xff]  ;;  %v3608_v11 = vpack.c.bf16 %v2402_v51, %v2401_v22 }
0x2022   :  { %v3576_v34 = vpack.c.bf16 %v2370_v8, %v2369_v49  ;;  %v2386_v24 = vld [vmem:[#allocation5 + $0x65a] sm:$0xff] }
0x2023   :  { %v2186_v61 = vsel %vm2178_vm15, %v2176_v32, %v2184_v39  ;;  %2801 = vmatprep.mubr.msk.f32.mxu0 %vm3980_vm8, %v2197_v56  ;;  %v3610_v31 = vpack.c.bf16 %v2386_v24, %v2385_v55  ;;  %v2371_v32 = vld [vmem:[#allocation5 + $0x5e2] sm:$0xff]  ;;  %v2356_v39 = vld [vmem:[#allocation5 + $0x56a] sm:$0xff] }
0x2024   :  { %2300 = vmatmul.mubr.f32.vlgmr.msra.gmra.mrb[16].mxu0 %v2193_v42  ;;  %v2194_v0 = vsel %vm318_vm5, %v2186_v61, %v2190_v60  ;;  %v3580_v38 = vpack.c.bf16 %v2372_v37, %v2371_v32  ;;  %v2355_v42 = vld [vmem:[#allocation5 + $0x562] sm:$0xff]  ;;  %v2633_v32 = vld [vmem:[#allocation5 + $0x6f5] sm:$0xff] }
0x2025   :  { %v2198_v57 = vrot.slane %v2194_v0, 6  ;;  %3587 = vmatpush3.bf16.msra.mxu0 %v3586_v58  ;;  %v2403_v58 = vld [vmem:[#allocation5 + $0x6e2] sm:$0xff] }
0x2026   :  { %3589 = vmatprep.subr.bf16.mxu0 %v3588_v59  ;;  %v2404_v59 = vld [vmem:[#allocation5 + $0x6ea] sm:$0xff]  ;;  %v2387_v61 = vld [vmem:[#allocation5 + $0x662] sm:$0xff] }
0x2027   :  { %v2199_v9 = vsel %vm295_vm2, %v2197_v56, %v2198_v57  ;;  %v3582_v56 = vpack.c.bf16 %v2356_v39, %v2355_v42  ;;  %v3612_v60 = vpack.c.bf16 %v2404_v59, %v2403_v58  ;;  %v3614_v63 = vpack.c.bf16 %v2388_v62, %v2387_v61  ;;  %v2651_v42 = vld [vmem:[#allocation5 + $0x785] sm:$0xff]  ;;  %v2652_v39 = vld [vmem:[#allocation5 + $0x78d] sm:$0xff]  ;;  %v2653_v61 = vld [vmem:[#allocation5 + $0x795] sm:$0xff] }
0x2028   :  { %2304 = vmatprep.mubr.f32.mxu0 %v2199_v9  ;;  %v3620_v58 = vpack.c.bf16 %v2652_v39, %v2651_v42  ;;  %v2635_v59 = vld [vmem:[#allocation5 + $0x705] sm:$0xff]  ;;  %v2654_v62 = vld [vmem:[#allocation5 + $0x79d] sm:$0xff] }
0x2029   :  { %2305 = vmatmul.mubr.f32.gmra.mrb[18].mxu0 %v2194_v0  ;;  %v2310_v0 = vld [vmem:[#allocation5 + $0x4ef] sm:$0x7] }
0x202a   :  { %2803 = vmatprep.mubr.msk.f32.mxu0 %vm3980_vm8, %v3986_v25  ;;  %3591 = vmatpush3.bf16.msra.mxu0 %v3590_v6  ;;  %v2352_v25 = vld [vmem:[#allocation5 + $0x54a] sm:$0xff]  ;;  %v2314_v4 = vrot.slane %v2310_v0, %v3964_v3  ;;  %v2320_v9 = vrot.slane %v2310_v0, %v3967_v5  ;;  %v2328_v14 = vrot.slane %v2310_v0, %v3971_v7 }
0x202b   :  { %3593 = vmatprep.subr.bf16.mxu0 %v3592_v10  ;;  %v3574_v47 = vpack.c.bf16 %v2352_v25, %v2351_v41  ;;  %v2555_v25 = vld [vmem:[#allocation5 + $0x6f2] sm:$0x7]  ;;  %v3624_v0 = vpack.c.bf16 %v2654_v62, %v2653_v61 }
0x202c   :  { %v2559_v23 = vrot.slane %v2555_v25, %v3964_v3 }
0x202d   :  { %3575 = vmatpush3.bf16.msra.mxu1 %v3574_v47 }
0x202e   :  { %3595 = vmatpush3.bf16.msra.mxu0 %v3594_v12  ;;  %3577 = vmatprep.subr.bf16.mxu1 %v3576_v34  ;;  %v2573_v34 = vrot.slane %v2555_v25, %v3971_v7  ;;  %v2649_v7 = vld [vmem:[#allocation5 + $0x775] sm:$0xff] }
0x202f   :  { %3597 = vmatprep.subr.bf16.mxu0 %v3596_v28 }
0x2031   :  { %3579 = vmatpush3.bf16.msra.mxu1 %v3578_v1 }
0x2032   :  { %3599 = vmatpush3.bf16.msra.mxu0 %v3598_v35  ;;  %3581 = vmatprep.subr.bf16.mxu1 %v3580_v38  ;;  %v2634_v38 = vld [vmem:[#allocation5 + $0x6fd] sm:$0xff] }
0x2033   :  { %3601 = vmatprep.subr.bf16.mxu0 %v3600_v30 }
0x2035   :  { %3583 = vmatpush3.bf16.msra.mxu1 %v3582_v56  ;;  %v3618_v56 = vpack.c.bf16 %v2634_v38, %v2633_v32 }
0x2036   :  { %3603 = vmatpush3.bf16.msra.mxu0 %v3602_v52 }
0x2037   :  { %3605 = vmatprep.subr.bf16.mxu0 %v3604_v48 }
0x203a   :  { %3607 = vmatpush3.bf16.msra.mxu0 %v3606_v53 }
0x203b   :  { %3609 = vmatprep.subr.bf16.mxu0 %v3608_v11 }
0x203e   :  { %3611 = vmatpush3.bf16.msra.mxu0 %v3610_v31  ;;  %v2650_v31 = vld [vmem:[#allocation5 + $0x77d] sm:$0xff] }
0x203f   :  { %3613 = vmatprep.subr.bf16.mxu0 %v3612_v60  ;;  %v3616_v37 = vpack.c.bf16 %v2650_v31, %v2649_v7  ;;  %v2636_v60 = vld [vmem:[#allocation5 + $0x70d] sm:$0xff] }
0x2041   :  { %3617 = vmatprep.subr.bf16.mxu1 %v3616_v37 }
0x2042   :  { %3615 = vmatpush3.bf16.msra.mxu0 %v3614_v63  ;;  %v3622_v63 = vpack.c.bf16 %v2636_v60, %v2635_v59 }
0x20f7   :  { %v2967_v13 = vpop.f32.mrb[16].mxu0 }
0x20f8   :  { %v2968_v57 = vpop.f32.mrb[17].mxu0 }
0x20f9   :  { %v2969_v6 = vadd.f32 %v2968_v57, %v2967_v13  ;;  %v2637_v13 = vld [vmem:[#allocation5 + $0x715] sm:$0xff]  ;;  %v2655_v57 = vld [vmem:[#allocation5 + $0x7a5] sm:$0xff] }
0x20fb   :  { %v2315_v10 = vmul.f32 %v2969_v6, %v2314_v4  ;;  %v2656_v6 = vld [vmem:[#allocation5 + $0x7ad] sm:$0xff] }
0x20fc   :  { %v2970_v19 = vpop.f32.mrb[18].mxu0 }
0x20fd   :  { %v2321_v27 = vadd.f32 %v2320_v9, %v2315_v10  ;;  %v2971_v15 = vpop.f32.mrb[19].mxu0  ;;  %v3628_v10 = vpack.c.bf16 %v2656_v6, %v2655_v57 }
0x20fe   :  { %v2972_v12 = vadd.f32 %v2971_v15, %v2970_v19  ;;  %v2640_v19 = vld [vmem:[#allocation5 + $0x72d] sm:$0xff]  ;;  %v2657_v15 = vld [vmem:[#allocation5 + $0x7b5] sm:$0xff] }
0x20ff   :  { %v2329_v28 = vmul.f32 %v2328_v14, %v2321_v27  ;;  %vm2323_vm0 = vcmp.ge.f32.partialorder %v2321_v27, 0.0 }
0x2100   :  { %v2316_v36 = vmul.f32 %v2972_v12, %v2314_v4  ;;  %v2638_v4 = vld [vmem:[#allocation5 + $0x71d] sm:$0xff] }
0x2101   :  { %v2331_v43 = vsel %vm2323_vm0, %v2321_v27, %v2329_v28  ;;  %v2658_v12 = vld [vmem:[#allocation5 + $0x7bd] sm:$0xff] }
0x2102   :  { %v2322_v29 = vadd.f32 %v2320_v9, %v2316_v36  ;;  %v2335_v33 = vrot.slane %v2331_v43, 6  ;;  %2470 = vmatmul.mubr.f32.vlgmr.msra.gmra.mrb[20].mxu1 %v2331_v43  ;;  %v3626_v9 = vpack.c.bf16 %v2638_v4, %v2637_v13  ;;  %v3632_v28 = vpack.c.bf16 %v2658_v12, %v2657_v15  ;;  %v2641_v36 = vld [vmem:[#allocation5 + $0x735] sm:$0xff]  ;;  %v2642_v43 = vld [vmem:[#allocation5 + $0x73d] sm:$0xff] }
0x2103   :  { %2474 = vmatprep.mubr.f32.mxu1 %v3975_v21  ;;  %3619 = vmatpush3.bf16.msra.mxu1 %v3618_v56  ;;  %v3871_v4 = vmov 1983009808  }
0x2104   :  { %2805 = vmatmul.mubr.msk.f32.vlgmr.msra.gmra.mrb[20].mxu0 %vm3980_vm8, %v2335_v33  ;;  %vm2324_vm1 = vcmp.ge.f32.partialorder %v2322_v29, 0.0  ;;  %v2330_v35 = vmul.f32 %v2328_v14, %v2322_v29  ;;  %3621 = vmatprep.subr.bf16.mxu1 %v3620_v58  ;;  %v2639_v14 = vld [vmem:[#allocation5 + $0x725] sm:$0xff]  ;;  %v2740_v57 = vunpack.c.l.s4 %v3871_v4 }
0x2105   :  { %2549 = vmatprep.mubr.f32.mxu0 %v3993_v26  ;;  %v2565_v26 = vrot.slane %v2555_v25, %v3967_v5  ;;  %v3630_v27 = vpack.c.bf16 %v2640_v19, %v2639_v14  ;;  %v2662_v25 = vld [vmem:[#allocation5 + $0x7dd] sm:$0xff] }
0x2106   :  { %v2332_v30 = vsel %vm2324_vm1, %v2322_v29, %v2330_v35  ;;  %v3634_v29 = vpack.c.bf16 %v2642_v43, %v2641_v36  ;;  %v2660_v35 = vld [vmem:[#allocation5 + $0x7cd] sm:$0xff]  ;;  %v2741_v6 = vunpack.c.0.s8 %v2740_v57 }
0x2107   :  { %v2336_v45 = vrot.slane %v2332_v30, 6  ;;  %2475 = vmatmul.mubr.f32.gmra.mrb[22].mxu1 %v2332_v30 }
0x2108   :  { %3623 = vmatpush3.bf16.msra.mxu1 %v3622_v63 }
0x2109   :  { %v2337_v46 = vsel %vm295_vm2, %v2335_v33, %v2336_v45  ;;  %3625 = vmatprep.subr.bf16.mxu1 %v3624_v0  ;;  %v2659_v33 = vld [vmem:[#allocation5 + $0x7c5] sm:$0xff] }
0x210a   :  { %2550 = vmatmul.mubr.f32.gmra.mrb[22].mxu0 %v2337_v46  ;;  %v3636_v30 = vpack.c.bf16 %v2660_v35, %v2659_v33  ;;  %v2643_v45 = vld [vmem:[#allocation5 + $0x745] sm:$0xff]  ;;  %v2644_v46 = vld [vmem:[#allocation5 + $0x74d] sm:$0xff] }
0x210c   :  { %3627 = vmatpush3.bf16.msra.mxu1 %v3626_v9 }
0x210d   :  { %3629 = vmatprep.subr.bf16.mxu1 %v3628_v10  ;;  %v2744_v10 = vsub.s32 %v2741_v6, %v3961_v2 }
0x2110   :  { %3631 = vmatpush3.bf16.msra.mxu1 %v3630_v27 }
0x2111   :  { %3633 = vmatprep.subr.bf16.mxu1 %v3632_v28 }
0x2114   :  { %3635 = vmatpush3.bf16.msra.mxu1 %v3634_v29 }
0x2115   :  { %3637 = vmatprep.subr.bf16.mxu1 %v3636_v30 }
0x21d5   :  { %v3005_v52 = vpop.f32.mrb[20].mxu1 }
0x21d6   :  { %v3006_v41 = vpop.f32.mrb[21].mxu1 }
0x21d7   :  { %v3007_v47 = vadd.f32 %v3006_v41, %v3005_v52  ;;  %v3043_v44 = vpop.f32.mrb[20].mxu0  ;;  %v3638_v52 = vpack.c.bf16 %v2644_v46, %v2643_v45  ;;  %v2661_v41 = vld [vmem:[#allocation5 + $0x7d5] sm:$0xff] }
0x21d8   :  { %v3044_v40 = vpop.f32.mrb[21].mxu0 }
0x21d9   :  { %v3045_v21 = vadd.f32 %v3044_v40, %v3043_v44  ;;  %3639 = vmatpush3.bf16.msra.mxu1 %v3638_v52  ;;  %v2590_v44 = vstv %s4301_s0 }
0x21da   :  { %v3008_v48 = vpop.f32.mrb[22].mxu1 }
0x21db   :  { %v2547_v16 = vadd.f32 %v3045_v21, %v3007_v47  ;;  %v3009_v50 = vpop.f32.mrb[23].mxu1  ;;  %v2593_v47 = vstv %s4299_s28  ;;  %v3640_v21 = vpack.c.bf16 %v2662_v25, %v2661_v41 }
0x21dc   :  { %v3010_v53 = vadd.f32 %v3009_v50, %v3008_v48  ;;  %v2646_v48 = vld [vmem:[#allocation5 + $0x75d] sm:$0xff] }
0x21dd   :  { %v2560_v49 = vmul.f32 %v2559_v23, %v2547_v16  ;;  %v3046_v8 = vpop.f32.mrb[22].mxu0  ;;  %3641 = vmatprep.subr.bf16.mxu1 %v3640_v21 }
0x21de   :  { %v3047_v54 = vpop.f32.mrb[23].mxu0 }
0x21df   :  { %v3048_v20 = vadd.f32 %v3047_v54, %v3046_v8  ;;  %v2566_v1 = vadd.f32 %v2565_v26, %v2560_v49  ;;  %v2663_v49 = vld [vmem:[#allocation5 + $0x7e5] sm:$0xff]  ;;  %v2664_v8 = vld [vmem:[#allocation5 + $0x7ed] sm:$0xff] }
0x21e0   :  { %v2647_v54 = vld [vmem:[#allocation5 + $0x765] sm:$0xff] }
0x21e1   :  { %v2552_v22 = vadd.f32 %v3048_v20, %v3010_v53  ;;  %vm2568_vm2 = vcmp.ge.f32.partialorder %v2566_v1, 0.0  ;;  %v2574_v51 = vmul.f32 %v2573_v34, %v2566_v1  ;;  %v2648_v20 = vld [vmem:[#allocation5 + $0x76d] sm:$0xff] }
0x21e3   :  { %v2561_v11 = vmul.f32 %v2559_v23, %v2552_v22  ;;  %v4291_v55 = vsel %vm2568_vm2, %v2566_v1, %v2574_v51  ;;  %v2645_v23 = vld [vmem:[#allocation5 + $0x755] sm:$0xff]  ;;  %v3646_v22 = vpack.c.bf16 %v2648_v20, %v2647_v54 }
0x21e4   :  { %2582 = vrot.lane.b32.xlu1 %v4291_v55, %s3866_s21  ;;  %v3642_v50 = vpack.c.bf16 %v2646_v48, %v2645_v23 }
0x21e5   :  { %v2567_v3 = vadd.f32 %v2565_v26, %v2561_v11  ;;  %v2594_v26 = vmul.f32 %v2593_v47, %v4291_v55 }
0x21e6   :  { %3643 = vmatpush3.bf16.msra.mxu1 %v3642_v50 }
0x21e7   :  { %vm2569_vm3 = vcmp.ge.f32.partialorder %v2567_v3, 0.0  ;;  %v2575_v5 = vmul.f32 %v2573_v34, %v2567_v3  ;;  %v3644_v34 = vpack.c.bf16 %v2664_v8, %v2663_v49 }
0x21e9   :  { %v4295_v24 = vsel %vm2569_vm3, %v2567_v3, %v2575_v5  ;;  %3645 = vmatprep.subr.bf16.mxu1 %v3644_v34 }
0x21ea   :  { %2584 = vrot.lane.b32.xlu0 %v4295_v24, %s3866_s21  ;;  %3647 = vmatpush3.bf16.msra.mxu1 %v3646_v22 }
0x2256   :  { %v2583_v40 = vpop.permute.xlu1 %2582 }
0x2257   :  { %v2588_v16 = vsub.f32 %v3950_v18, %v2583_v40  ;;  %v2595_v18 = vmul.f32 %v2593_v47, %v4295_v24 }
0x2259   :  { %v2591_v53 = vmul.f32 %v2590_v44, %v2588_v16 }
0x225b   :  { %v2596_v1 = vadd.f32 %v2594_v26, %v2591_v53 }
0x225c   :  { %v2585_v51 = vpop.permute.xlu0 %2584 }
0x225d   :  { %v2589_v11 = vsub.f32 %v3947_v17, %v2585_v51  ;;  %2599 = vrot.lane.b32.xlu1 %v2596_v1, %s3870_s1  ;;  %v2604_v55 = vrot.slane %v2596_v1, 4  ;;  %v2608_v7 = vrot.slane %v2596_v1, 6  ;;  %v2602_v42 = vrot.slane %v2596_v1, 2 }
0x225f   :  { %v2592_v3 = vmul.f32 %v2590_v44, %v2589_v11 }
0x2261   :  { %v2597_v5 = vadd.f32 %v2595_v18, %v2592_v3  ;;  %2605 = vrot.lane.b32.xlu1 %v2604_v55, %s3866_s21 }
0x2263   :  { %2613 = vrot.lane.b32.xlu0 %v2597_v5, %s3870_s1  ;;  %v2618_v31 = vrot.slane %v2597_v5, 4  ;;  %v2622_v32 = vrot.slane %v2597_v5, 6  ;;  %v2616_v39 = vrot.slane %v2597_v5, 2 }
0x2265   :  { %2609 = vrot.lane.b32.xlu1 %v2608_v7, %s3869_s27 }
0x2267   :  { %2619 = vrot.lane.b32.xlu0 %v2618_v31, %s3866_s21 }
0x226b   :  { %2623 = vrot.lane.b32.xlu0 %v2622_v32, %s3869_s27 }
0x22cf   :  { %v2600_v17 = vpop.permute.xlu1 %2599 }
0x22d0   :  { %v2626_v58 = vsel %vm842_vm13, %v2600_v17, %v2602_v42 }
0x22d3   :  { %v2606_v37 = vpop.permute.xlu1 %2605 }
0x22d4   :  { %v2627_v60 = vsel %vm318_vm5, %v2626_v58, %v2606_v37 }
0x22d5   :  { %v2614_v38 = vpop.permute.xlu0 %2613 }
0x22d6   :  { %v2630_v59 = vsel %vm842_vm13, %v2614_v38, %v2616_v39 }
0x22d7   :  { %v2610_v56 = vpop.permute.xlu1 %2609 }
0x22d8   :  { %v2629_v63 = vsel %vm2628_vm4, %v2627_v60, %v2610_v56 }
0x22d9   :  { %v2620_v24 = vpop.permute.xlu0 %2619 }
0x22da   :  { %v2631_v61 = vsel %vm318_vm5, %v2630_v59, %v2620_v24 }
0x22dd   :  { %v2624_v62 = vpop.permute.xlu0 %2623 }
0x22de   :  { %v2632_v0 = vsel %vm2628_vm4, %v2631_v61, %v2624_v62 }
0x22df   :  { %2729 = vmatprep.mubr.f32.mxu1 %v2632_v0  ;;  %v2738_v13 = vcombine.low %v2629_v63, %v2632_v0 }
0x22e0   :  { %2730 = vmatmul.mubr.f32.vlgmr.msra.gmra.mrb[24].mxu1 %v2629_v63 }
0x22e1   :  { %v2745_v27 = vrot.slane %v2738_v13, %v2744_v10 }
0x23b3   :  { %v3081_v9 = vpop.f32.mrb[24].mxu1 }
0x23b4   :  { %v3082_v14 = vpop.f32.mrb[25].mxu1 }
0x23b5   :  { %v3083_v19 = vadd.f32 %v3082_v14, %v3081_v9 }
0x23b7   :  { %v2752_v15 = vrot.slane %v3083_v19, %v2744_v10 }
0x23b9   :  { %v2753_v12 = vcombine.low %v2745_v27, %v2752_v15 }
0x23bb   :  { %2755 = vst [vmem:[%s4328_s5] sm:$0x3f] %v2753_v12 }
0x23bc   :  { %2760 = vsyncpa [#allocation3], 1 }
0x23bd   :  { %2761 = vsyncpa [#allocation7], 1 }
0x23be   :  { %2762 = vsyncpa [#allocation4], 1 }

</bundles_post_ra>
